<compile_context>
chip_gen: v6e
topology: v6e:2x2x1
jax: 0.10.0
libtpu: 0.0.40
codegen_flags: <defaults>
</compile_context>

<pallas_src>
import math

import jax
import jax.numpy as jnp
from jax.experimental import pallas as pl
from jax.experimental.pallas import tpu as pltpu

NUM_HEADS = 2
NUM_LAYERS = 2
LN_EPS = 1e-5              # PyTorch nn.LayerNorm default
MXU_DTYPE = jnp.float32    # bf16 only pays off at much larger D/FF


# ----------------------------- kernel helpers -----------------------------

def _layer_norm(x, g, b, eps=LN_EPS):
    mu = jnp.mean(x, axis=-1, keepdims=True)
    var = jnp.mean((x - mu) ** 2, axis=-1, keepdims=True)
    return (x - mu) * jax.lax.rsqrt(var + eps) * g + b


def _mxu_dot(a, w):
    return jnp.dot(a.astype(MXU_DTYPE), w.astype(MXU_DTYPE),
                   preferred_element_type=jnp.float32)


# ------------------------------- fused kernel ------------------------------

def make_decoder_kernel(Bb, T, S, D, num_heads, num_layers):
    """Bb = batch rows handled per grid step (B for grid=(1,), 1 for grid=(B,))."""
    H = num_heads
    dk = D // H
    scale = 1.0 / math.sqrt(dk)

    def split_heads(mat3, col0):
        # mat3: (Bb, rows, C).  Pull H head blocks of dk lanes starting at
        # col0 and merge them into the batch axis -> (H*Bb, rows, dk).  Each
        # slice feeds the attention matmuls directly (no stacked intermediate).
        return jnp.concatenate(
            [mat3[:, :, col0 + h * dk: col0 + (h + 1) * dk] for h in range(H)],
            axis=0)

    def attention(qh, kh, vh, bias):
        # qh: (H*Bb, T, dk); kh/vh: (H*Bb, S_kv, dk); bias: (Bb, T, S_kv)
        # One batched einsum + one softmax over all B*H heads.
        b_full = jnp.tile(bias, (H, 1, 1))                        # (H*Bb, T, S_kv)
        s = jnp.einsum('btd,bsd->bts', qh, kh,
                       preferred_element_type=jnp.float32) * scale + b_full
        s = s - jnp.max(s, axis=-1, keepdims=True)
        e = jnp.exp(s)
        p = e * pl.reciprocal(jnp.sum(e, axis=-1, keepdims=True), approx=True)
        ctx = jnp.einsum('bts,bsd->btd', p, vh,
                         preferred_element_type=jnp.float32)      # (H*Bb, T, dk)
        out = jnp.concatenate([ctx[h * Bb:(h + 1) * Bb] for h in range(H)],
                              axis=-1)                            # (Bb, T, D)
        return out.reshape(Bb * T, D)

    def kernel(x_ref, mem_ref, ttb_ref, tsb_ref,
               wqkv_sa_ref, bqkv_sa_ref, wo_sa_ref, bo_sa_ref,
               wq_ca_ref, bq_ca_ref, wkv_ca_ref, bkv_ca_ref,
               wo_ca_ref, bo_ca_ref,
               w1_ref, b1_ref, w2_ref, b2_ref,
               lng_ref, lnb_ref, fng_ref, fnb_ref,
               o_ref):
        x = x_ref[...].reshape(Bb * T, D)         # (Bb*T, D)
        mem = mem_ref[...].reshape(Bb * S, D)     # (Bb*S, D)
        tt_bias = ttb_ref[...]                    # (Bb, T, T)
        ts_bias = tsb_ref[...]                    # (Bb, T, S)

        for l in range(num_layers):               # static unroll over layers
            lng = lng_ref[l]                      # (3, D)
            lnb = lnb_ref[l]

            # -------- sublayer 0: masked self-attention --------
            xn = _layer_norm(x, lng[0:1, :], lnb[0:1, :])
            qkv = (_mxu_dot(xn, wqkv_sa_ref[l]) + bqkv_sa_ref[l]
                   ).reshape(Bb, T, 3 * D)                        # (Bb, T, 3D)
            ctx = attention(split_heads(qkv, 0),
                            split_heads(qkv, D),
                            split_heads(qkv, 2 * D), tt_bias)     # (Bb*T, D)
            x = x + _mxu_dot(ctx, wo_sa_ref[l]) + bo_sa_ref[l]

            # -------- sublayer 1: encoder-decoder attention --------
            xn = _layer_norm(x, lng[1:2, :], lnb[1:2, :])
            q = (_mxu_dot(xn, wq_ca_ref[l]) + bq_ca_ref[l]
                 ).reshape(Bb, T, D)                              # (Bb, T, D)
            kv = (_mxu_dot(mem, wkv_ca_ref[l]) + bkv_ca_ref[l]
                  ).reshape(Bb, S, 2 * D)                         # (Bb, S, 2D)
            ctx = attention(split_heads(q, 0),
                            split_heads(kv, 0),
                            split_heads(kv, D), ts_bias)
            x = x + _mxu_dot(ctx, wo_ca_ref[l]) + bo_ca_ref[l]

            # -------- sublayer 2: position-wise feed-forward --------
            xn = _layer_norm(x, lng[2:3, :], lnb[2:3, :])
            h = jnp.maximum(_mxu_dot(xn, w1_ref[l]) + b1_ref[l], 0.0)
            x = x + _mxu_dot(h, w2_ref[l]) + b2_ref[l]

        # final LayerNorm
        o_ref[...] = _layer_norm(x, fng_ref[...], fnb_ref[...]).reshape(Bb, T, D)

    return kernel


# ------------------------------ wrappers -----------------------------------

def prepare_kernel_params(params):
    """One-time weight repack (hoisted out of the forward path): fused
    [Wq|Wk|Wv] for self-attention, fused [Wk|Wv] for cross-attention, all
    stacked along a leading layer axis.  W_o kept full-width (D, D)."""
    def stack(fn):
        return jnp.stack([fn(lp) for lp in params["layers"]], axis=0)

    return dict(
        wqkv_sa=stack(lambda lp: jnp.concatenate(
            [lp["w_sa"][0], lp["w_sa"][1], lp["w_sa"][2]], axis=1)),
        bqkv_sa=stack(lambda lp: jnp.concatenate(
            [lp["b_sa"][0], lp["b_sa"][1], lp["b_sa"][2]])[None, :]),
        wo_sa=stack(lambda lp: lp["w_sa"][3]),
        bo_sa=stack(lambda lp: lp["b_sa"][3][None, :]),
        wq_ca=stack(lambda lp: lp["w_ca"][0]),
        bq_ca=stack(lambda lp: lp["b_ca"][0][None, :]),
        wkv_ca=stack(lambda lp: jnp.concatenate(
            [lp["w_ca"][1], lp["w_ca"][2]], axis=1)),
        bkv_ca=stack(lambda lp: jnp.concatenate(
            [lp["b_ca"][1], lp["b_ca"][2]])[None, :]),
        wo_ca=stack(lambda lp: lp["w_ca"][3]),
        bo_ca=stack(lambda lp: lp["b_ca"][3][None, :]),
        w1=stack(lambda lp: lp["w1"]), b1=stack(lambda lp: lp["b1"]),
        w2=stack(lambda lp: lp["w2"]), b2=stack(lambda lp: lp["b2"]),
        ln_g=stack(lambda lp: lp["ln_g"]), ln_b=stack(lambda lp: lp["ln_b"]),
        norm_g=params["norm_g"], norm_b=params["norm_b"],
    )


def _batch_rows_per_step(B):
    # v7x has 2 TensorCores per chip -> batch-parallel grid occupies both;
    # v5e/v6e have 1 TC -> single grid step avoids the per-step overhead.
    try:
        kind = jax.devices()[0].device_kind.lower()
    except Exception:
        kind = ""
    if "v7" in kind and B > 1:
        return 1
    return B


@jax.jit
def decoder_forward(x, memory, tgt_src_mask, tgt_tgt_mask, kp):
    """Matches Decoder.forward(x, memory, tgt_src_mask, tgt_tgt_mask)."""
    B, T, D = x.shape
    S = memory.shape[1]
    L = kp["wqkv_sa"].shape[0]
    FF = kp["w1"].shape[-1]
    H = NUM_HEADS
    dk = D // H

    x = x.astype(jnp.float32)
    memory = memory.astype(jnp.float32)
    # additive attention bias: 0 where kept, -1e9 where masked
    tt_bias = (tgt_tgt_mask.astype(jnp.float32) - 1.0) * 1e9     # (B, T, T)
    ts_bias = (tgt_src_mask.astype(jnp.float32) - 1.0) * 1e9     # (B, T, S)

    Bb = _batch_rows_per_step(B)
    grid = (B // Bb,)

    batched_args = (x, memory, tt_bias, ts_bias)
    weight_args = (
        kp["wqkv_sa"], kp["bqkv_sa"], kp["wo_sa"], kp["bo_sa"],
        kp["wq_ca"], kp["bq_ca"], kp["wkv_ca"], kp["bkv_ca"],
        kp["wo_ca"], kp["bo_ca"],
        kp["w1"], kp["b1"], kp["w2"], kp["b2"],
        kp["ln_g"], kp["ln_b"], kp["norm_g"], kp["norm_b"],
    )

    def batched_spec(a):
        nrest = a.ndim - 1
        return pl.BlockSpec((Bb,) + a.shape[1:],
                            lambda i, _n=nrest: (i,) + (0,) * _n)

    def resident_spec(a):
        nd = a.ndim
        return pl.BlockSpec(a.shape, lambda i, _nd=nd: (0,) * _nd)

    in_specs = ([batched_spec(a) for a in batched_args]
                + [resident_spec(a) for a in weight_args])

    # advisory cost hint for XLA scheduling around the custom call
    proj_flops = 2 * B * (T * D * 3 * D + 3 * T * D * D + S * D * 2 * D
                          + 2 * T * D * FF)
    attn_flops = 4 * B * H * dk * (T * T + T * S)
    flops = L * (proj_flops + attn_flops)
    transcendentals = L * B * H * (T * T + T * S) + (3 * L + 1) * B * T
    bytes_accessed = int(sum(a.size * a.dtype.itemsize
                             for a in batched_args + weight_args)
                         + B * T * D * 4)

    kernel = make_decoder_kernel(Bb, T, S, D, H, L)
    out = pl.pallas_call(
        kernel,
        out_shape=jax.ShapeDtypeStruct((B, T, D), jnp.float32),
        grid=grid,
        in_specs=in_specs,
        out_specs=pl.BlockSpec((Bb, T, D), lambda i: (i, 0, 0)),
        compiler_params=pltpu.CompilerParams(
            dimension_semantics=(("parallel",) if grid[0] > 1
                                 else ("arbitrary",))),
        cost_estimate=pl.CostEstimate(flops=flops,
                                      transcendentals=transcendentals,
                                      bytes_accessed=bytes_accessed),
    )(*batched_args, *weight_args)
    return out


# --------------------------- pure-JAX reference -----------------------------

def decoder_reference(x, memory, tgt_src_mask, tgt_tgt_mask, params):
    def ln(x, g, b):
        mu = x.mean(-1, keepdims=True)
        var = ((x - mu) ** 2).mean(-1, keepdims=True)
        return (x - mu) / jnp.sqrt(var + LN_EPS) * g + b

    def mha(q_in, k_in, v_in, mask, W, bvec):
        B_, T_, D_ = q_in.shape
        dk = D_ // NUM_HEADS
        q = q_in @ W[0] + bvec[0]
        k = k_in @ W[1] + bvec[1]
        v = v_in @ W[2] + bvec[2]
        split = lambda t: t.reshape(t.shape[0], t.shape[1], NUM_HEADS, dk).transpose(0, 2, 1, 3)
        qh, kh, vh = split(q), split(k), split(v)
        s = jnp.einsum('bhtd,bhsd->bhts', qh, kh) / math.sqrt(dk)
        s = jnp.where(mask[:, None] == 0, -1e9, s)
        p = jax.nn.softmax(s, axis=-1)
        o = jnp.einsum('bhts,bhsd->bhtd', p, vh)
        o = o.transpose(0, 2, 1, 3).reshape(B_, T_, D_)
        return o @ W[3] + bvec[3]

    for lp in params["layers"]:
        xn = ln(x, lp["ln_g"][0], lp["ln_b"][0])
        x = x + mha(xn, xn, xn, tgt_tgt_mask, lp["w_sa"], lp["b_sa"])
        xn = ln(x, lp["ln_g"][1], lp["ln_b"][1])
        x = x + mha(xn, memory, memory, tgt_src_mask, lp["w_ca"], lp["b_ca"])
        xn = ln(x, lp["ln_g"][2], lp["ln_b"][2])
        h = jax.nn.relu(xn @ lp["w1"] + lp["b1"][0])
        x = x + h @ lp["w2"] + lp["b2"][0]
    return ln(x, params["norm_g"][0], params["norm_b"][0])


# --------------------------------- main -------------------------------------

def init_params(key, num_layers, d_model, d_ff):
    layers = []
    for _ in range(num_layers):
        key, *ks = jax.random.split(key, 9)
        layers.append(dict(
            w_sa=0.1 * jax.random.normal(ks[0], (4, d_model, d_model), jnp.float32),
            b_sa=0.05 * jax.random.normal(ks[1], (4, d_model), jnp.float32),
            w_ca=0.1 * jax.random.normal(ks[2], (4, d_model, d_model), jnp.float32),
            b_ca=0.05 * jax.random.normal(ks[3], (4, d_model), jnp.float32),
            w1=0.1 * jax.random.normal(ks[4], (d_model, d_ff), jnp.float32),
            b1=0.05 * jax.random.normal(ks[5], (1, d_ff), jnp.float32),
            w2=0.1 * jax.random.normal(ks[6], (d_ff, d_model), jnp.float32),
            b2=0.05 * jax.random.normal(ks[7], (1, d_model), jnp.float32),
            ln_g=jnp.ones((3, d_model), jnp.float32),
            ln_b=jnp.zeros((3, d_model), jnp.float32),
        ))
    key, kg, kb = jax.random.split(key, 3)
    return dict(
        layers=layers,
        norm_g=1.0 + 0.1 * jax.random.normal(kg, (1, d_model), jnp.float32),
        norm_b=0.05 * jax.random.normal(kb, (1, d_model), jnp.float32),
    )


if __name__ == "__main__":
    B, T, S, D, FF = 2, 8, 8, 32, 64

    key = jax.random.PRNGKey(0)
    k_x, k_m, k_p = jax.random.split(key, 3)
    x = jax.random.normal(k_x, (B, T, D), jnp.float32)
    memory = jax.random.normal(k_m, (B, S, D), jnp.float32)

    # causal target-target mask, target-source mask with one masked source pos
    tgt_tgt_mask = jnp.broadcast_to(
        jnp.tril(jnp.ones((T, T), jnp.float32)), (B, T, T))
    tgt_src_mask = jnp.ones((B, T, S), jnp.float32).at[1, :, S - 1].set(0.0)

    params = init_params(k_p, NUM_LAYERS, D, FF)
    kp = prepare_kernel_params(params)   # one-time repack, outside the hot path

    out = decoder_forward(x, memory, tgt_src_mask, tgt_tgt_mask, kp)
    out = jax.block_until_ready(out)

    ref = decoder_reference(x, memory, tgt_src_mask, tgt_tgt_mask, params)
    assert out.shape == (B, T, D)
    assert jnp.allclose(out, ref, rtol=2e-3, atol=2e-3), (
        f"max abs diff = {jnp.max(jnp.abs(out - ref))}")

    print("KERNEL_OK")
</pallas_src>

<mosaic_0001>
module attributes {stable_mosaic.version = 11 : i64} {
  func.func @kernel(%arg0: i32, %arg1: memref<2x8x32xf32, #tpu.memory_space<vmem>>, %arg2: memref<2x8x32xf32, #tpu.memory_space<vmem>>, %arg3: memref<2x8x8xf32, #tpu.memory_space<vmem>>, %arg4: memref<2x8x8xf32, #tpu.memory_space<vmem>>, %arg5: memref<2x32x96xf32, #tpu.memory_space<vmem>>, %arg6: memref<2x1x96xf32, #tpu.memory_space<vmem>>, %arg7: memref<2x32x32xf32, #tpu.memory_space<vmem>>, %arg8: memref<2x1x32xf32, #tpu.memory_space<vmem>>, %arg9: memref<2x32x32xf32, #tpu.memory_space<vmem>>, %arg10: memref<2x1x32xf32, #tpu.memory_space<vmem>>, %arg11: memref<2x32x64xf32, #tpu.memory_space<vmem>>, %arg12: memref<2x1x64xf32, #tpu.memory_space<vmem>>, %arg13: memref<2x32x32xf32, #tpu.memory_space<vmem>>, %arg14: memref<2x1x32xf32, #tpu.memory_space<vmem>>, %arg15: memref<2x32x64xf32, #tpu.memory_space<vmem>>, %arg16: memref<2x1x64xf32, #tpu.memory_space<vmem>>, %arg17: memref<2x64x32xf32, #tpu.memory_space<vmem>>, %arg18: memref<2x1x32xf32, #tpu.memory_space<vmem>>, %arg19: memref<2x3x32xf32, #tpu.memory_space<vmem>>, %arg20: memref<2x3x32xf32, #tpu.memory_space<vmem>>, %arg21: memref<1x32xf32, #tpu.memory_space<vmem>>, %arg22: memref<1x32xf32, #tpu.memory_space<vmem>>, %arg23: memref<2x8x32xf32, #tpu.memory_space<vmem>>) attributes {dimension_semantics = [#tpu.dimension_semantics<arbitrary>], iteration_bounds = array<i64: 1>, scalar_prefetch = 0 : i64, scratch_operands = 0 : i64, tpu.core_type = #tpu.core_type<tc>, window_params = [{transform_indices = @transform_0, window_bounds = array<i64: 2, 8, 32>}, {transform_indices = @transform_1, window_bounds = array<i64: 2, 8, 32>}, {transform_indices = @transform_2, window_bounds = array<i64: 2, 8, 8>}, {transform_indices = @transform_3, window_bounds = array<i64: 2, 8, 8>}, {pipeline_mode = #tpu.pipeline_mode<synchronous>, transform_indices = @transform_4, window_bounds = array<i64: 2, 32, 96>}, {pipeline_mode = #tpu.pipeline_mode<synchronous>, transform_indices = @transform_5, window_bounds = array<i64: 2, 1, 96>}, {pipeline_mode = #tpu.pipeline_mode<synchronous>, transform_indices = @transform_6, window_bounds = array<i64: 2, 32, 32>}, {pipeline_mode = #tpu.pipeline_mode<synchronous>, transform_indices = @transform_7, window_bounds = array<i64: 2, 1, 32>}, {pipeline_mode = #tpu.pipeline_mode<synchronous>, transform_indices = @transform_8, window_bounds = array<i64: 2, 32, 32>}, {pipeline_mode = #tpu.pipeline_mode<synchronous>, transform_indices = @transform_9, window_bounds = array<i64: 2, 1, 32>}, {pipeline_mode = #tpu.pipeline_mode<synchronous>, transform_indices = @transform_10, window_bounds = array<i64: 2, 32, 64>}, {pipeline_mode = #tpu.pipeline_mode<synchronous>, transform_indices = @transform_11, window_bounds = array<i64: 2, 1, 64>}, {pipeline_mode = #tpu.pipeline_mode<synchronous>, transform_indices = @transform_12, window_bounds = array<i64: 2, 32, 32>}, {pipeline_mode = #tpu.pipeline_mode<synchronous>, transform_indices = @transform_13, window_bounds = array<i64: 2, 1, 32>}, {pipeline_mode = #tpu.pipeline_mode<synchronous>, transform_indices = @transform_14, window_bounds = array<i64: 2, 32, 64>}, {pipeline_mode = #tpu.pipeline_mode<synchronous>, transform_indices = @transform_15, window_bounds = array<i64: 2, 1, 64>}, {pipeline_mode = #tpu.pipeline_mode<synchronous>, transform_indices = @transform_16, window_bounds = array<i64: 2, 64, 32>}, {pipeline_mode = #tpu.pipeline_mode<synchronous>, transform_indices = @transform_17, window_bounds = array<i64: 2, 1, 32>}, {pipeline_mode = #tpu.pipeline_mode<synchronous>, transform_indices = @transform_18, window_bounds = array<i64: 2, 3, 32>}, {pipeline_mode = #tpu.pipeline_mode<synchronous>, transform_indices = @transform_19, window_bounds = array<i64: 2, 3, 32>}, {pipeline_mode = #tpu.pipeline_mode<synchronous>, transform_indices = @transform_20, window_bounds = array<i64: 1, 32>}, {pipeline_mode = #tpu.pipeline_mode<synchronous>, transform_indices = @transform_21, window_bounds = array<i64: 1, 32>}, {transform_indices = @transform_22, window_bounds = array<i64: 2, 8, 32>}]} {
    %c0 = arith.constant 0 : index
    %c0_0 = arith.constant 0 : index
    %c0_1 = arith.constant 0 : index
    %0 = vector.load %arg1[%c0, %c0_0, %c0_1] : memref<2x8x32xf32, #tpu.memory_space<vmem>>, vector<2x8x32xf32>
    %1 = vector.shape_cast %0 : vector<2x8x32xf32> to vector<16x32xf32>
    %c0_2 = arith.constant 0 : index
    %c0_3 = arith.constant 0 : index
    %c0_4 = arith.constant 0 : index
    %2 = vector.load %arg2[%c0_2, %c0_3, %c0_4] : memref<2x8x32xf32, #tpu.memory_space<vmem>>, vector<2x8x32xf32>
    %3 = vector.shape_cast %2 : vector<2x8x32xf32> to vector<16x32xf32>
    %c0_5 = arith.constant 0 : index
    %c0_6 = arith.constant 0 : index
    %c0_7 = arith.constant 0 : index
    %4 = vector.load %arg3[%c0_5, %c0_6, %c0_7] : memref<2x8x8xf32, #tpu.memory_space<vmem>>, vector<2x8x8xf32>
    %c0_8 = arith.constant 0 : index
    %c0_9 = arith.constant 0 : index
    %c0_10 = arith.constant 0 : index
    %5 = vector.load %arg4[%c0_8, %c0_9, %c0_10] : memref<2x8x8xf32, #tpu.memory_space<vmem>>, vector<2x8x8xf32>
    %c0_11 = arith.constant 0 : index
    %c0_12 = arith.constant 0 : index
    %c0_13 = arith.constant 0 : index
    %6 = vector.load %arg19[%c0_11, %c0_12, %c0_13] : memref<2x3x32xf32, #tpu.memory_space<vmem>>, vector<1x3x32xf32>
    %7 = vector.shape_cast %6 : vector<1x3x32xf32> to vector<3x32xf32>
    %c0_14 = arith.constant 0 : index
    %c0_15 = arith.constant 0 : index
    %c0_16 = arith.constant 0 : index
    %8 = vector.load %arg20[%c0_14, %c0_15, %c0_16] : memref<2x3x32xf32, #tpu.memory_space<vmem>>, vector<1x3x32xf32>
    %9 = vector.shape_cast %8 : vector<1x3x32xf32> to vector<3x32xf32>
    %10 = vector.extract_strided_slice %7 {offsets = [0, 0], sizes = [1, 32], strides = [1, 1]} : vector<3x32xf32> to vector<1x32xf32>
    %11 = vector.extract_strided_slice %9 {offsets = [0, 0], sizes = [1, 32], strides = [1, 1]} : vector<3x32xf32> to vector<1x32xf32>
    %cst = arith.constant dense<0.000000e+00> : vector<16xf32>
    %12 = vector.multi_reduction <add>, %1, %cst [1] : vector<16x32xf32> to vector<16xf32>
    %13 = vector.shape_cast %12 : vector<16xf32> to vector<16x1xf32>
    %cst_17 = arith.constant 3.200000e+01 : f32
    %14 = vector.broadcast %cst_17 : f32 to vector<16x1xf32>
    %15 = arith.divf %13, %14 : vector<16x1xf32>
    %16 = vector.broadcast %15 : vector<16x1xf32> to vector<16x32xf32>
    %17 = arith.subf %1, %16 : vector<16x32xf32>
    %18 = arith.mulf %17, %17 : vector<16x32xf32>
    %cst_18 = arith.constant dense<0.000000e+00> : vector<16xf32>
    %19 = vector.multi_reduction <add>, %18, %cst_18 [1] : vector<16x32xf32> to vector<16xf32>
    %20 = vector.shape_cast %19 : vector<16xf32> to vector<16x1xf32>
    %cst_19 = arith.constant 3.200000e+01 : f32
    %21 = vector.broadcast %cst_19 : f32 to vector<16x1xf32>
    %22 = arith.divf %20, %21 : vector<16x1xf32>
    %23 = vector.broadcast %15 : vector<16x1xf32> to vector<16x32xf32>
    %24 = arith.subf %1, %23 : vector<16x32xf32>
    %cst_20 = arith.constant 9.99999974E-6 : f32
    %25 = vector.broadcast %cst_20 : f32 to vector<16x1xf32>
    %26 = arith.addf %22, %25 : vector<16x1xf32>
    %27 = math.rsqrt %26 : vector<16x1xf32>
    %28 = vector.broadcast %27 : vector<16x1xf32> to vector<16x32xf32>
    %29 = arith.mulf %24, %28 : vector<16x32xf32>
    %30 = vector.broadcast %10 : vector<1x32xf32> to vector<16x32xf32>
    %31 = arith.mulf %29, %30 : vector<16x32xf32>
    %32 = vector.broadcast %11 : vector<1x32xf32> to vector<16x32xf32>
    %33 = arith.addf %31, %32 : vector<16x32xf32>
    %c0_21 = arith.constant 0 : index
    %c0_22 = arith.constant 0 : index
    %c0_23 = arith.constant 0 : index
    %34 = vector.load %arg5[%c0_21, %c0_22, %c0_23] : memref<2x32x96xf32, #tpu.memory_space<vmem>>, vector<1x32x96xf32>
    %35 = vector.shape_cast %34 : vector<1x32x96xf32> to vector<32x96xf32>
    %cst_24 = arith.constant dense<0.000000e+00> : vector<16x96xf32>
    %36 = tpu.matmul %33, %35, %cst_24 {dimension_numbers = #tpu.dot_dimension_numbers<[1], [0], [0], [1], [0, 0, 1, 1], [], []>} : vector<16x32xf32>, vector<32x96xf32>, vector<16x96xf32> -> vector<16x96xf32>
    %c0_25 = arith.constant 0 : index
    %c0_26 = arith.constant 0 : index
    %c0_27 = arith.constant 0 : index
    %37 = vector.load %arg6[%c0_25, %c0_26, %c0_27] : memref<2x1x96xf32, #tpu.memory_space<vmem>>, vector<1x1x96xf32>
    %38 = vector.shape_cast %37 : vector<1x1x96xf32> to vector<1x96xf32>
    %39 = vector.broadcast %38 : vector<1x96xf32> to vector<16x96xf32>
    %40 = arith.addf %36, %39 : vector<16x96xf32>
    %41 = vector.shape_cast %40 : vector<16x96xf32> to vector<2x8x96xf32>
    %42 = vector.extract_strided_slice %41 {offsets = [0, 0, 0], sizes = [2, 8, 16], strides = [1, 1, 1]} : vector<2x8x96xf32> to vector<2x8x16xf32>
    %43 = vector.extract_strided_slice %41 {offsets = [0, 0, 16], sizes = [2, 8, 16], strides = [1, 1, 1]} : vector<2x8x96xf32> to vector<2x8x16xf32>
    %44 = tpu.concatenate %42, %43 in 0 : vector<2x8x16xf32>, vector<2x8x16xf32> -> vector<4x8x16xf32>
    %45 = vector.extract_strided_slice %41 {offsets = [0, 0, 32], sizes = [2, 8, 16], strides = [1, 1, 1]} : vector<2x8x96xf32> to vector<2x8x16xf32>
    %46 = vector.extract_strided_slice %41 {offsets = [0, 0, 48], sizes = [2, 8, 16], strides = [1, 1, 1]} : vector<2x8x96xf32> to vector<2x8x16xf32>
    %47 = tpu.concatenate %45, %46 in 0 : vector<2x8x16xf32>, vector<2x8x16xf32> -> vector<4x8x16xf32>
    %48 = vector.extract_strided_slice %41 {offsets = [0, 0, 64], sizes = [2, 8, 16], strides = [1, 1, 1]} : vector<2x8x96xf32> to vector<2x8x16xf32>
    %49 = vector.extract_strided_slice %41 {offsets = [0, 0, 80], sizes = [2, 8, 16], strides = [1, 1, 1]} : vector<2x8x96xf32> to vector<2x8x16xf32>
    %50 = tpu.concatenate %48, %49 in 0 : vector<2x8x16xf32>, vector<2x8x16xf32> -> vector<4x8x16xf32>
    %51 = tpu.concatenate %4, %4 in 0 : vector<2x8x8xf32>, vector<2x8x8xf32> -> vector<4x8x8xf32>
    "tpu.trace_start"() <{level = 10 : i32, message = "btd,bsd->bts"}> : () -> ()
    %cst_28 = arith.constant dense<0.000000e+00> : vector<4x8x8xf32>
    %52 = tpu.matmul %44, %47, %cst_28 {dimension_numbers = #tpu.dot_dimension_numbers<[2], [2], [1], [1], [0, 0, 0, 1, 1, 1], [0], [0]>} : vector<4x8x16xf32>, vector<4x8x16xf32>, vector<4x8x8xf32> -> vector<4x8x8xf32>
    "tpu.trace_stop"() : () -> ()
    %cst_29 = arith.constant 2.500000e-01 : f32
    %53 = vector.broadcast %cst_29 : f32 to vector<4x8x8xf32>
    %54 = arith.mulf %52, %53 : vector<4x8x8xf32>
    %55 = arith.addf %54, %51 : vector<4x8x8xf32>
    %cst_30 = arith.constant dense<0xFF800000> : vector<4x8xf32>
    %56 = vector.multi_reduction <maximumf>, %55, %cst_30 [2] : vector<4x8x8xf32> to vector<4x8xf32>
    %57 = vector.shape_cast %56 : vector<4x8xf32> to vector<4x8x1xf32>
    %58 = vector.broadcast %57 : vector<4x8x1xf32> to vector<4x8x8xf32>
    %59 = arith.subf %55, %58 : vector<4x8x8xf32>
    %60 = math.exp %59 : vector<4x8x8xf32>
    %cst_31 = arith.constant dense<0.000000e+00> : vector<4x8xf32>
    %61 = vector.multi_reduction <add>, %60, %cst_31 [2] : vector<4x8x8xf32> to vector<4x8xf32>
    %62 = vector.shape_cast %61 : vector<4x8xf32> to vector<4x8x1xf32>
    %63 = tpu.reciprocal %62 {approx = true} : vector<4x8x1xf32> -> vector<4x8x1xf32>
    %64 = vector.broadcast %63 : vector<4x8x1xf32> to vector<4x8x8xf32>
    %65 = arith.mulf %60, %64 : vector<4x8x8xf32>
    "tpu.trace_start"() <{level = 10 : i32, message = "bts,bsd->btd"}> : () -> ()
    %cst_32 = arith.constant dense<0.000000e+00> : vector<4x8x16xf32>
    %66 = tpu.matmul %65, %50, %cst_32 {dimension_numbers = #tpu.dot_dimension_numbers<[2], [1], [1], [2], [0, 0, 0, 1, 1, 2], [0], [0]>} : vector<4x8x8xf32>, vector<4x8x16xf32>, vector<4x8x16xf32> -> vector<4x8x16xf32>
    "tpu.trace_stop"() : () -> ()
    %67 = vector.extract_strided_slice %66 {offsets = [0, 0, 0], sizes = [2, 8, 16], strides = [1, 1, 1]} : vector<4x8x16xf32> to vector<2x8x16xf32>
    %68 = vector.extract_strided_slice %66 {offsets = [2, 0, 0], sizes = [2, 8, 16], strides = [1, 1, 1]} : vector<4x8x16xf32> to vector<2x8x16xf32>
    %69 = tpu.concatenate %67, %68 in 2 : vector<2x8x16xf32>, vector<2x8x16xf32> -> vector<2x8x32xf32>
    %70 = vector.shape_cast %69 : vector<2x8x32xf32> to vector<16x32xf32>
    %c0_33 = arith.constant 0 : index
    %c0_34 = arith.constant 0 : index
    %c0_35 = arith.constant 0 : index
    %71 = vector.load %arg7[%c0_33, %c0_34, %c0_35] : memref<2x32x32xf32, #tpu.memory_space<vmem>>, vector<1x32x32xf32>
    %72 = vector.shape_cast %71 : vector<1x32x32xf32> to vector<32x32xf32>
    %cst_36 = arith.constant dense<0.000000e+00> : vector<16x32xf32>
    %73 = tpu.matmul %70, %72, %cst_36 {dimension_numbers = #tpu.dot_dimension_numbers<[1], [0], [0], [1], [0, 0, 1, 1], [], []>} : vector<16x32xf32>, vector<32x32xf32>, vector<16x32xf32> -> vector<16x32xf32>
    %74 = arith.addf %1, %73 : vector<16x32xf32>
    %c0_37 = arith.constant 0 : index
    %c0_38 = arith.constant 0 : index
    %c0_39 = arith.constant 0 : index
    %75 = vector.load %arg8[%c0_37, %c0_38, %c0_39] : memref<2x1x32xf32, #tpu.memory_space<vmem>>, vector<1x1x32xf32>
    %76 = vector.shape_cast %75 : vector<1x1x32xf32> to vector<1x32xf32>
    %77 = vector.broadcast %76 : vector<1x32xf32> to vector<16x32xf32>
    %78 = arith.addf %74, %77 : vector<16x32xf32>
    %79 = vector.extract_strided_slice %7 {offsets = [1, 0], sizes = [1, 32], strides = [1, 1]} : vector<3x32xf32> to vector<1x32xf32>
    %80 = vector.extract_strided_slice %9 {offsets = [1, 0], sizes = [1, 32], strides = [1, 1]} : vector<3x32xf32> to vector<1x32xf32>
    %cst_40 = arith.constant dense<0.000000e+00> : vector<16xf32>
    %81 = vector.multi_reduction <add>, %78, %cst_40 [1] : vector<16x32xf32> to vector<16xf32>
    %82 = vector.shape_cast %81 : vector<16xf32> to vector<16x1xf32>
    %cst_41 = arith.constant 3.200000e+01 : f32
    %83 = vector.broadcast %cst_41 : f32 to vector<16x1xf32>
    %84 = arith.divf %82, %83 : vector<16x1xf32>
    %85 = vector.broadcast %84 : vector<16x1xf32> to vector<16x32xf32>
    %86 = arith.subf %78, %85 : vector<16x32xf32>
    %87 = arith.mulf %86, %86 : vector<16x32xf32>
    %cst_42 = arith.constant dense<0.000000e+00> : vector<16xf32>
    %88 = vector.multi_reduction <add>, %87, %cst_42 [1] : vector<16x32xf32> to vector<16xf32>
    %89 = vector.shape_cast %88 : vector<16xf32> to vector<16x1xf32>
    %cst_43 = arith.constant 3.200000e+01 : f32
    %90 = vector.broadcast %cst_43 : f32 to vector<16x1xf32>
    %91 = arith.divf %89, %90 : vector<16x1xf32>
    %92 = vector.broadcast %84 : vector<16x1xf32> to vector<16x32xf32>
    %93 = arith.subf %78, %92 : vector<16x32xf32>
    %cst_44 = arith.constant 9.99999974E-6 : f32
    %94 = vector.broadcast %cst_44 : f32 to vector<16x1xf32>
    %95 = arith.addf %91, %94 : vector<16x1xf32>
    %96 = math.rsqrt %95 : vector<16x1xf32>
    %97 = vector.broadcast %96 : vector<16x1xf32> to vector<16x32xf32>
    %98 = arith.mulf %93, %97 : vector<16x32xf32>
    %99 = vector.broadcast %79 : vector<1x32xf32> to vector<16x32xf32>
    %100 = arith.mulf %98, %99 : vector<16x32xf32>
    %101 = vector.broadcast %80 : vector<1x32xf32> to vector<16x32xf32>
    %102 = arith.addf %100, %101 : vector<16x32xf32>
    %c0_45 = arith.constant 0 : index
    %c0_46 = arith.constant 0 : index
    %c0_47 = arith.constant 0 : index
    %103 = vector.load %arg9[%c0_45, %c0_46, %c0_47] : memref<2x32x32xf32, #tpu.memory_space<vmem>>, vector<1x32x32xf32>
    %104 = vector.shape_cast %103 : vector<1x32x32xf32> to vector<32x32xf32>
    %cst_48 = arith.constant dense<0.000000e+00> : vector<16x32xf32>
    %105 = tpu.matmul %102, %104, %cst_48 {dimension_numbers = #tpu.dot_dimension_numbers<[1], [0], [0], [1], [0, 0, 1, 1], [], []>} : vector<16x32xf32>, vector<32x32xf32>, vector<16x32xf32> -> vector<16x32xf32>
    %c0_49 = arith.constant 0 : index
    %c0_50 = arith.constant 0 : index
    %c0_51 = arith.constant 0 : index
    %106 = vector.load %arg10[%c0_49, %c0_50, %c0_51] : memref<2x1x32xf32, #tpu.memory_space<vmem>>, vector<1x1x32xf32>
    %107 = vector.shape_cast %106 : vector<1x1x32xf32> to vector<1x32xf32>
    %108 = vector.broadcast %107 : vector<1x32xf32> to vector<16x32xf32>
    %109 = arith.addf %105, %108 : vector<16x32xf32>
    %110 = vector.shape_cast %109 : vector<16x32xf32> to vector<2x8x32xf32>
    %c0_52 = arith.constant 0 : index
    %c0_53 = arith.constant 0 : index
    %c0_54 = arith.constant 0 : index
    %111 = vector.load %arg11[%c0_52, %c0_53, %c0_54] : memref<2x32x64xf32, #tpu.memory_space<vmem>>, vector<1x32x64xf32>
    %112 = vector.shape_cast %111 : vector<1x32x64xf32> to vector<32x64xf32>
    %cst_55 = arith.constant dense<0.000000e+00> : vector<16x64xf32>
    %113 = tpu.matmul %3, %112, %cst_55 {dimension_numbers = #tpu.dot_dimension_numbers<[1], [0], [0], [1], [0, 0, 1, 1], [], []>} : vector<16x32xf32>, vector<32x64xf32>, vector<16x64xf32> -> vector<16x64xf32>
    %c0_56 = arith.constant 0 : index
    %c0_57 = arith.constant 0 : index
    %c0_58 = arith.constant 0 : index
    %114 = vector.load %arg12[%c0_56, %c0_57, %c0_58] : memref<2x1x64xf32, #tpu.memory_space<vmem>>, vector<1x1x64xf32>
    %115 = vector.shape_cast %114 : vector<1x1x64xf32> to vector<1x64xf32>
    %116 = vector.broadcast %115 : vector<1x64xf32> to vector<16x64xf32>
    %117 = arith.addf %113, %116 : vector<16x64xf32>
    %118 = vector.shape_cast %117 : vector<16x64xf32> to vector<2x8x64xf32>
    %119 = vector.extract_strided_slice %110 {offsets = [0, 0, 0], sizes = [2, 8, 16], strides = [1, 1, 1]} : vector<2x8x32xf32> to vector<2x8x16xf32>
    %120 = vector.extract_strided_slice %110 {offsets = [0, 0, 16], sizes = [2, 8, 16], strides = [1, 1, 1]} : vector<2x8x32xf32> to vector<2x8x16xf32>
    %121 = tpu.concatenate %119, %120 in 0 : vector<2x8x16xf32>, vector<2x8x16xf32> -> vector<4x8x16xf32>
    %122 = vector.extract_strided_slice %118 {offsets = [0, 0, 0], sizes = [2, 8, 16], strides = [1, 1, 1]} : vector<2x8x64xf32> to vector<2x8x16xf32>
    %123 = vector.extract_strided_slice %118 {offsets = [0, 0, 16], sizes = [2, 8, 16], strides = [1, 1, 1]} : vector<2x8x64xf32> to vector<2x8x16xf32>
    %124 = tpu.concatenate %122, %123 in 0 : vector<2x8x16xf32>, vector<2x8x16xf32> -> vector<4x8x16xf32>
    %125 = vector.extract_strided_slice %118 {offsets = [0, 0, 32], sizes = [2, 8, 16], strides = [1, 1, 1]} : vector<2x8x64xf32> to vector<2x8x16xf32>
    %126 = vector.extract_strided_slice %118 {offsets = [0, 0, 48], sizes = [2, 8, 16], strides = [1, 1, 1]} : vector<2x8x64xf32> to vector<2x8x16xf32>
    %127 = tpu.concatenate %125, %126 in 0 : vector<2x8x16xf32>, vector<2x8x16xf32> -> vector<4x8x16xf32>
    %128 = tpu.concatenate %5, %5 in 0 : vector<2x8x8xf32>, vector<2x8x8xf32> -> vector<4x8x8xf32>
    "tpu.trace_start"() <{level = 10 : i32, message = "btd,bsd->bts"}> : () -> ()
    %cst_59 = arith.constant dense<0.000000e+00> : vector<4x8x8xf32>
    %129 = tpu.matmul %121, %124, %cst_59 {dimension_numbers = #tpu.dot_dimension_numbers<[2], [2], [1], [1], [0, 0, 0, 1, 1, 1], [0], [0]>} : vector<4x8x16xf32>, vector<4x8x16xf32>, vector<4x8x8xf32> -> vector<4x8x8xf32>
    "tpu.trace_stop"() : () -> ()
    %cst_60 = arith.constant 2.500000e-01 : f32
    %130 = vector.broadcast %cst_60 : f32 to vector<4x8x8xf32>
    %131 = arith.mulf %129, %130 : vector<4x8x8xf32>
    %132 = arith.addf %131, %128 : vector<4x8x8xf32>
    %cst_61 = arith.constant dense<0xFF800000> : vector<4x8xf32>
    %133 = vector.multi_reduction <maximumf>, %132, %cst_61 [2] : vector<4x8x8xf32> to vector<4x8xf32>
    %134 = vector.shape_cast %133 : vector<4x8xf32> to vector<4x8x1xf32>
    %135 = vector.broadcast %134 : vector<4x8x1xf32> to vector<4x8x8xf32>
    %136 = arith.subf %132, %135 : vector<4x8x8xf32>
    %137 = math.exp %136 : vector<4x8x8xf32>
    %cst_62 = arith.constant dense<0.000000e+00> : vector<4x8xf32>
    %138 = vector.multi_reduction <add>, %137, %cst_62 [2] : vector<4x8x8xf32> to vector<4x8xf32>
    %139 = vector.shape_cast %138 : vector<4x8xf32> to vector<4x8x1xf32>
    %140 = tpu.reciprocal %139 {approx = true} : vector<4x8x1xf32> -> vector<4x8x1xf32>
    %141 = vector.broadcast %140 : vector<4x8x1xf32> to vector<4x8x8xf32>
    %142 = arith.mulf %137, %141 : vector<4x8x8xf32>
    "tpu.trace_start"() <{level = 10 : i32, message = "bts,bsd->btd"}> : () -> ()
    %cst_63 = arith.constant dense<0.000000e+00> : vector<4x8x16xf32>
    %143 = tpu.matmul %142, %127, %cst_63 {dimension_numbers = #tpu.dot_dimension_numbers<[2], [1], [1], [2], [0, 0, 0, 1, 1, 2], [0], [0]>} : vector<4x8x8xf32>, vector<4x8x16xf32>, vector<4x8x16xf32> -> vector<4x8x16xf32>
    "tpu.trace_stop"() : () -> ()
    %144 = vector.extract_strided_slice %143 {offsets = [0, 0, 0], sizes = [2, 8, 16], strides = [1, 1, 1]} : vector<4x8x16xf32> to vector<2x8x16xf32>
    %145 = vector.extract_strided_slice %143 {offsets = [2, 0, 0], sizes = [2, 8, 16], strides = [1, 1, 1]} : vector<4x8x16xf32> to vector<2x8x16xf32>
    %146 = tpu.concatenate %144, %145 in 2 : vector<2x8x16xf32>, vector<2x8x16xf32> -> vector<2x8x32xf32>
    %147 = vector.shape_cast %146 : vector<2x8x32xf32> to vector<16x32xf32>
    %c0_64 = arith.constant 0 : index
    %c0_65 = arith.constant 0 : index
    %c0_66 = arith.constant 0 : index
    %148 = vector.load %arg13[%c0_64, %c0_65, %c0_66] : memref<2x32x32xf32, #tpu.memory_space<vmem>>, vector<1x32x32xf32>
    %149 = vector.shape_cast %148 : vector<1x32x32xf32> to vector<32x32xf32>
    %cst_67 = arith.constant dense<0.000000e+00> : vector<16x32xf32>
    %150 = tpu.matmul %147, %149, %cst_67 {dimension_numbers = #tpu.dot_dimension_numbers<[1], [0], [0], [1], [0, 0, 1, 1], [], []>} : vector<16x32xf32>, vector<32x32xf32>, vector<16x32xf32> -> vector<16x32xf32>
    %151 = arith.addf %78, %150 : vector<16x32xf32>
    %c0_68 = arith.constant 0 : index
    %c0_69 = arith.constant 0 : index
    %c0_70 = arith.constant 0 : index
    %152 = vector.load %arg14[%c0_68, %c0_69, %c0_70] : memref<2x1x32xf32, #tpu.memory_space<vmem>>, vector<1x1x32xf32>
    %153 = vector.shape_cast %152 : vector<1x1x32xf32> to vector<1x32xf32>
    %154 = vector.broadcast %153 : vector<1x32xf32> to vector<16x32xf32>
    %155 = arith.addf %151, %154 : vector<16x32xf32>
    %156 = vector.extract_strided_slice %7 {offsets = [2, 0], sizes = [1, 32], strides = [1, 1]} : vector<3x32xf32> to vector<1x32xf32>
    %157 = vector.extract_strided_slice %9 {offsets = [2, 0], sizes = [1, 32], strides = [1, 1]} : vector<3x32xf32> to vector<1x32xf32>
    %cst_71 = arith.constant dense<0.000000e+00> : vector<16xf32>
    %158 = vector.multi_reduction <add>, %155, %cst_71 [1] : vector<16x32xf32> to vector<16xf32>
    %159 = vector.shape_cast %158 : vector<16xf32> to vector<16x1xf32>
    %cst_72 = arith.constant 3.200000e+01 : f32
    %160 = vector.broadcast %cst_72 : f32 to vector<16x1xf32>
    %161 = arith.divf %159, %160 : vector<16x1xf32>
    %162 = vector.broadcast %161 : vector<16x1xf32> to vector<16x32xf32>
    %163 = arith.subf %155, %162 : vector<16x32xf32>
    %164 = arith.mulf %163, %163 : vector<16x32xf32>
    %cst_73 = arith.constant dense<0.000000e+00> : vector<16xf32>
    %165 = vector.multi_reduction <add>, %164, %cst_73 [1] : vector<16x32xf32> to vector<16xf32>
    %166 = vector.shape_cast %165 : vector<16xf32> to vector<16x1xf32>
    %cst_74 = arith.constant 3.200000e+01 : f32
    %167 = vector.broadcast %cst_74 : f32 to vector<16x1xf32>
    %168 = arith.divf %166, %167 : vector<16x1xf32>
    %169 = vector.broadcast %161 : vector<16x1xf32> to vector<16x32xf32>
    %170 = arith.subf %155, %169 : vector<16x32xf32>
    %cst_75 = arith.constant 9.99999974E-6 : f32
    %171 = vector.broadcast %cst_75 : f32 to vector<16x1xf32>
    %172 = arith.addf %168, %171 : vector<16x1xf32>
    %173 = math.rsqrt %172 : vector<16x1xf32>
    %174 = vector.broadcast %173 : vector<16x1xf32> to vector<16x32xf32>
    %175 = arith.mulf %170, %174 : vector<16x32xf32>
    %176 = vector.broadcast %156 : vector<1x32xf32> to vector<16x32xf32>
    %177 = arith.mulf %175, %176 : vector<16x32xf32>
    %178 = vector.broadcast %157 : vector<1x32xf32> to vector<16x32xf32>
    %179 = arith.addf %177, %178 : vector<16x32xf32>
    %c0_76 = arith.constant 0 : index
    %c0_77 = arith.constant 0 : index
    %c0_78 = arith.constant 0 : index
    %180 = vector.load %arg15[%c0_76, %c0_77, %c0_78] : memref<2x32x64xf32, #tpu.memory_space<vmem>>, vector<1x32x64xf32>
    %181 = vector.shape_cast %180 : vector<1x32x64xf32> to vector<32x64xf32>
    %cst_79 = arith.constant dense<0.000000e+00> : vector<16x64xf32>
    %182 = tpu.matmul %179, %181, %cst_79 {dimension_numbers = #tpu.dot_dimension_numbers<[1], [0], [0], [1], [0, 0, 1, 1], [], []>} : vector<16x32xf32>, vector<32x64xf32>, vector<16x64xf32> -> vector<16x64xf32>
    %c0_80 = arith.constant 0 : index
    %c0_81 = arith.constant 0 : index
    %c0_82 = arith.constant 0 : index
    %183 = vector.load %arg16[%c0_80, %c0_81, %c0_82] : memref<2x1x64xf32, #tpu.memory_space<vmem>>, vector<1x1x64xf32>
    %184 = vector.shape_cast %183 : vector<1x1x64xf32> to vector<1x64xf32>
    %185 = vector.broadcast %184 : vector<1x64xf32> to vector<16x64xf32>
    %186 = arith.addf %182, %185 : vector<16x64xf32>
    %cst_83 = arith.constant 0.000000e+00 : f32
    %187 = vector.broadcast %cst_83 : f32 to vector<16x64xf32>
    %188 = arith.maximumf %186, %187 : vector<16x64xf32>
    %c0_84 = arith.constant 0 : index
    %c0_85 = arith.constant 0 : index
    %c0_86 = arith.constant 0 : index
    %189 = vector.load %arg17[%c0_84, %c0_85, %c0_86] : memref<2x64x32xf32, #tpu.memory_space<vmem>>, vector<1x64x32xf32>
    %190 = vector.shape_cast %189 : vector<1x64x32xf32> to vector<64x32xf32>
    %cst_87 = arith.constant dense<0.000000e+00> : vector<16x32xf32>
    %191 = tpu.matmul %188, %190, %cst_87 {dimension_numbers = #tpu.dot_dimension_numbers<[1], [0], [0], [1], [0, 0, 1, 1], [], []>} : vector<16x64xf32>, vector<64x32xf32>, vector<16x32xf32> -> vector<16x32xf32>
    %192 = arith.addf %155, %191 : vector<16x32xf32>
    %c0_88 = arith.constant 0 : index
    %c0_89 = arith.constant 0 : index
    %c0_90 = arith.constant 0 : index
    %193 = vector.load %arg18[%c0_88, %c0_89, %c0_90] : memref<2x1x32xf32, #tpu.memory_space<vmem>>, vector<1x1x32xf32>
    %194 = vector.shape_cast %193 : vector<1x1x32xf32> to vector<1x32xf32>
    %195 = vector.broadcast %194 : vector<1x32xf32> to vector<16x32xf32>
    %196 = arith.addf %192, %195 : vector<16x32xf32>
    %c1 = arith.constant 1 : index
    %c0_91 = arith.constant 0 : index
    %c0_92 = arith.constant 0 : index
    %197 = vector.load %arg19[%c1, %c0_91, %c0_92] : memref<2x3x32xf32, #tpu.memory_space<vmem>>, vector<1x3x32xf32>
    %198 = vector.shape_cast %197 : vector<1x3x32xf32> to vector<3x32xf32>
    %c1_93 = arith.constant 1 : index
    %c0_94 = arith.constant 0 : index
    %c0_95 = arith.constant 0 : index
    %199 = vector.load %arg20[%c1_93, %c0_94, %c0_95] : memref<2x3x32xf32, #tpu.memory_space<vmem>>, vector<1x3x32xf32>
    %200 = vector.shape_cast %199 : vector<1x3x32xf32> to vector<3x32xf32>
    %201 = vector.extract_strided_slice %198 {offsets = [0, 0], sizes = [1, 32], strides = [1, 1]} : vector<3x32xf32> to vector<1x32xf32>
    %202 = vector.extract_strided_slice %200 {offsets = [0, 0], sizes = [1, 32], strides = [1, 1]} : vector<3x32xf32> to vector<1x32xf32>
    %cst_96 = arith.constant dense<0.000000e+00> : vector<16xf32>
    %203 = vector.multi_reduction <add>, %196, %cst_96 [1] : vector<16x32xf32> to vector<16xf32>
    %204 = vector.shape_cast %203 : vector<16xf32> to vector<16x1xf32>
    %cst_97 = arith.constant 3.200000e+01 : f32
    %205 = vector.broadcast %cst_97 : f32 to vector<16x1xf32>
    %206 = arith.divf %204, %205 : vector<16x1xf32>
    %207 = vector.broadcast %206 : vector<16x1xf32> to vector<16x32xf32>
    %208 = arith.subf %196, %207 : vector<16x32xf32>
    %209 = arith.mulf %208, %208 : vector<16x32xf32>
    %cst_98 = arith.constant dense<0.000000e+00> : vector<16xf32>
    %210 = vector.multi_reduction <add>, %209, %cst_98 [1] : vector<16x32xf32> to vector<16xf32>
    %211 = vector.shape_cast %210 : vector<16xf32> to vector<16x1xf32>
    %cst_99 = arith.constant 3.200000e+01 : f32
    %212 = vector.broadcast %cst_99 : f32 to vector<16x1xf32>
    %213 = arith.divf %211, %212 : vector<16x1xf32>
    %214 = vector.broadcast %206 : vector<16x1xf32> to vector<16x32xf32>
    %215 = arith.subf %196, %214 : vector<16x32xf32>
    %cst_100 = arith.constant 9.99999974E-6 : f32
    %216 = vector.broadcast %cst_100 : f32 to vector<16x1xf32>
    %217 = arith.addf %213, %216 : vector<16x1xf32>
    %218 = math.rsqrt %217 : vector<16x1xf32>
    %219 = vector.broadcast %218 : vector<16x1xf32> to vector<16x32xf32>
    %220 = arith.mulf %215, %219 : vector<16x32xf32>
    %221 = vector.broadcast %201 : vector<1x32xf32> to vector<16x32xf32>
    %222 = arith.mulf %220, %221 : vector<16x32xf32>
    %223 = vector.broadcast %202 : vector<1x32xf32> to vector<16x32xf32>
    %224 = arith.addf %222, %223 : vector<16x32xf32>
    %c1_101 = arith.constant 1 : index
    %c0_102 = arith.constant 0 : index
    %c0_103 = arith.constant 0 : index
    %225 = vector.load %arg5[%c1_101, %c0_102, %c0_103] : memref<2x32x96xf32, #tpu.memory_space<vmem>>, vector<1x32x96xf32>
    %226 = vector.shape_cast %225 : vector<1x32x96xf32> to vector<32x96xf32>
    %cst_104 = arith.constant dense<0.000000e+00> : vector<16x96xf32>
    %227 = tpu.matmul %224, %226, %cst_104 {dimension_numbers = #tpu.dot_dimension_numbers<[1], [0], [0], [1], [0, 0, 1, 1], [], []>} : vector<16x32xf32>, vector<32x96xf32>, vector<16x96xf32> -> vector<16x96xf32>
    %c1_105 = arith.constant 1 : index
    %c0_106 = arith.constant 0 : index
    %c0_107 = arith.constant 0 : index
    %228 = vector.load %arg6[%c1_105, %c0_106, %c0_107] : memref<2x1x96xf32, #tpu.memory_space<vmem>>, vector<1x1x96xf32>
    %229 = vector.shape_cast %228 : vector<1x1x96xf32> to vector<1x96xf32>
    %230 = vector.broadcast %229 : vector<1x96xf32> to vector<16x96xf32>
    %231 = arith.addf %227, %230 : vector<16x96xf32>
    %232 = vector.shape_cast %231 : vector<16x96xf32> to vector<2x8x96xf32>
    %233 = vector.extract_strided_slice %232 {offsets = [0, 0, 0], sizes = [2, 8, 16], strides = [1, 1, 1]} : vector<2x8x96xf32> to vector<2x8x16xf32>
    %234 = vector.extract_strided_slice %232 {offsets = [0, 0, 16], sizes = [2, 8, 16], strides = [1, 1, 1]} : vector<2x8x96xf32> to vector<2x8x16xf32>
    %235 = tpu.concatenate %233, %234 in 0 : vector<2x8x16xf32>, vector<2x8x16xf32> -> vector<4x8x16xf32>
    %236 = vector.extract_strided_slice %232 {offsets = [0, 0, 32], sizes = [2, 8, 16], strides = [1, 1, 1]} : vector<2x8x96xf32> to vector<2x8x16xf32>
    %237 = vector.extract_strided_slice %232 {offsets = [0, 0, 48], sizes = [2, 8, 16], strides = [1, 1, 1]} : vector<2x8x96xf32> to vector<2x8x16xf32>
    %238 = tpu.concatenate %236, %237 in 0 : vector<2x8x16xf32>, vector<2x8x16xf32> -> vector<4x8x16xf32>
    %239 = vector.extract_strided_slice %232 {offsets = [0, 0, 64], sizes = [2, 8, 16], strides = [1, 1, 1]} : vector<2x8x96xf32> to vector<2x8x16xf32>
    %240 = vector.extract_strided_slice %232 {offsets = [0, 0, 80], sizes = [2, 8, 16], strides = [1, 1, 1]} : vector<2x8x96xf32> to vector<2x8x16xf32>
    %241 = tpu.concatenate %239, %240 in 0 : vector<2x8x16xf32>, vector<2x8x16xf32> -> vector<4x8x16xf32>
    %242 = tpu.concatenate %4, %4 in 0 : vector<2x8x8xf32>, vector<2x8x8xf32> -> vector<4x8x8xf32>
    "tpu.trace_start"() <{level = 10 : i32, message = "btd,bsd->bts"}> : () -> ()
    %cst_108 = arith.constant dense<0.000000e+00> : vector<4x8x8xf32>
    %243 = tpu.matmul %235, %238, %cst_108 {dimension_numbers = #tpu.dot_dimension_numbers<[2], [2], [1], [1], [0, 0, 0, 1, 1, 1], [0], [0]>} : vector<4x8x16xf32>, vector<4x8x16xf32>, vector<4x8x8xf32> -> vector<4x8x8xf32>
    "tpu.trace_stop"() : () -> ()
    %cst_109 = arith.constant 2.500000e-01 : f32
    %244 = vector.broadcast %cst_109 : f32 to vector<4x8x8xf32>
    %245 = arith.mulf %243, %244 : vector<4x8x8xf32>
    %246 = arith.addf %245, %242 : vector<4x8x8xf32>
    %cst_110 = arith.constant dense<0xFF800000> : vector<4x8xf32>
    %247 = vector.multi_reduction <maximumf>, %246, %cst_110 [2] : vector<4x8x8xf32> to vector<4x8xf32>
    %248 = vector.shape_cast %247 : vector<4x8xf32> to vector<4x8x1xf32>
    %249 = vector.broadcast %248 : vector<4x8x1xf32> to vector<4x8x8xf32>
    %250 = arith.subf %246, %249 : vector<4x8x8xf32>
    %251 = math.exp %250 : vector<4x8x8xf32>
    %cst_111 = arith.constant dense<0.000000e+00> : vector<4x8xf32>
    %252 = vector.multi_reduction <add>, %251, %cst_111 [2] : vector<4x8x8xf32> to vector<4x8xf32>
    %253 = vector.shape_cast %252 : vector<4x8xf32> to vector<4x8x1xf32>
    %254 = tpu.reciprocal %253 {approx = true} : vector<4x8x1xf32> -> vector<4x8x1xf32>
    %255 = vector.broadcast %254 : vector<4x8x1xf32> to vector<4x8x8xf32>
    %256 = arith.mulf %251, %255 : vector<4x8x8xf32>
    "tpu.trace_start"() <{level = 10 : i32, message = "bts,bsd->btd"}> : () -> ()
    %cst_112 = arith.constant dense<0.000000e+00> : vector<4x8x16xf32>
    %257 = tpu.matmul %256, %241, %cst_112 {dimension_numbers = #tpu.dot_dimension_numbers<[2], [1], [1], [2], [0, 0, 0, 1, 1, 2], [0], [0]>} : vector<4x8x8xf32>, vector<4x8x16xf32>, vector<4x8x16xf32> -> vector<4x8x16xf32>
    "tpu.trace_stop"() : () -> ()
    %258 = vector.extract_strided_slice %257 {offsets = [0, 0, 0], sizes = [2, 8, 16], strides = [1, 1, 1]} : vector<4x8x16xf32> to vector<2x8x16xf32>
    %259 = vector.extract_strided_slice %257 {offsets = [2, 0, 0], sizes = [2, 8, 16], strides = [1, 1, 1]} : vector<4x8x16xf32> to vector<2x8x16xf32>
    %260 = tpu.concatenate %258, %259 in 2 : vector<2x8x16xf32>, vector<2x8x16xf32> -> vector<2x8x32xf32>
    %261 = vector.shape_cast %260 : vector<2x8x32xf32> to vector<16x32xf32>
    %c1_113 = arith.constant 1 : index
    %c0_114 = arith.constant 0 : index
    %c0_115 = arith.constant 0 : index
    %262 = vector.load %arg7[%c1_113, %c0_114, %c0_115] : memref<2x32x32xf32, #tpu.memory_space<vmem>>, vector<1x32x32xf32>
    %263 = vector.shape_cast %262 : vector<1x32x32xf32> to vector<32x32xf32>
    %cst_116 = arith.constant dense<0.000000e+00> : vector<16x32xf32>
    %264 = tpu.matmul %261, %263, %cst_116 {dimension_numbers = #tpu.dot_dimension_numbers<[1], [0], [0], [1], [0, 0, 1, 1], [], []>} : vector<16x32xf32>, vector<32x32xf32>, vector<16x32xf32> -> vector<16x32xf32>
    %265 = arith.addf %196, %264 : vector<16x32xf32>
    %c1_117 = arith.constant 1 : index
    %c0_118 = arith.constant 0 : index
    %c0_119 = arith.constant 0 : index
    %266 = vector.load %arg8[%c1_117, %c0_118, %c0_119] : memref<2x1x32xf32, #tpu.memory_space<vmem>>, vector<1x1x32xf32>
    %267 = vector.shape_cast %266 : vector<1x1x32xf32> to vector<1x32xf32>
    %268 = vector.broadcast %267 : vector<1x32xf32> to vector<16x32xf32>
    %269 = arith.addf %265, %268 : vector<16x32xf32>
    %270 = vector.extract_strided_slice %198 {offsets = [1, 0], sizes = [1, 32], strides = [1, 1]} : vector<3x32xf32> to vector<1x32xf32>
    %271 = vector.extract_strided_slice %200 {offsets = [1, 0], sizes = [1, 32], strides = [1, 1]} : vector<3x32xf32> to vector<1x32xf32>
    %cst_120 = arith.constant dense<0.000000e+00> : vector<16xf32>
    %272 = vector.multi_reduction <add>, %269, %cst_120 [1] : vector<16x32xf32> to vector<16xf32>
    %273 = vector.shape_cast %272 : vector<16xf32> to vector<16x1xf32>
    %cst_121 = arith.constant 3.200000e+01 : f32
    %274 = vector.broadcast %cst_121 : f32 to vector<16x1xf32>
    %275 = arith.divf %273, %274 : vector<16x1xf32>
    %276 = vector.broadcast %275 : vector<16x1xf32> to vector<16x32xf32>
    %277 = arith.subf %269, %276 : vector<16x32xf32>
    %278 = arith.mulf %277, %277 : vector<16x32xf32>
    %cst_122 = arith.constant dense<0.000000e+00> : vector<16xf32>
    %279 = vector.multi_reduction <add>, %278, %cst_122 [1] : vector<16x32xf32> to vector<16xf32>
    %280 = vector.shape_cast %279 : vector<16xf32> to vector<16x1xf32>
    %cst_123 = arith.constant 3.200000e+01 : f32
    %281 = vector.broadcast %cst_123 : f32 to vector<16x1xf32>
    %282 = arith.divf %280, %281 : vector<16x1xf32>
    %283 = vector.broadcast %275 : vector<16x1xf32> to vector<16x32xf32>
    %284 = arith.subf %269, %283 : vector<16x32xf32>
    %cst_124 = arith.constant 9.99999974E-6 : f32
    %285 = vector.broadcast %cst_124 : f32 to vector<16x1xf32>
    %286 = arith.addf %282, %285 : vector<16x1xf32>
    %287 = math.rsqrt %286 : vector<16x1xf32>
    %288 = vector.broadcast %287 : vector<16x1xf32> to vector<16x32xf32>
    %289 = arith.mulf %284, %288 : vector<16x32xf32>
    %290 = vector.broadcast %270 : vector<1x32xf32> to vector<16x32xf32>
    %291 = arith.mulf %289, %290 : vector<16x32xf32>
    %292 = vector.broadcast %271 : vector<1x32xf32> to vector<16x32xf32>
    %293 = arith.addf %291, %292 : vector<16x32xf32>
    %c1_125 = arith.constant 1 : index
    %c0_126 = arith.constant 0 : index
    %c0_127 = arith.constant 0 : index
    %294 = vector.load %arg9[%c1_125, %c0_126, %c0_127] : memref<2x32x32xf32, #tpu.memory_space<vmem>>, vector<1x32x32xf32>
    %295 = vector.shape_cast %294 : vector<1x32x32xf32> to vector<32x32xf32>
    %cst_128 = arith.constant dense<0.000000e+00> : vector<16x32xf32>
    %296 = tpu.matmul %293, %295, %cst_128 {dimension_numbers = #tpu.dot_dimension_numbers<[1], [0], [0], [1], [0, 0, 1, 1], [], []>} : vector<16x32xf32>, vector<32x32xf32>, vector<16x32xf32> -> vector<16x32xf32>
    %c1_129 = arith.constant 1 : index
    %c0_130 = arith.constant 0 : index
    %c0_131 = arith.constant 0 : index
    %297 = vector.load %arg10[%c1_129, %c0_130, %c0_131] : memref<2x1x32xf32, #tpu.memory_space<vmem>>, vector<1x1x32xf32>
    %298 = vector.shape_cast %297 : vector<1x1x32xf32> to vector<1x32xf32>
    %299 = vector.broadcast %298 : vector<1x32xf32> to vector<16x32xf32>
    %300 = arith.addf %296, %299 : vector<16x32xf32>
    %301 = vector.shape_cast %300 : vector<16x32xf32> to vector<2x8x32xf32>
    %c1_132 = arith.constant 1 : index
    %c0_133 = arith.constant 0 : index
    %c0_134 = arith.constant 0 : index
    %302 = vector.load %arg11[%c1_132, %c0_133, %c0_134] : memref<2x32x64xf32, #tpu.memory_space<vmem>>, vector<1x32x64xf32>
    %303 = vector.shape_cast %302 : vector<1x32x64xf32> to vector<32x64xf32>
    %cst_135 = arith.constant dense<0.000000e+00> : vector<16x64xf32>
    %304 = tpu.matmul %3, %303, %cst_135 {dimension_numbers = #tpu.dot_dimension_numbers<[1], [0], [0], [1], [0, 0, 1, 1], [], []>} : vector<16x32xf32>, vector<32x64xf32>, vector<16x64xf32> -> vector<16x64xf32>
    %c1_136 = arith.constant 1 : index
    %c0_137 = arith.constant 0 : index
    %c0_138 = arith.constant 0 : index
    %305 = vector.load %arg12[%c1_136, %c0_137, %c0_138] : memref<2x1x64xf32, #tpu.memory_space<vmem>>, vector<1x1x64xf32>
    %306 = vector.shape_cast %305 : vector<1x1x64xf32> to vector<1x64xf32>
    %307 = vector.broadcast %306 : vector<1x64xf32> to vector<16x64xf32>
    %308 = arith.addf %304, %307 : vector<16x64xf32>
    %309 = vector.shape_cast %308 : vector<16x64xf32> to vector<2x8x64xf32>
    %310 = vector.extract_strided_slice %301 {offsets = [0, 0, 0], sizes = [2, 8, 16], strides = [1, 1, 1]} : vector<2x8x32xf32> to vector<2x8x16xf32>
    %311 = vector.extract_strided_slice %301 {offsets = [0, 0, 16], sizes = [2, 8, 16], strides = [1, 1, 1]} : vector<2x8x32xf32> to vector<2x8x16xf32>
    %312 = tpu.concatenate %310, %311 in 0 : vector<2x8x16xf32>, vector<2x8x16xf32> -> vector<4x8x16xf32>
    %313 = vector.extract_strided_slice %309 {offsets = [0, 0, 0], sizes = [2, 8, 16], strides = [1, 1, 1]} : vector<2x8x64xf32> to vector<2x8x16xf32>
    %314 = vector.extract_strided_slice %309 {offsets = [0, 0, 16], sizes = [2, 8, 16], strides = [1, 1, 1]} : vector<2x8x64xf32> to vector<2x8x16xf32>
    %315 = tpu.concatenate %313, %314 in 0 : vector<2x8x16xf32>, vector<2x8x16xf32> -> vector<4x8x16xf32>
    %316 = vector.extract_strided_slice %309 {offsets = [0, 0, 32], sizes = [2, 8, 16], strides = [1, 1, 1]} : vector<2x8x64xf32> to vector<2x8x16xf32>
    %317 = vector.extract_strided_slice %309 {offsets = [0, 0, 48], sizes = [2, 8, 16], strides = [1, 1, 1]} : vector<2x8x64xf32> to vector<2x8x16xf32>
    %318 = tpu.concatenate %316, %317 in 0 : vector<2x8x16xf32>, vector<2x8x16xf32> -> vector<4x8x16xf32>
    %319 = tpu.concatenate %5, %5 in 0 : vector<2x8x8xf32>, vector<2x8x8xf32> -> vector<4x8x8xf32>
    "tpu.trace_start"() <{level = 10 : i32, message = "btd,bsd->bts"}> : () -> ()
    %cst_139 = arith.constant dense<0.000000e+00> : vector<4x8x8xf32>
    %320 = tpu.matmul %312, %315, %cst_139 {dimension_numbers = #tpu.dot_dimension_numbers<[2], [2], [1], [1], [0, 0, 0, 1, 1, 1], [0], [0]>} : vector<4x8x16xf32>, vector<4x8x16xf32>, vector<4x8x8xf32> -> vector<4x8x8xf32>
    "tpu.trace_stop"() : () -> ()
    %cst_140 = arith.constant 2.500000e-01 : f32
    %321 = vector.broadcast %cst_140 : f32 to vector<4x8x8xf32>
    %322 = arith.mulf %320, %321 : vector<4x8x8xf32>
    %323 = arith.addf %322, %319 : vector<4x8x8xf32>
    %cst_141 = arith.constant dense<0xFF800000> : vector<4x8xf32>
    %324 = vector.multi_reduction <maximumf>, %323, %cst_141 [2] : vector<4x8x8xf32> to vector<4x8xf32>
    %325 = vector.shape_cast %324 : vector<4x8xf32> to vector<4x8x1xf32>
    %326 = vector.broadcast %325 : vector<4x8x1xf32> to vector<4x8x8xf32>
    %327 = arith.subf %323, %326 : vector<4x8x8xf32>
    %328 = math.exp %327 : vector<4x8x8xf32>
    %cst_142 = arith.constant dense<0.000000e+00> : vector<4x8xf32>
    %329 = vector.multi_reduction <add>, %328, %cst_142 [2] : vector<4x8x8xf32> to vector<4x8xf32>
    %330 = vector.shape_cast %329 : vector<4x8xf32> to vector<4x8x1xf32>
    %331 = tpu.reciprocal %330 {approx = true} : vector<4x8x1xf32> -> vector<4x8x1xf32>
    %332 = vector.broadcast %331 : vector<4x8x1xf32> to vector<4x8x8xf32>
    %333 = arith.mulf %328, %332 : vector<4x8x8xf32>
    "tpu.trace_start"() <{level = 10 : i32, message = "bts,bsd->btd"}> : () -> ()
    %cst_143 = arith.constant dense<0.000000e+00> : vector<4x8x16xf32>
    %334 = tpu.matmul %333, %318, %cst_143 {dimension_numbers = #tpu.dot_dimension_numbers<[2], [1], [1], [2], [0, 0, 0, 1, 1, 2], [0], [0]>} : vector<4x8x8xf32>, vector<4x8x16xf32>, vector<4x8x16xf32> -> vector<4x8x16xf32>
    "tpu.trace_stop"() : () -> ()
    %335 = vector.extract_strided_slice %334 {offsets = [0, 0, 0], sizes = [2, 8, 16], strides = [1, 1, 1]} : vector<4x8x16xf32> to vector<2x8x16xf32>
    %336 = vector.extract_strided_slice %334 {offsets = [2, 0, 0], sizes = [2, 8, 16], strides = [1, 1, 1]} : vector<4x8x16xf32> to vector<2x8x16xf32>
    %337 = tpu.concatenate %335, %336 in 2 : vector<2x8x16xf32>, vector<2x8x16xf32> -> vector<2x8x32xf32>
    %338 = vector.shape_cast %337 : vector<2x8x32xf32> to vector<16x32xf32>
    %c1_144 = arith.constant 1 : index
    %c0_145 = arith.constant 0 : index
    %c0_146 = arith.constant 0 : index
    %339 = vector.load %arg13[%c1_144, %c0_145, %c0_146] : memref<2x32x32xf32, #tpu.memory_space<vmem>>, vector<1x32x32xf32>
    %340 = vector.shape_cast %339 : vector<1x32x32xf32> to vector<32x32xf32>
    %cst_147 = arith.constant dense<0.000000e+00> : vector<16x32xf32>
    %341 = tpu.matmul %338, %340, %cst_147 {dimension_numbers = #tpu.dot_dimension_numbers<[1], [0], [0], [1], [0, 0, 1, 1], [], []>} : vector<16x32xf32>, vector<32x32xf32>, vector<16x32xf32> -> vector<16x32xf32>
    %342 = arith.addf %269, %341 : vector<16x32xf32>
    %c1_148 = arith.constant 1 : index
    %c0_149 = arith.constant 0 : index
    %c0_150 = arith.constant 0 : index
    %343 = vector.load %arg14[%c1_148, %c0_149, %c0_150] : memref<2x1x32xf32, #tpu.memory_space<vmem>>, vector<1x1x32xf32>
    %344 = vector.shape_cast %343 : vector<1x1x32xf32> to vector<1x32xf32>
    %345 = vector.broadcast %344 : vector<1x32xf32> to vector<16x32xf32>
    %346 = arith.addf %342, %345 : vector<16x32xf32>
    %347 = vector.extract_strided_slice %198 {offsets = [2, 0], sizes = [1, 32], strides = [1, 1]} : vector<3x32xf32> to vector<1x32xf32>
    %348 = vector.extract_strided_slice %200 {offsets = [2, 0], sizes = [1, 32], strides = [1, 1]} : vector<3x32xf32> to vector<1x32xf32>
    %cst_151 = arith.constant dense<0.000000e+00> : vector<16xf32>
    %349 = vector.multi_reduction <add>, %346, %cst_151 [1] : vector<16x32xf32> to vector<16xf32>
    %350 = vector.shape_cast %349 : vector<16xf32> to vector<16x1xf32>
    %cst_152 = arith.constant 3.200000e+01 : f32
    %351 = vector.broadcast %cst_152 : f32 to vector<16x1xf32>
    %352 = arith.divf %350, %351 : vector<16x1xf32>
    %353 = vector.broadcast %352 : vector<16x1xf32> to vector<16x32xf32>
    %354 = arith.subf %346, %353 : vector<16x32xf32>
    %355 = arith.mulf %354, %354 : vector<16x32xf32>
    %cst_153 = arith.constant dense<0.000000e+00> : vector<16xf32>
    %356 = vector.multi_reduction <add>, %355, %cst_153 [1] : vector<16x32xf32> to vector<16xf32>
    %357 = vector.shape_cast %356 : vector<16xf32> to vector<16x1xf32>
    %cst_154 = arith.constant 3.200000e+01 : f32
    %358 = vector.broadcast %cst_154 : f32 to vector<16x1xf32>
    %359 = arith.divf %357, %358 : vector<16x1xf32>
    %360 = vector.broadcast %352 : vector<16x1xf32> to vector<16x32xf32>
    %361 = arith.subf %346, %360 : vector<16x32xf32>
    %cst_155 = arith.constant 9.99999974E-6 : f32
    %362 = vector.broadcast %cst_155 : f32 to vector<16x1xf32>
    %363 = arith.addf %359, %362 : vector<16x1xf32>
    %364 = math.rsqrt %363 : vector<16x1xf32>
    %365 = vector.broadcast %364 : vector<16x1xf32> to vector<16x32xf32>
    %366 = arith.mulf %361, %365 : vector<16x32xf32>
    %367 = vector.broadcast %347 : vector<1x32xf32> to vector<16x32xf32>
    %368 = arith.mulf %366, %367 : vector<16x32xf32>
    %369 = vector.broadcast %348 : vector<1x32xf32> to vector<16x32xf32>
    %370 = arith.addf %368, %369 : vector<16x32xf32>
    %c1_156 = arith.constant 1 : index
    %c0_157 = arith.constant 0 : index
    %c0_158 = arith.constant 0 : index
    %371 = vector.load %arg15[%c1_156, %c0_157, %c0_158] : memref<2x32x64xf32, #tpu.memory_space<vmem>>, vector<1x32x64xf32>
    %372 = vector.shape_cast %371 : vector<1x32x64xf32> to vector<32x64xf32>
    %cst_159 = arith.constant dense<0.000000e+00> : vector<16x64xf32>
    %373 = tpu.matmul %370, %372, %cst_159 {dimension_numbers = #tpu.dot_dimension_numbers<[1], [0], [0], [1], [0, 0, 1, 1], [], []>} : vector<16x32xf32>, vector<32x64xf32>, vector<16x64xf32> -> vector<16x64xf32>
    %c1_160 = arith.constant 1 : index
    %c0_161 = arith.constant 0 : index
    %c0_162 = arith.constant 0 : index
    %374 = vector.load %arg16[%c1_160, %c0_161, %c0_162] : memref<2x1x64xf32, #tpu.memory_space<vmem>>, vector<1x1x64xf32>
    %375 = vector.shape_cast %374 : vector<1x1x64xf32> to vector<1x64xf32>
    %376 = vector.broadcast %375 : vector<1x64xf32> to vector<16x64xf32>
    %377 = arith.addf %373, %376 : vector<16x64xf32>
    %cst_163 = arith.constant 0.000000e+00 : f32
    %378 = vector.broadcast %cst_163 : f32 to vector<16x64xf32>
    %379 = arith.maximumf %377, %378 : vector<16x64xf32>
    %c1_164 = arith.constant 1 : index
    %c0_165 = arith.constant 0 : index
    %c0_166 = arith.constant 0 : index
    %380 = vector.load %arg17[%c1_164, %c0_165, %c0_166] : memref<2x64x32xf32, #tpu.memory_space<vmem>>, vector<1x64x32xf32>
    %381 = vector.shape_cast %380 : vector<1x64x32xf32> to vector<64x32xf32>
    %cst_167 = arith.constant dense<0.000000e+00> : vector<16x32xf32>
    %382 = tpu.matmul %379, %381, %cst_167 {dimension_numbers = #tpu.dot_dimension_numbers<[1], [0], [0], [1], [0, 0, 1, 1], [], []>} : vector<16x64xf32>, vector<64x32xf32>, vector<16x32xf32> -> vector<16x32xf32>
    %383 = arith.addf %346, %382 : vector<16x32xf32>
    %c1_168 = arith.constant 1 : index
    %c0_169 = arith.constant 0 : index
    %c0_170 = arith.constant 0 : index
    %384 = vector.load %arg18[%c1_168, %c0_169, %c0_170] : memref<2x1x32xf32, #tpu.memory_space<vmem>>, vector<1x1x32xf32>
    %385 = vector.shape_cast %384 : vector<1x1x32xf32> to vector<1x32xf32>
    %386 = vector.broadcast %385 : vector<1x32xf32> to vector<16x32xf32>
    %387 = arith.addf %383, %386 : vector<16x32xf32>
    %c0_171 = arith.constant 0 : index
    %c0_172 = arith.constant 0 : index
    %388 = vector.load %arg21[%c0_171, %c0_172] : memref<1x32xf32, #tpu.memory_space<vmem>>, vector<1x32xf32>
    %c0_173 = arith.constant 0 : index
    %c0_174 = arith.constant 0 : index
    %389 = vector.load %arg22[%c0_173, %c0_174] : memref<1x32xf32, #tpu.memory_space<vmem>>, vector<1x32xf32>
    %cst_175 = arith.constant dense<0.000000e+00> : vector<16xf32>
    %390 = vector.multi_reduction <add>, %387, %cst_175 [1] : vector<16x32xf32> to vector<16xf32>
    %391 = vector.shape_cast %390 : vector<16xf32> to vector<16x1xf32>
    %cst_176 = arith.constant 3.200000e+01 : f32
    %392 = vector.broadcast %cst_176 : f32 to vector<16x1xf32>
    %393 = arith.divf %391, %392 : vector<16x1xf32>
    %394 = vector.broadcast %393 : vector<16x1xf32> to vector<16x32xf32>
    %395 = arith.subf %387, %394 : vector<16x32xf32>
    %396 = arith.mulf %395, %395 : vector<16x32xf32>
    %cst_177 = arith.constant dense<0.000000e+00> : vector<16xf32>
    %397 = vector.multi_reduction <add>, %396, %cst_177 [1] : vector<16x32xf32> to vector<16xf32>
    %398 = vector.shape_cast %397 : vector<16xf32> to vector<16x1xf32>
    %cst_178 = arith.constant 3.200000e+01 : f32
    %399 = vector.broadcast %cst_178 : f32 to vector<16x1xf32>
    %400 = arith.divf %398, %399 : vector<16x1xf32>
    %401 = vector.broadcast %393 : vector<16x1xf32> to vector<16x32xf32>
    %402 = arith.subf %387, %401 : vector<16x32xf32>
    %cst_179 = arith.constant 9.99999974E-6 : f32
    %403 = vector.broadcast %cst_179 : f32 to vector<16x1xf32>
    %404 = arith.addf %400, %403 : vector<16x1xf32>
    %405 = math.rsqrt %404 : vector<16x1xf32>
    %406 = vector.broadcast %405 : vector<16x1xf32> to vector<16x32xf32>
    %407 = arith.mulf %402, %406 : vector<16x32xf32>
    %408 = vector.broadcast %388 : vector<1x32xf32> to vector<16x32xf32>
    %409 = arith.mulf %407, %408 : vector<16x32xf32>
    %410 = vector.broadcast %389 : vector<1x32xf32> to vector<16x32xf32>
    %411 = arith.addf %409, %410 : vector<16x32xf32>
    %412 = vector.shape_cast %411 : vector<16x32xf32> to vector<2x8x32xf32>
    %c0_180 = arith.constant 0 : index
    %c0_181 = arith.constant 0 : index
    %c0_182 = arith.constant 0 : index
    %413 = vector.load %arg23[%c0_180, %c0_181, %c0_182] : memref<2x8x32xf32, #tpu.memory_space<vmem>>, vector<2x8x32xf32>
    tpu.vector_store %arg23[%c0_180, %c0_181, %c0_182], %412 {strides = array<i32>} : memref<2x8x32xf32, #tpu.memory_space<vmem>>, vector<2x8x32xf32>,
    return
  }
  func.func @transform_0(%arg0: i32) -> (i32, i32, i32) {
    %c0_i32 = arith.constant 0 : i32
    %c0_i32_0 = arith.constant 0 : i32
    %c0_i32_1 = arith.constant 0 : i32
    return %arg0, %c0_i32, %c0_i32_0 : i32, i32, i32
  }
  func.func @transform_1(%arg0: i32) -> (i32, i32, i32) {
    %c0_i32 = arith.constant 0 : i32
    %c0_i32_0 = arith.constant 0 : i32
    %c0_i32_1 = arith.constant 0 : i32
    return %arg0, %c0_i32, %c0_i32_0 : i32, i32, i32
  }
  func.func @transform_2(%arg0: i32) -> (i32, i32, i32) {
    %c0_i32 = arith.constant 0 : i32
    %c0_i32_0 = arith.constant 0 : i32
    %c0_i32_1 = arith.constant 0 : i32
    return %arg0, %c0_i32, %c0_i32_0 : i32, i32, i32
  }
  func.func @transform_3(%arg0: i32) -> (i32, i32, i32) {
    %c0_i32 = arith.constant 0 : i32
    %c0_i32_0 = arith.constant 0 : i32
    %c0_i32_1 = arith.constant 0 : i32
    return %arg0, %c0_i32, %c0_i32_0 : i32, i32, i32
  }
  func.func @transform_4(%arg0: i32) -> (i32, i32, i32) {
    %c0_i32 = arith.constant 0 : i32
    %c0_i32_0 = arith.constant 0 : i32
    %c0_i32_1 = arith.constant 0 : i32
    %c0_i32_2 = arith.constant 0 : i32
    return %c0_i32, %c0_i32_0, %c0_i32_1 : i32, i32, i32
  }
  func.func @transform_5(%arg0: i32) -> (i32, i32, i32) {
    %c0_i32 = arith.constant 0 : i32
    %c0_i32_0 = arith.constant 0 : i32
    %c0_i32_1 = arith.constant 0 : i32
    %c0_i32_2 = arith.constant 0 : i32
    return %c0_i32, %c0_i32_0, %c0_i32_1 : i32, i32, i32
  }
  func.func @transform_6(%arg0: i32) -> (i32, i32, i32) {
    %c0_i32 = arith.constant 0 : i32
    %c0_i32_0 = arith.constant 0 : i32
    %c0_i32_1 = arith.constant 0 : i32
    %c0_i32_2 = arith.constant 0 : i32
    return %c0_i32, %c0_i32_0, %c0_i32_1 : i32, i32, i32
  }
  func.func @transform_7(%arg0: i32) -> (i32, i32, i32) {
    %c0_i32 = arith.constant 0 : i32
    %c0_i32_0 = arith.constant 0 : i32
    %c0_i32_1 = arith.constant 0 : i32
    %c0_i32_2 = arith.constant 0 : i32
    return %c0_i32, %c0_i32_0, %c0_i32_1 : i32, i32, i32
  }
  func.func @transform_8(%arg0: i32) -> (i32, i32, i32) {
    %c0_i32 = arith.constant 0 : i32
    %c0_i32_0 = arith.constant 0 : i32
    %c0_i32_1 = arith.constant 0 : i32
    %c0_i32_2 = arith.constant 0 : i32
    return %c0_i32, %c0_i32_0, %c0_i32_1 : i32, i32, i32
  }
  func.func @transform_9(%arg0: i32) -> (i32, i32, i32) {
    %c0_i32 = arith.constant 0 : i32
    %c0_i32_0 = arith.constant 0 : i32
    %c0_i32_1 = arith.constant 0 : i32
    %c0_i32_2 = arith.constant 0 : i32
    return %c0_i32, %c0_i32_0, %c0_i32_1 : i32, i32, i32
  }
  func.func @transform_10(%arg0: i32) -> (i32, i32, i32) {
    %c0_i32 = arith.constant 0 : i32
    %c0_i32_0 = arith.constant 0 : i32
    %c0_i32_1 = arith.constant 0 : i32
    %c0_i32_2 = arith.constant 0 : i32
    return %c0_i32, %c0_i32_0, %c0_i32_1 : i32, i32, i32
  }
  func.func @transform_11(%arg0: i32) -> (i32, i32, i32) {
    %c0_i32 = arith.constant 0 : i32
    %c0_i32_0 = arith.constant 0 : i32
    %c0_i32_1 = arith.constant 0 : i32
    %c0_i32_2 = arith.constant 0 : i32
    return %c0_i32, %c0_i32_0, %c0_i32_1 : i32, i32, i32
  }
  func.func @transform_12(%arg0: i32) -> (i32, i32, i32) {
    %c0_i32 = arith.constant 0 : i32
    %c0_i32_0 = arith.constant 0 : i32
    %c0_i32_1 = arith.constant 0 : i32
    %c0_i32_2 = arith.constant 0 : i32
    return %c0_i32, %c0_i32_0, %c0_i32_1 : i32, i32, i32
  }
  func.func @transform_13(%arg0: i32) -> (i32, i32, i32) {
    %c0_i32 = arith.constant 0 : i32
    %c0_i32_0 = arith.constant 0 : i32
    %c0_i32_1 = arith.constant 0 : i32
    %c0_i32_2 = arith.constant 0 : i32
    return %c0_i32, %c0_i32_0, %c0_i32_1 : i32, i32, i32
  }
  func.func @transform_14(%arg0: i32) -> (i32, i32, i32) {
    %c0_i32 = arith.constant 0 : i32
    %c0_i32_0 = arith.constant 0 : i32
    %c0_i32_1 = arith.constant 0 : i32
    %c0_i32_2 = arith.constant 0 : i32
    return %c0_i32, %c0_i32_0, %c0_i32_1 : i32, i32, i32
  }
  func.func @transform_15(%arg0: i32) -> (i32, i32, i32) {
    %c0_i32 = arith.constant 0 : i32
    %c0_i32_0 = arith.constant 0 : i32
    %c0_i32_1 = arith.constant 0 : i32
    %c0_i32_2 = arith.constant 0 : i32
    return %c0_i32, %c0_i32_0, %c0_i32_1 : i32, i32, i32
  }
  func.func @transform_16(%arg0: i32) -> (i32, i32, i32) {
    %c0_i32 = arith.constant 0 : i32
    %c0_i32_0 = arith.constant 0 : i32
    %c0_i32_1 = arith.constant 0 : i32
    %c0_i32_2 = arith.constant 0 : i32
    return %c0_i32, %c0_i32_0, %c0_i32_1 : i32, i32, i32
  }
  func.func @transform_17(%arg0: i32) -> (i32, i32, i32) {
    %c0_i32 = arith.constant 0 : i32
    %c0_i32_0 = arith.constant 0 : i32
    %c0_i32_1 = arith.constant 0 : i32
    %c0_i32_2 = arith.constant 0 : i32
    return %c0_i32, %c0_i32_0, %c0_i32_1 : i32, i32, i32
  }
  func.func @transform_18(%arg0: i32) -> (i32, i32, i32) {
    %c0_i32 = arith.constant 0 : i32
    %c0_i32_0 = arith.constant 0 : i32
    %c0_i32_1 = arith.constant 0 : i32
    %c0_i32_2 = arith.constant 0 : i32
    return %c0_i32, %c0_i32_0, %c0_i32_1 : i32, i32, i32
  }
  func.func @transform_19(%arg0: i32) -> (i32, i32, i32) {
    %c0_i32 = arith.constant 0 : i32
    %c0_i32_0 = arith.constant 0 : i32
    %c0_i32_1 = arith.constant 0 : i32
    %c0_i32_2 = arith.constant 0 : i32
    return %c0_i32, %c0_i32_0, %c0_i32_1 : i32, i32, i32
  }
  func.func @transform_20(%arg0: i32) -> (i32, i32) {
    %c0_i32 = arith.constant 0 : i32
    %c0_i32_0 = arith.constant 0 : i32
    %c0_i32_1 = arith.constant 0 : i32
    return %c0_i32, %c0_i32_0 : i32, i32
  }
  func.func @transform_21(%arg0: i32) -> (i32, i32) {
    %c0_i32 = arith.constant 0 : i32
    %c0_i32_0 = arith.constant 0 : i32
    %c0_i32_1 = arith.constant 0 : i32
    return %c0_i32, %c0_i32_0 : i32, i32
  }
  func.func @transform_22(%arg0: i32) -> (i32, i32, i32) {
    %c0_i32 = arith.constant 0 : i32
    %c0_i32_0 = arith.constant 0 : i32
    %c0_i32_1 = arith.constant 0 : i32
    return %arg0, %c0_i32, %c0_i32_0 : i32, i32, i32
  }
}

</mosaic_0001>

<bundles_post_ra>
// kernel: decoder_forward.1
= control target key start
LH: loop header
LB: loop body
LE: loop exit
PB: predicated region body
PF: predicated region fallthrough
CT: control target
= control target key end

     0   :  { %s6468_s0 = inlined_call_operand.hbm [shape: f32[2,8,32], index: 0, kind: input, shape index: {}]   ;;  %s6469_s1 = inlined_call_operand.hbm [shape: f32[2,8,32], index: 1, kind: input, shape index: {}]   ;;  %s6470_s2 = inlined_call_operand.vmem [shape: f32[2,8,8], index: 2, kind: input, shape index: {}]   ;;  %s6471_s3 = inlined_call_operand.vmem [shape: f32[2,8,8], index: 3, kind: input, shape index: {}]   ;;  %s6472_s4 = inlined_call_operand.vmem [shape: f32[2,32,96], index: 4, kind: input, shape index: {}]   ;;  %s6473_s5 = inlined_call_operand.hbm [shape: f32[2,1,96], index: 5, kind: input, shape index: {}]   ;;  %s6474_s6 = inlined_call_operand.vmem [shape: f32[2,32,32], index: 6, kind: input, shape index: {}]   ;;  %s6475_s7 = inlined_call_operand.hbm [shape: f32[2,1,32], index: 7, kind: input, shape index: {}]   ;;  %s6476_s8 = inlined_call_operand.vmem [shape: f32[2,32,32], index: 8, kind: input, shape index: {}]   ;;  %s6477_s9 = inlined_call_operand.hbm [shape: f32[2,1,32], index: 9, kind: input, shape index: {}]   ;;  %s6478_s10 = inlined_call_operand.vmem [shape: f32[2,32,64], index: 10, kind: input, shape index: {}]   ;;  %s6479_s11 = inlined_call_operand.hbm [shape: f32[2,1,64], index: 11, kind: input, shape index: {}]   ;;  %s6480_s12 = inlined_call_operand.vmem [shape: f32[2,32,32], index: 12, kind: input, shape index: {}]   ;;  %s6481_s13 = inlined_call_operand.hbm [shape: f32[2,1,32], index: 13, kind: input, shape index: {}]   ;;  %s6482_s14 = inlined_call_operand.hbm [shape: f32[2,32,64], index: 14, kind: input, shape index: {}]   ;;  %s6483_s15 = inlined_call_operand.hbm [shape: f32[2,1,64], index: 15, kind: input, shape index: {}]   ;;  %s6484_s16 = inlined_call_operand.vmem [shape: f32[2,64,32], index: 16, kind: input, shape index: {}]   ;;  %s6485_s17 = inlined_call_operand.hbm [shape: f32[2,1,32], index: 17, kind: input, shape index: {}]   ;;  %s6486_s18 = inlined_call_operand.vmem [shape: f32[2,3,32], index: 18, kind: input, shape index: {}]   ;;  %s6487_s19 = inlined_call_operand.vmem [shape: f32[2,3,32], index: 19, kind: input, shape index: {}]   ;;  %s6488_s20 = inlined_call_operand.hbm [shape: f32[1,32], index: 20, kind: input, shape index: {}]   ;;  %s6489_s21 = inlined_call_operand.hbm [shape: f32[1,32], index: 21, kind: input, shape index: {}]   ;;  %s6490_s22 = inlined_call_operand.hbm [shape: f32[2,8,32], index: 22, kind: output, shape index: {}]  }
   0x1   :  { %6495 = sst [smem:[#allocation31_spill]] %s6468_s0 }
   0x2   :  { %6496 = sst [smem:[#allocation32_spill]] %s6469_s1 }
   0x3   :  { %6497 = sst [smem:[#allocation33_spill]] %s6470_s2 }
   0x4   :  { %6498 = sst [smem:[#allocation34_spill]] %s6471_s3 }
   0x5   :  { %6499 = sst [smem:[#allocation35_spill]] %s6472_s4 }
   0x6   :  { %6500 = sst [smem:[#allocation36_spill]] %s6473_s5 }
   0x7   :  { %6501 = sst [smem:[#allocation37_spill]] %s6474_s6 }
   0x8   :  { %27 = vsyncpa [#allocation3], 0 }
   0x9   :  { %28 = vsyncpa [#allocation6], 0 }
   0xa   :  { %29 = vsyncpa [#allocation9], 0 }
   0xb   :  { %30 = vsyncpa [#allocation12], 0 }
   0xc   :  { %31 = vsyncpa [#allocation15], 0 }
   0xd   :  { %32 = vsyncpa [#allocation18], 0 }
   0xe   :  { %33 = vsyncpa [#allocation21], 0 }
   0xf   :  { %34 = vsyncpa [#allocation4], 0  ;;  %s5582_s3 = smov [#allocation5]  }
  0x10   :  { %s52_s28 = sshll.u32 %s5582_s3, 4  ;;  %s53_s28 = int_to_ptr.vmem [resolvable:$true] %s52_s28 }
  0x11   :  { %s5314_s29 = scalar_lea.vmem %s53_s28, 256  ;;  %p5319_p1 = scmp.lt.s32.totalorder %s53_s28, %s53_s28 }
  0x12   :  { %p5315_p0 = scmp.ne.s32.totalorder %s53_s28, %s5314_s29  ;;  %p5320_p2 = scmp.lt.s32.totalorder %s5314_s29, %s5314_s29 }
  0x14   :  { %p5321_p3 = por %p5320_p2, %p5319_p1 }
  0x16   :  { %p5322_p4 = pnand %p5321_p3, %p5315_p0 }
  0x18   :  { %5325 = shalt.err (!%p5322_p4)
}
  0x19   :  { %s5583_s30 = smov 128   ;;  %s5584_s4 = smov 8  }
  0x1a   :  { %s6502_s1 = sld [smem:[#allocation32_spill]]  ;;  %s5585_s5 = smov [#allocation8]  }
  0x1b   :  { %s84_s24 = sshll.u32 %s5585_s5, 4  ;;  %s5586_s6 = smov [#allocation11]   ;;  %s85_s24 = int_to_ptr.vmem [resolvable:$true] %s84_s24 }
  0x1c   :  { %s112_s25 = sshll.u32 %s5586_s6, 4  ;;  %s5334_s26 = scalar_lea.vmem %s85_s24, 32  ;;  %s113_s25 = int_to_ptr.vmem [resolvable:$true] %s112_s25 }
  0x1d   :  { %p5335_p5 = scmp.ne.s32.totalorder %s85_s24, %s5334_s26  ;;  %p5339_p6 = scmp.lt.s32.totalorder %s85_s24, %s85_s24 }
  0x1e   :  { %p5340_p7 = scmp.lt.s32.totalorder %s5334_s26, %s5334_s26 }
  0x20   :  { %58 = dma.hbm_to_vmem [thread:$0]  %s6502_s1, 256, %s53_s28, [#allocation6], %s5583_s30, %s5583_s30, %s5584_s4  }
  0x21   :  { %p5341_p8 = por %p5340_p7, %p5339_p6 }
  0x23   :  { %p5342_p9 = pnand %p5341_p8, %p5335_p5 }
  0x25   :  { %5345 = shalt.err (!%p5342_p9)
}
  0x26   :  { %s5587_s2 = smov 16   ;;  %s5588_s27 = smov 1  }
  0x27   :  { %90 = dma.hbm_to_vmem [thread:$0]  %s6475_s7, 32, %s85_s24, [#allocation9], %s5587_s2, %s5587_s2, %s5588_s27  }
  0x28   :  { %s5354_s28 = scalar_lea.vmem %s113_s25, 32  ;;  %p5359_p11 = scmp.lt.s32.totalorder %s113_s25, %s113_s25 }
  0x29   :  { %p5355_p10 = scmp.ne.s32.totalorder %s113_s25, %s5354_s28  ;;  %p5360_p12 = scmp.lt.s32.totalorder %s5354_s28, %s5354_s28 }
  0x2b   :  { %p5361_p13 = por %p5360_p12, %p5359_p11 }
  0x2d   :  { %p5362_p0 = pnand %p5361_p13, %p5355_p10 }
  0x2f   :  { %5365 = shalt.err (!%p5362_p0)
}
  0x30   :  { %118 = dma.hbm_to_vmem [thread:$0]  %s6479_s11, 32, %s113_s25, [#allocation12], %s5587_s2, %s5587_s2, %s5588_s27  }
  0x31   :  { %s5589_s1 = smov [#allocation14]   ;;  %s5590_s6 = smov [#allocation17]  }
  0x32   :  { %s138_s5 = sshll.u32 %s5589_s1, 4  ;;  %s164_s7 = sshll.u32 %s5590_s6, 4  ;;  %s139_s5 = int_to_ptr.vmem [resolvable:$true] %s138_s5  ;;  %s165_s7 = int_to_ptr.vmem [resolvable:$true] %s164_s7 }
  0x33   :  { %s5374_s24 = scalar_lea.vmem %s139_s5, 1024  ;;  %p5379_p2 = scmp.lt.s32.totalorder %s139_s5, %s139_s5 }
  0x34   :  { %p5375_p1 = scmp.ne.s32.totalorder %s139_s5, %s5374_s24  ;;  %p5380_p3 = scmp.lt.s32.totalorder %s5374_s24, %s5374_s24 }
  0x36   :  { %p5381_p4 = por %p5380_p3, %p5379_p2 }
  0x38   :  { %p5382_p5 = pnand %p5381_p4, %p5375_p1 }
  0x3a   :  { %5385 = shalt.err (!%p5382_p5)
}
  0x3b   :  { %144 = dma.hbm_to_vmem [thread:$0]  %s6482_s14, 1024, %s139_s5, [#allocation15], %s5583_s30, %s5583_s30, %s5584_s4  }
  0x3c   :  { %s5394_s11 = scalar_lea.vmem %s165_s7, 32  ;;  %p5399_p7 = scmp.lt.s32.totalorder %s165_s7, %s165_s7 }
  0x3d   :  { %p5395_p6 = scmp.ne.s32.totalorder %s165_s7, %s5394_s11  ;;  %p5400_p8 = scmp.lt.s32.totalorder %s5394_s11, %s5394_s11 }
  0x3f   :  { %p5401_p9 = por %p5400_p8, %p5399_p7 }
  0x41   :  { %p5402_p10 = pnand %p5401_p9, %p5395_p6 }
  0x43   :  { %5405 = shalt.err (!%p5402_p10)
}
  0x44   :  { %170 = dma.hbm_to_vmem [thread:$0]  %s6485_s17, 32, %s165_s7, [#allocation18], %s5587_s2, %s5587_s2, %s5588_s27  }
  0x45   :  { %s5591_s28 = smov [#allocation2]   ;;  %s5592_s23 = smov [#allocation7]  }
  0x46   :  { %s40_s0 = sshll.u32 %s5591_s28, 4  ;;  %s70_s14 = sshll.u32 %s5592_s23, 4  ;;  %s41_s0 = int_to_ptr.vmem [resolvable:$true] %s40_s0  ;;  %s71_s14 = int_to_ptr.vmem [resolvable:$true] %s70_s14 }
  0x47   :  { %s5414_s1 = scalar_lea.vmem %s41_s0, 256  ;;  %p5419_p12 = scmp.lt.s32.totalorder %s41_s0, %s41_s0 }
  0x48   :  { %p5415_p11 = scmp.ne.s32.totalorder %s41_s0, %s5414_s1  ;;  %p5420_p13 = scmp.lt.s32.totalorder %s5414_s1, %s5414_s1 }
  0x4a   :  { %p5421_p0 = por %p5420_p13, %p5419_p12 }
  0x4c   :  { %p5422_p1 = pnand %p5421_p0, %p5415_p11 }
  0x4e   :  { %5425 = shalt.err (!%p5422_p1)
}
  0x4f   :  { %s6503_s24 = sld [smem:[#allocation31_spill]]  ;;  %s5434_s17 = scalar_lea.vmem %s71_s14, 32 }
  0x50   :  { %p5435_p2 = scmp.ne.s32.totalorder %s71_s14, %s5434_s17  ;;  %p5439_p3 = scmp.lt.s32.totalorder %s71_s14, %s71_s14 }
  0x51   :  { %p5440_p4 = scmp.lt.s32.totalorder %s5434_s17, %s5434_s17 }
  0x53   :  { %p5441_p5 = por %p5440_p4, %p5439_p3 }
  0x55   :  { %46 = dma.hbm_to_vmem [thread:$0]  %s6503_s24, 256, %s41_s0, [#allocation3], %s5583_s30, %s5583_s30, %s5584_s4  }
  0x56   :  { %p5442_p6 = pnand %p5441_p5, %p5435_p2 }
  0x58   :  { %5445 = shalt.err (!%p5442_p6)
}
  0x59   :  { %s6504_s3 = sld [smem:[#allocation36_spill]]  ;;  %s5593_s11 = smov [#allocation10]  }
  0x5a   :  { %s98_s25 = sshll.u32 %s5593_s11, 4  ;;  %s5594_s29 = smov [#allocation13]   ;;  %s99_s25 = int_to_ptr.vmem [resolvable:$true] %s98_s25 }
  0x5b   :  { %s126_s28 = sshll.u32 %s5594_s29, 4  ;;  %s5454_s0 = scalar_lea.vmem %s99_s25, 32  ;;  %s127_s28 = int_to_ptr.vmem [resolvable:$true] %s126_s28 }
  0x5c   :  { %p5455_p7 = scmp.ne.s32.totalorder %s99_s25, %s5454_s0  ;;  %p5459_p8 = scmp.lt.s32.totalorder %s99_s25, %s99_s25 }
  0x5d   :  { %p5460_p9 = scmp.lt.s32.totalorder %s5454_s0, %s5454_s0 }
  0x5f   :  { %76 = dma.hbm_to_vmem [thread:$0]  %s6504_s3, 32, %s71_s14, [#allocation6], %s5587_s2, %s5587_s2, %s5588_s27  }
  0x60   :  { %p5461_p10 = por %p5460_p9, %p5459_p8 }
  0x62   :  { %p5462_p11 = pnand %p5461_p10, %p5455_p7 }
  0x64   :  { %5465 = shalt.err (!%p5462_p11)
}
  0x65   :  { %104 = dma.hbm_to_vmem [thread:$0]  %s6477_s9, 32, %s99_s25, [#allocation9], %s5587_s2, %s5587_s2, %s5588_s27  }
  0x66   :  { %s5474_s14 = scalar_lea.vmem %s127_s28, 32  ;;  %p5479_p13 = scmp.lt.s32.totalorder %s127_s28, %s127_s28 }
  0x67   :  { %p5475_p12 = scmp.ne.s32.totalorder %s127_s28, %s5474_s14  ;;  %p5480_p0 = scmp.lt.s32.totalorder %s5474_s14, %s5474_s14 }
  0x69   :  { %p5481_p1 = por %p5480_p0, %p5479_p13 }
  0x6b   :  { %p5482_p2 = pnand %p5481_p1, %p5475_p12 }
  0x6d   :  { %5485 = shalt.err (!%p5482_p2)
}
  0x6e   :  { %132 = dma.hbm_to_vmem [thread:$0]  %s6481_s13, 32, %s127_s28, [#allocation12], %s5587_s2, %s5587_s2, %s5588_s27  }
  0x6f   :  { %s5595_s24 = smov [#allocation16]   ;;  %s5596_s7 = smov [#allocation19]  }
  0x70   :  { %s150_s17 = sshll.u32 %s5595_s24, 4  ;;  %s181_s9 = sshll.u32 %s5596_s7, 4  ;;  %s151_s17 = int_to_ptr.vmem [resolvable:$true] %s150_s17  ;;  %s182_s9 = int_to_ptr.vmem [resolvable:$true] %s181_s9 }
  0x71   :  { %s5494_s26 = scalar_lea.vmem %s151_s17, 32  ;;  %p5499_p4 = scmp.lt.s32.totalorder %s151_s17, %s151_s17 }
  0x72   :  { %p5495_p3 = scmp.ne.s32.totalorder %s151_s17, %s5494_s26  ;;  %p5500_p5 = scmp.lt.s32.totalorder %s5494_s26, %s5494_s26 }
  0x74   :  { %p5501_p6 = por %p5500_p5, %p5499_p4 }
  0x76   :  { %p5502_p7 = pnand %p5501_p6, %p5495_p3 }
  0x78   :  { %5505 = shalt.err (!%p5502_p7)
}
  0x79   :  { %156 = dma.hbm_to_vmem [thread:$0]  %s6483_s15, 32, %s151_s17, [#allocation15], %s5587_s2, %s5587_s2, %s5588_s27  }
  0x7a   :  { %s5514_s13 = scalar_lea.vmem %s182_s9, 16  ;;  %s5518_s25 = scalar_lea.vmem %s182_s9, 32 }
  0x7b   :  { %p5515_p8 = scmp.ne.s32.totalorder %s182_s9, %s5514_s13  ;;  %p5519_p9 = scmp.lt.s32.totalorder %s182_s9, %s182_s9 }
  0x7c   :  { %p5520_p10 = scmp.lt.s32.totalorder %s5518_s25, %s5514_s13 }
  0x7e   :  { %p5521_p11 = por %p5520_p10, %p5519_p9 }
  0x80   :  { %p5522_p12 = pnand %p5521_p11, %p5515_p8 }
  0x82   :  { %5525 = shalt.err (!%p5522_p12)
}
  0x83   :  { %184 = dma.hbm_to_vmem [thread:$0]  %s6488_s20, 16, %s182_s9, [#allocation18]  }
  0x84   :  { %s5597_s0 = smov [#allocation20]  }
  0x85   :  { %s191_s23 = sshll.u32 %s5597_s0, 4  ;;  %s192_s23 = int_to_ptr.vmem [resolvable:$true] %s191_s23 }
  0x86   :  { %s5534_s1 = scalar_lea.vmem %s192_s23, 16  ;;  %s5538_s14 = scalar_lea.vmem %s192_s23, 32 }
  0x87   :  { %p5535_p13 = scmp.ne.s32.totalorder %s192_s23, %s5534_s1  ;;  %p5539_p0 = scmp.lt.s32.totalorder %s192_s23, %s192_s23 }
  0x88   :  { %p5540_p1 = scmp.lt.s32.totalorder %s5538_s14, %s5534_s1 }
  0x8a   :  { %p5541_p2 = por %p5540_p1, %p5539_p0 }
  0x8c   :  { %p5542_p3 = pnand %p5541_p2, %p5535_p13 }
  0x8e   :  { %5545 = shalt.err (!%p5542_p3)
}
  0x8f   :  { %194 = dma.hbm_to_vmem [thread:$0]  %s6489_s21, 16, %s192_s23, [#allocation21]  }
  0x90   :  { %5566 = dma.done.wait [#allocation3], 256  }
  0x91   :  { %5567 = vsyncadd [#allocation3], 4294967040 }
  0x92   :  { %5568 = dma.done.wait [#allocation6], 288  }
  0x93   :  { %5569 = vsyncadd [#allocation6], 4294967008 }
  0x94   :  { %5570 = dma.done.wait [#allocation9], 64  }
  0x95   :  { %5571 = vsyncadd [#allocation9], 4294967232 }
  0x96   :  { %5572 = dma.done.wait [#allocation12], 64  }
  0x97   :  { %5573 = vsyncadd [#allocation12], 4294967232 }
  0x98   :  { %5574 = dma.done.wait [#allocation15], 1056  }
  0x99   :  { %5575 = vsyncadd [#allocation15], 4294966240 }
  0x9a   :  { %5576 = dma.done.wait [#allocation18], 48  }
  0x9b   :  { %5577 = vsyncadd [#allocation18], 4294967248 }
  0x9c   :  { %5578 = dma.done.wait [#allocation21], 16  }
  0x9d   :  { %5579 = vsyncadd [#allocation21], 4294967280  ;;  %vm241_vm0 = vcmask 261120   ;;  %v5785_v0 = vld [vmem:[#allocation2] sm:$0xff]  ;;  %v5787_v1 = vld [vmem:[#allocation2 + $0x8] sm:$0xff]  ;;  %s6505_s5 = sld [smem:[#allocation35_spill]]  ;;  %v269_v23 = vlaneseq }
  0x9e   :  { %v242_v2 = vsel %vm241_vm0, %v5785_v0, 0.0  ;;  %v245_v3 = vsel %vm241_vm0, %v5787_v1, 0.0  ;;  %v5817_v27 = vld [vmem:[%s6486_s18] sm:$0x7]  ;;  %v5598_v39 = vmov 0.0   ;;  %vm5599_vm1 = vmmov 0  }
  0x9f   :  { %243 = vadd.xlane.f32.xlu0 %v242_v2  ;;  %v5809_v25 = vshrl.u32 %v269_v23, 7  ;;  %v5822_v28 = vld [vmem:[%s6487_s19] sm:$0x7]  ;;  %4878 = vmatprep.subr.mxu0 %v5598_v39  ;;  %s5600_s29 = smov 112   ;;  %s5601_s28 = smov 96   ;;  %vm381_vm2 = vcmask 130048  }
  0xa0   :  { %4880 = vmatprep.mubr.msk.f32.mxu0 %vm5599_vm1, %v5598_v39  ;;  %v4579_v40 = vld [vmem:[#allocation7] ss:$0 sm:$0xff]  ;;  %s6506_s1 = sld [smem:[#allocation33_spill]]  ;;  %vm692_vm3 = vcmask 64512   ;;  %s5602_s27 = smov 64   ;;  %vm2279_vm4 = vcmask 523264  }
  0xa1   :  { %v5812_v26 = vsub.s32 0, %v5809_v25  ;;  %s6507_s6 = sld [smem:[#allocation37_spill]] }
  0xa2   :  { %s6508_s0 = sld [smem:[#allocation34_spill]] }
  0xa3   :  { %246 = vadd.xlane.f32.xlu0 %v245_v3  ;;  %v284_v14 = vld [vmem:[%s6505_s5 + $0x18] sm:$0xff]  ;;  %v283_v15 = vld [vmem:[%s6505_s5 + $0x10] sm:$0xff]  ;;  %v282_v16 = vld [vmem:[%s6505_s5 + $0x8] sm:$0xff]  ;;  %v272_v29 = vrot.slane %v5817_v27, %v5812_v26  ;;  %v278_v32 = vrot.slane %v5822_v28, %v5812_v26 }
  0xa4   :  { %4857 = vmatprep.subr.mxu1 %v284_v14  ;;  %v281_v17 = vld [vmem:[%s6505_s5] sm:$0xff] }
  0xa5   :  { %4858 = vmatpush3.msra.mxu1 %v284_v14 }
  0xa6   :  { %4859 = vmatprep.subr.mxu1 %v283_v15  ;;  %v235_v52 = vld [vmem:[%s6506_s1] sm:$0xff]  ;;  %v236_v57 = vld [vmem:[%s6506_s1 + $0x8] sm:$0xff] }
  0xa7   :  { %4860 = vmatpush3.msra.mxu1 %v283_v15 }
  0xa8   :  { %4861 = vmatprep.subr.mxu1 %v282_v16 }
  0xa9   :  { %4862 = vmatpush3.msra.mxu1 %v282_v16 }
  0xaa   :  { %4863 = vmatprep.subr.mxu1 %v281_v17 }
  0xab   :  { %4864 = vmatpush3.msra.mxu1 %v281_v17 }
  0xac   :  { %4868 = vmatprep.subr.mxu1 %v5598_v39 }
 0x128   :  { %v244_v4 = vpop.xlane.xlu0 %243 }
 0x129   :  { %v249_v5 = vmul.f32 0.03125, %v244_v4 }
 0x12b   :  { %v251_v6 = vsub.f32 %v5785_v0, %v249_v5 }
 0x12c   :  { %v247_v7 = vpop.xlane.xlu0 %246 }
 0x12d   :  { %v250_v8 = vmul.f32 0.03125, %v247_v7  ;;  %v253_v9 = vmul.f32 %v251_v6, %v251_v6 }
 0x12f   :  { %v252_v10 = vsub.f32 %v5787_v1, %v250_v8  ;;  %v255_v11 = vsel %vm241_vm0, %v253_v9, 0.0 }
 0x130   :  { %256 = vadd.xlane.f32.xlu1 %v255_v11 }
 0x131   :  { %v254_v12 = vmul.f32 %v252_v10, %v252_v10 }
 0x133   :  { %v258_v13 = vsel %vm241_vm0, %v254_v12, 0.0 }
 0x134   :  { %259 = vadd.xlane.f32.xlu1 %v258_v13 }
 0x1b9   :  { %v257_v18 = vpop.xlane.xlu1 %256 }
 0x1ba   :  { %v261_v19 = vmul.f32 0.03125, %v257_v18 }
 0x1bc   :  { %v263_v20 = vadd.f32 1e-05, %v261_v19 }
 0x1bd   :  { %v260_v21 = vpop.xlane.xlu1 %259 }
 0x1be   :  { %5209 = vrsqrt.f32 %v263_v20  ;;  %v262_v22 = vmul.f32 0.03125, %v260_v21 }
 0x1c0   :  { %v264_v24 = vadd.f32 1e-05, %v262_v22 }
 0x1c2   :  { %5211 = vrsqrt.f32 %v264_v24 }
 0x1cb   :  { %v5210_v30 = vpop.eup %5209 }
 0x1cc   :  { %v267_v31 = vmul.f32 %v5210_v30, %v251_v6 }
 0x1ce   :  { %v273_v33 = vmul.f32 %v272_v29, %v267_v31 }
 0x1cf   :  { %v5212_v34 = vpop.eup %5211 }
 0x1d0   :  { %v268_v35 = vmul.f32 %v5212_v34, %v252_v10  ;;  %v279_v36 = vadd.f32 %v278_v32, %v273_v33 }
 0x1d2   :  { %v274_v37 = vmul.f32 %v272_v29, %v268_v35  ;;  %4865 = vmatprep.mubr.msk.f32.mxu1 %vm241_vm0, %v279_v36 }
 0x1d4   :  { %v280_v38 = vadd.f32 %v278_v32, %v274_v37 }
 0x1d6   :  { %4866 = vmatmul.mubr.msk.f32.vlgmr.msra.gmra.mxu1 %vm241_vm0, %v280_v38 }
 0x1d7   :  { %4870 = vmatprep.mubr.msk.f32.mxu1 %vm5599_vm1, %v5598_v39 }
 0x296   :  { %v4867_v41 = vpop.f32.mrf.mxu1 }
 0x297   :  { %v5836_v42 = vadd.f32 %v4867_v41, %v4579_v40 }
 0x298   :  { %v364_v43 = vpop.f32.mrf.mxu1 }
 0x299   :  { %v5838_v44 = vadd.f32 %v4579_v40, %v364_v43  ;;  %377 = vrot.lane.b32.xlu1 %v5836_v42, %s5600_s29 }
 0x29b   :  { %375 = vrot.lane.b32.xlu0 %v5838_v44, %s5600_s29 }
 0x29d   :  { %379 = vrot.lane.b32.xlu1 %v5838_v44, %s5601_s28 }
 0x2a1   :  { %456 = vrot.lane.b32.xlu1 %v5836_v42, %s5601_s28 }
 0x30b   :  { %v5848_v45 = vpop.permute.xlu1 %377 }
 0x30c   :  { %608 = vrot.lane.b32.xlu1 %v5848_v45, %s5601_s28 }
 0x30d   :  { %v5852_v46 = vpop.permute.xlu0 %375 }
 0x30e   :  { %532 = vrot.lane.b32.xlu0 %v5852_v46, %s5601_s28 }
 0x30f   :  { %v380_v47 = vpop.permute.xlu1 %379 }
 0x310   :  { %4869 = vmatpush3.xpose.msk.msra.mxu1 %vm381_vm2, %v380_v47 }
 0x311   :  { %4873 = vmatprep.subr.mxu1 %v5598_v39 }
 0x313   :  { %4871 = vmatmul.mubr.msk.f32.vlgmr.msra.gmra.mxu1 %vm381_vm2, %v5838_v44  ;;  %v457_v48 = vpop.permute.xlu1 %456 }
 0x314   :  { %4874 = vmatpush3.xpose.msk.msra.mxu1 %vm381_vm2, %v457_v48  ;;  %4875 = vmatprep.mubr.msk.f32.mxu1 %vm5599_vm1, %v5598_v39 }
 0x315   :  { %4883 = vmatprep.subr.mxu1 %v5598_v39 }
 0x317   :  { %4876 = vmatmul.mubr.msk.f32.vlgmr.msra.gmra.mxu1 %vm381_vm2, %v5836_v42 }
 0x318   :  { %4885 = vmatprep.mubr.msk.f32.mxu1 %vm5599_vm1, %v5598_v39 }
 0x37e   :  { %v609_v49 = vpop.permute.xlu1 %608 }
 0x37f   :  { %4884 = vmatpush3.xpose.msk.msra.mxu1 %vm381_vm2, %v609_v49 }
 0x380   :  { %v533_v50 = vpop.permute.xlu0 %532  ;;  %4893 = vmatprep.subr.mxu1 %v5598_v39 }
 0x381   :  { %4879 = vmatpush3.xpose.msk.msra.mxu0 %vm381_vm2, %v533_v50 }
 0x382   :  { %4886 = vmatmul.mubr.msk.f32.vlgmr.msra.gmra.mxu1 %vm381_vm2, %v5848_v45  ;;  %4888 = vmatprep.subr.mxu0 %v5598_v39 }
 0x383   :  { %4895 = vmatprep.mubr.msk.f32.mxu1 %vm5599_vm1, %v5598_v39 }
 0x384   :  { %4881 = vmatmul.mubr.msk.f32.vlgmr.msra.gmra.mxu0 %vm381_vm2, %v5852_v46 }
 0x385   :  { %4890 = vmatprep.mubr.msk.f32.mxu0 %vm5599_vm1, %v5598_v39 }
 0x3d3   :  { %v452_v51 = vpop.f32.mrf.mxu1 }
 0x3d4   :  { %v684_v53 = vmul.f32 0.25, %v452_v51 }
 0x3d5   :  { %v4872_v54 = vpop.f32.mrf.mxu1 }
 0x3d6   :  { %v688_v55 = vadd.f32 %v684_v53, %v235_v52  ;;  %v1053_v53 = vld [vmem:[%s6507_s6 + $0x10] sm:$0xff]  ;;  %v1052_v54 = vld [vmem:[%s6507_s6 + $0x8] sm:$0xff] }
 0x3d7   :  { %v528_v56 = vpop.f32.mrf.mxu1 }
 0x3d8   :  { %v685_v58 = vmul.f32 0.25, %v528_v56  ;;  %v693_v59 = vsel %vm692_vm3, %v688_v55, -inf  ;;  %v1051_v56 = vld [vmem:[%s6507_s6] sm:$0xff] }
 0x3d9   :  { %v4877_v60 = vpop.f32.mrf.mxu1  ;;  %694 = vmax.xlane.f32.xlu0 %v693_v59 }
 0x3da   :  { %v689_v61 = vadd.f32 %v685_v58, %v236_v57 }
 0x3dc   :  { %v696_v62 = vsel %vm692_vm3, %v689_v61, -inf }
 0x3dd   :  { %697 = vmax.xlane.f32.xlu1 %v696_v62 }
 0x442   :  { %v680_v63 = vpop.f32.mrf.mxu1 }
 0x443   :  { %v687_v4 = vmul.f32 0.25, %v680_v63 }
 0x444   :  { %v604_v2 = vpop.f32.mrf.mxu0  ;;  %v4887_v3 = vpop.f32.mrf.mxu1 }
 0x445   :  { %v686_v5 = vmul.f32 0.25, %v604_v2  ;;  %v691_v9 = vadd.f32 %v687_v4, %v236_v57 }
 0x446   :  { %v4882_v6 = vpop.f32.mrf.mxu0 }
 0x447   :  { %v690_v7 = vadd.f32 %v686_v5, %v235_v52  ;;  %v702_v10 = vsel %vm692_vm3, %v691_v9, -inf  ;;  %v1054_v52 = vld [vmem:[%s6507_s6 + $0x18] sm:$0xff] }
 0x449   :  { %v699_v8 = vsel %vm692_vm3, %v690_v7, -inf }
 0x44a   :  { %700 = vmax.xlane.f32.xlu0 %v699_v8 }
 0x44e   :  { %703 = vmax.xlane.f32.xlu0 %v702_v10 }
 0x462   :  { %v695_v11 = vpop.xlane.xlu0 %694 }
 0x463   :  { %v705_v12 = vsub.f32 %v688_v55, %v695_v11 }
 0x465   :  { %v709_v13 = vmul.f32 1.442695, %v705_v12 }
 0x466   :  { %v698_v14 = vpop.xlane.xlu1 %697 }
 0x467   :  { %5213 = vpow2.f32 %v709_v13  ;;  %v706_v15 = vsub.f32 %v689_v61, %v698_v14 }
 0x469   :  { %v711_v16 = vmul.f32 1.442695, %v706_v15 }
 0x46b   :  { %5215 = vpow2.f32 %v711_v16 }
 0x474   :  { %v5214_v17 = vpop.eup %5213 }
 0x475   :  { %v717_v18 = vsel %vm692_vm3, %v5214_v17, 0.0 }
 0x476   :  { %718 = vadd.xlane.f32.xlu0 %v717_v18 }
 0x478   :  { %v5216_v19 = vpop.eup %5215 }
 0x479   :  { %v720_v20 = vsel %vm692_vm3, %v5216_v19, 0.0 }
 0x47a   :  { %721 = vadd.xlane.f32.xlu1 %v720_v20 }
 0x4d3   :  { %v701_v21 = vpop.xlane.xlu0 %700 }
 0x4d4   :  { %v707_v22 = vsub.f32 %v690_v7, %v701_v21  ;;  %v4596_v7 = vld [vmem:[#allocation8] ss:$0 sm:$0xff] }
 0x4d6   :  { %v713_v23 = vmul.f32 1.442695, %v707_v22 }
 0x4d7   :  { %v704_v24 = vpop.xlane.xlu0 %703 }
 0x4d8   :  { %5217 = vpow2.f32 %v713_v23  ;;  %v708_v29 = vsub.f32 %v691_v9, %v704_v24  ;;  %v1280_v23 = vld [vmem:[%s6478_s10 + $0x18] sm:$0xff]  ;;  %v1279_v24 = vld [vmem:[%s6478_s10 + $0x10] sm:$0xff] }
 0x4da   :  { %v715_v30 = vmul.f32 1.442695, %v708_v29  ;;  %v1278_v29 = vld [vmem:[%s6478_s10 + $0x8] sm:$0xff] }
 0x4dc   :  { %5219 = vpow2.f32 %v715_v30  ;;  %v1188_v30 = vld [vmem:[%s6476_s8 + $0x18] sm:$0xff] }
 0x4e5   :  { %v5218_v31 = vpop.eup %5217 }
 0x4e6   :  { %v723_v32 = vsel %vm692_vm3, %v5218_v31, 0.0 }
 0x4e7   :  { %724 = vadd.xlane.f32.xlu0 %v723_v32  ;;  %v1187_v32 = vld [vmem:[%s6476_s8 + $0x10] sm:$0xff] }
 0x4e9   :  { %v5220_v33 = vpop.eup %5219 }
 0x4ea   :  { %v726_v34 = vsel %vm692_vm3, %v5220_v33, 0.0 }
 0x4eb   :  { %727 = vadd.xlane.f32.xlu1 %v726_v34  ;;  %v234_v34 = vld [vmem:[#allocation5 + $0x8] sm:$0xff] }
 0x4fc   :  { %813 = vrot.lane.b32.xlu1 %v5836_v42, %s5602_s27 }
 0x4fd   :  { %737 = vrot.lane.b32.xlu0 %v5838_v44, %s5602_s27 }
 0x4ff   :  { %v719_v35 = vpop.xlane.xlu0 %718 }
 0x500   :  { %889 = vrot.lane.b32.xlu1 %v5852_v46, %s5602_s27  ;;  %5221 = vrcp.f32 %v719_v35  ;;  %v1186_v35 = vld [vmem:[%s6476_s8 + $0x8] sm:$0xff] }
 0x503   :  { %v722_v36 = vpop.xlane.xlu1 %721 }
 0x504   :  { %965 = vrot.lane.b32.xlu1 %v5848_v45, %s5602_s27  ;;  %5223 = vrcp.f32 %v722_v36  ;;  %v1185_v36 = vld [vmem:[%s6476_s8] sm:$0xff] }
 0x50d   :  { %v5222_v38 = vpop.eup %5221 }
 0x50e   :  { %v733_v43 = vmul.f32 %v5222_v38, %v5214_v17 }
 0x511   :  { %v5224_v42 = vpop.eup %5223 }
 0x512   :  { %v734_v45 = vmul.f32 %v5224_v42, %v5216_v19 }
 0x570   :  { %v725_v37 = vpop.xlane.xlu0 %724 }
 0x571   :  { %5225 = vrcp.f32 %v725_v37 }
 0x574   :  { %v728_v40 = vpop.xlane.xlu1 %727  ;;  %v738_v41 = vpop.permute.xlu0 %737 }
 0x575   :  { %5227 = vrcp.f32 %v728_v40  ;;  %4889 = vmatpush3.msra.mxu0 %v738_v41 }
 0x576   :  { %4891 = vmatmul.mubr.msk.f32.vlgmr.msra.gmra.mxu0 %vm692_vm3, %v733_v43  ;;  %4898 = vmatprep.subr.mxu0 %v5598_v39 }
 0x577   :  { %4900 = vmatprep.mubr.msk.f32.mxu0 %vm5599_vm1, %v5598_v39 }
 0x578   :  { %v814_v44 = vpop.permute.xlu1 %813 }
 0x579   :  { %4894 = vmatpush3.msra.mxu1 %v814_v44  ;;  %v5978_v44 = vsub.s32 1, %v5809_v25 }
 0x57a   :  { %4896 = vmatmul.mubr.msk.f32.vlgmr.msra.gmra.mxu1 %vm692_vm3, %v734_v45  ;;  %4903 = vmatprep.subr.mxu1 %v5598_v39 }
 0x57b   :  { %4905 = vmatprep.mubr.msk.f32.mxu1 %vm5599_vm1, %v5598_v39  ;;  %v1176_v45 = vrot.slane %v5817_v27, %v5978_v44 }
 0x57c   :  { %v890_v46 = vpop.permute.xlu1 %889 }
 0x57d   :  { %4899 = vmatpush3.msra.mxu0 %v890_v46 }
 0x57e   :  { %v5226_v47 = vpop.eup %5225  ;;  %4908 = vmatprep.subr.mxu0 %v1054_v52 }
 0x57f   :  { %v735_v48 = vmul.f32 %v5226_v47, %v5218_v31  ;;  %v1277_v31 = vld [vmem:[%s6478_s10] sm:$0xff]  ;;  %v1182_v47 = vrot.slane %v5822_v28, %v5978_v44 }
 0x580   :  { %v966_v49 = vpop.permute.xlu1 %965 }
 0x581   :  { %4901 = vmatmul.mubr.msk.f32.vlgmr.msra.gmra.mxu0 %vm692_vm3, %v735_v48  ;;  %4904 = vmatpush3.msra.mxu1 %v966_v49 }
 0x582   :  { %v5228_v50 = vpop.eup %5227  ;;  %4909 = vmatpush3.msra.mxu0 %v1054_v52  ;;  %4919 = vmatprep.subr.mxu1 %v1188_v30 }
 0x583   :  { %v736_v51 = vmul.f32 %v5228_v50, %v5220_v33  ;;  %4910 = vmatprep.subr.mxu0 %v1053_v53  ;;  %v5962_v33 = vld [vmem:[#allocation5] sm:$0xff] }
 0x584   :  { %4911 = vmatpush3.msra.mxu0 %v1053_v53 }
 0x585   :  { %4906 = vmatmul.mubr.msk.f32.vlgmr.msra.gmra.mxu1 %vm692_vm3, %v736_v51  ;;  %4912 = vmatprep.subr.mxu0 %v1052_v54 }
 0x586   :  { %4913 = vmatpush3.msra.mxu0 %v1052_v54  ;;  %4920 = vmatpush3.msra.mxu1 %v1188_v30 }
 0x587   :  { %4914 = vmatprep.subr.mxu0 %v1051_v56  ;;  %4921 = vmatprep.subr.mxu1 %v1187_v32 }
 0x588   :  { %4915 = vmatpush3.msra.mxu0 %v1051_v56  ;;  %4922 = vmatpush3.msra.mxu1 %v1187_v32 }
 0x589   :  { %4930 = vmatprep.subr.mxu0 %v1280_v23  ;;  %4923 = vmatprep.subr.mxu1 %v1186_v35 }
 0x58a   :  { %4924 = vmatpush3.msra.mxu1 %v1186_v35 }
 0x58b   :  { %4925 = vmatprep.subr.mxu1 %v1185_v36 }
 0x58c   :  { %4926 = vmatpush3.msra.mxu1 %v1185_v36 }
 0x58d   :  { %4941 = vmatprep.subr.mxu1 %v5598_v39 }
 0x636   :  { %v809_v55 = vpop.f32.mrf.mxu0 }
 0x638   :  { %v4892_v57 = vpop.f32.mrf.mxu0 }
 0x63a   :  { %v885_v58 = vpop.f32.mrf.mxu1 }
 0x63c   :  { %v4897_v59 = vpop.f32.mrf.mxu1 }
 0x641   :  { %v961_v60 = vpop.f32.mrf.mxu0 }
 0x642   :  { %1043 = vrot.lane.b32.xlu0 %v961_v60, %s5587_s2 }
 0x643   :  { %v4902_v61 = vpop.f32.mrf.mxu0 }
 0x645   :  { %v1037_v62 = vpop.f32.mrf.mxu1 }
 0x646   :  { %1045 = vrot.lane.b32.xlu1 %v1037_v62, %s5587_s2  ;;  %v4597_v62 = vld [vmem:[#allocation10] ss:$0 sm:$0xff] }
 0x647   :  { %v4907_v63 = vpop.f32.mrf.mxu1 }
 0x6b4   :  { %v1044_v2 = vpop.permute.xlu0 %1043 }
 0x6b5   :  { %v1049_v3 = vsel %vm381_vm2, %v809_v55, %v1044_v2  ;;  %v4600_v55 = vld [vmem:[#allocation11] ss:$0 sm:$0xff] }
 0x6b6   :  { %4916 = vmatprep.mubr.msk.f32.mxu0 %vm241_vm0, %v1049_v3 }
 0x6b8   :  { %v1046_v4 = vpop.permute.xlu1 %1045 }
 0x6b9   :  { %v1050_v5 = vsel %vm381_vm2, %v885_v58, %v1046_v4 }
 0x6ba   :  { %4917 = vmatmul.mubr.msk.f32.vlgmr.msra.gmra.mxu0 %vm241_vm0, %v1050_v5 }
 0x6bb   :  { %4931 = vmatpush3.msra.mxu0 %v1280_v23  ;;  %4938 = vmatprep.mubr.msk.f32.mxu0 %vm241_vm0, %v5962_v33 }
 0x6bc   :  { %4932 = vmatprep.subr.mxu0 %v1279_v24 }
 0x6bd   :  { %4933 = vmatpush3.msra.mxu0 %v1279_v24 }
 0x6be   :  { %4934 = vmatprep.subr.mxu0 %v1278_v29 }
 0x6bf   :  { %4935 = vmatpush3.msra.mxu0 %v1278_v29 }
 0x6c0   :  { %4936 = vmatprep.subr.mxu0 %v1277_v31 }
 0x6c1   :  { %4937 = vmatpush3.msra.mxu0 %v1277_v31 }
 0x6c2   :  { %4939 = vmatmul.mubr.msk.f32.vlgmr.msra.gmra.mxu0 %vm241_vm0, %v234_v34  ;;  %4951 = vmatprep.subr.mxu0 %v5598_v39 }
 0x6c3   :  { %4953 = vmatprep.mubr.msk.f32.mxu0 %vm5599_vm1, %v5598_v39 }
 0x77a   :  { %v4918_v6 = vpop.f32.mrf.mxu0 }
 0x77b   :  { %v1137_v8 = vadd.f32 %v4918_v6, %v5787_v1 }
 0x77c   :  { %v1127_v9 = vpop.f32.mrf.mxu0 }
 0x77d   :  { %v5931_v10 = vadd.f32 %v4596_v7, %v1137_v8  ;;  %v1136_v11 = vadd.f32 %v1127_v9, %v5785_v0  ;;  %v237_v8 = vld [vmem:[%s6508_s0] sm:$0xff] }
 0x77f   :  { %v5934_v12 = vadd.f32 %v4596_v7, %v1136_v11  ;;  %v1150_v13 = vsel %vm241_vm0, %v5931_v10, 0.0 }
 0x780   :  { %1151 = vadd.xlane.f32.xlu1 %v1150_v13 }
 0x781   :  { %v1147_v14 = vsel %vm241_vm0, %v5934_v12, 0.0 }
 0x782   :  { %1148 = vadd.xlane.f32.xlu0 %v1147_v14  ;;  %v4940_v56 = vpop.f32.mrf.mxu0 }
 0x783   :  { %v5988_v57 = vadd.f32 %v4940_v56, %v4600_v55 }
 0x784   :  { %v1360_v58 = vpop.f32.mrf.mxu0 }
 0x785   :  { %v5990_v59 = vadd.f32 %v4600_v55, %v1360_v58 }
 0x791   :  { %1379 = vrot.lane.b32.xlu1 %v5988_v57, %s5600_s29 }
 0x809   :  { %v1152_v15 = vpop.xlane.xlu1 %1151 }
 0x80a   :  { %v1154_v16 = vmul.f32 0.03125, %v1152_v15  ;;  %v238_v15 = vld [vmem:[%s6508_s0 + $0x8] sm:$0xff] }
 0x80b   :  { %v1149_v17 = vpop.xlane.xlu0 %1148 }
 0x80c   :  { %v1153_v18 = vmul.f32 0.03125, %v1149_v17  ;;  %v1156_v1 = vsub.f32 %v5931_v10, %v1154_v16 }
 0x80d   :  { %v6010_v4 = vpop.permute.xlu1 %1379 }
 0x80e   :  { %v1155_v19 = vsub.f32 %v5934_v12, %v1153_v18  ;;  %v1158_v21 = vmul.f32 %v1156_v1, %v1156_v1 }
 0x810   :  { %v1157_v20 = vmul.f32 %v1155_v19, %v1155_v19  ;;  %v1162_v22 = vsel %vm241_vm0, %v1158_v21, 0.0 }
 0x812   :  { %v1159_v0 = vsel %vm241_vm0, %v1157_v20, 0.0 }
 0x813   :  { %1160 = vadd.xlane.f32.xlu0 %v1159_v0 }
 0x817   :  { %1163 = vadd.xlane.f32.xlu0 %v1162_v22 }
 0x82d   :  { %1377 = vrot.lane.b32.xlu0 %v5990_v59, %s5600_s29 }
 0x89c   :  { %v1161_v37 = vpop.xlane.xlu0 %1160 }
 0x89d   :  { %v1165_v38 = vmul.f32 0.03125, %v1161_v37 }
 0x89f   :  { %v1167_v40 = vadd.f32 1e-05, %v1165_v38 }
 0x8a0   :  { %v1164_v41 = vpop.xlane.xlu0 %1163 }
 0x8a1   :  { %5229 = vrsqrt.f32 %v1167_v40  ;;  %v1166_v43 = vmul.f32 0.03125, %v1164_v41 }
 0x8a3   :  { %v1168_v42 = vadd.f32 1e-05, %v1166_v43 }
 0x8a4   :  { %v5999_v60 = vpop.permute.xlu0 %1377 }
 0x8a5   :  { %5231 = vrsqrt.f32 %v1168_v42  ;;  %4952 = vmatpush3.xpose.msk.msra.mxu0 %vm381_vm2, %v5999_v60 }
 0x8a6   :  { %4961 = vmatprep.subr.mxu0 %v5598_v39 }
 0x8ae   :  { %v5230_v46 = vpop.eup %5229 }
 0x8af   :  { %v1171_v48 = vmul.f32 %v5230_v46, %v1155_v19 }
 0x8b1   :  { %v1177_v49 = vmul.f32 %v1176_v45, %v1171_v48 }
 0x8b2   :  { %v5232_v50 = vpop.eup %5231 }
 0x8b3   :  { %v1172_v51 = vmul.f32 %v5232_v50, %v1156_v1  ;;  %v1183_v52 = vadd.f32 %v1182_v47, %v1177_v49 }
 0x8b5   :  { %4927 = vmatprep.mubr.msk.f32.mxu1 %vm241_vm0, %v1183_v52  ;;  %v1178_v53 = vmul.f32 %v1176_v45, %v1172_v51 }
 0x8b7   :  { %v1184_v54 = vadd.f32 %v1182_v47, %v1178_v53 }
 0x8b9   :  { %4928 = vmatmul.mubr.msk.f32.vlgmr.msra.gmra.mxu1 %vm241_vm0, %v1184_v54 }
 0x8ba   :  { %4943 = vmatprep.mubr.msk.f32.mxu1 %vm5599_vm1, %v5598_v39  ;;  %4942 = vmatpush3.xpose.msk.msra.mxu1 %vm381_vm2, %v5990_v59 }
 0x8bb   :  { %4946 = vmatprep.subr.mxu1 %v5598_v39 }
 0x979   :  { %v4929_v61 = vpop.f32.mrf.mxu1 }
 0x97a   :  { %v1274_v3 = vadd.f32 %v4929_v61, %v4597_v62 }
 0x97b   :  { %v1268_v63 = vpop.f32.mrf.mxu1 }
 0x97c   :  { %v1269_v2 = vadd.f32 %v4597_v62, %v1268_v63 }
 0x97e   :  { %1371 = vrot.lane.b32.xlu1 %v1269_v2, %s5600_s29  ;;  %4944 = vmatmul.mubr.msk.f32.vlgmr.msra.gmra.mxu1 %vm381_vm2, %v1269_v2 }
 0x97f   :  { %4947 = vmatpush3.xpose.msk.msra.mxu1 %vm381_vm2, %v5988_v57  ;;  %4948 = vmatprep.mubr.msk.f32.mxu1 %vm5599_vm1, %v5598_v39 }
 0x980   :  { %4956 = vmatprep.subr.mxu1 %v5598_v39 }
 0x982   :  { %1373 = vrot.lane.b32.xlu1 %v1274_v3, %s5600_s29  ;;  %4949 = vmatmul.mubr.msk.f32.vlgmr.msra.gmra.mxu1 %vm381_vm2, %v1274_v3 }
 0x983   :  { %4957 = vmatpush3.xpose.msk.msra.mxu1 %vm381_vm2, %v6010_v4  ;;  %4958 = vmatprep.mubr.msk.f32.mxu1 %vm5599_vm1, %v5598_v39 }
 0x984   :  { %4966 = vmatprep.subr.mxu1 %v5598_v39 }
 0x9f0   :  { %v1372_v5 = vpop.permute.xlu1 %1371 }
 0x9f1   :  { %4954 = vmatmul.mubr.msk.f32.vlgmr.msra.gmra.mxu0 %vm381_vm2, %v1372_v5 }
 0x9f2   :  { %4963 = vmatprep.mubr.msk.f32.mxu0 %vm5599_vm1, %v5598_v39 }
 0x9f4   :  { %v1374_v6 = vpop.permute.xlu1 %1373 }
 0x9f5   :  { %4959 = vmatmul.mubr.msk.f32.vlgmr.msra.gmra.mxu1 %vm381_vm2, %v1374_v6 }
 0x9f6   :  { %4968 = vmatprep.mubr.msk.f32.mxu1 %vm5599_vm1, %v5598_v39 }
 0xa3e   :  { %v1451_v7 = vpop.f32.mrf.mxu1 }
 0xa3f   :  { %v1677_v9 = vmul.f32 0.25, %v1451_v7 }
 0xa40   :  { %v4945_v11 = vpop.f32.mrf.mxu1 }
 0xa41   :  { %v1681_v13 = vadd.f32 %v1677_v9, %v237_v8  ;;  %v2046_v11 = vld [vmem:[%s6480_s12 + $0x18] sm:$0xff] }
 0xa42   :  { %v1525_v14 = vpop.f32.mrf.mxu1 }
 0xa43   :  { %v1678_v16 = vmul.f32 0.25, %v1525_v14  ;;  %v1685_v17 = vsel %vm692_vm3, %v1681_v13, -inf  ;;  %v2044_v14 = vld [vmem:[%s6480_s12 + $0x8] sm:$0xff] }
 0xa44   :  { %1686 = vmax.xlane.f32.xlu0 %v1685_v17  ;;  %v4950_v18 = vpop.f32.mrf.mxu1  ;;  %v2043_v17 = vld [vmem:[%s6480_s12] sm:$0xff] }
 0xa45   :  { %v1682_v1 = vadd.f32 %v1678_v16, %v238_v15 }
 0xa47   :  { %v1688_v19 = vsel %vm692_vm3, %v1682_v1, -inf }
 0xa48   :  { %1689 = vmax.xlane.f32.xlu1 %v1688_v19 }
 0xab1   :  { %v1599_v20 = vpop.f32.mrf.mxu0 }
 0xab2   :  { %v1679_v0 = vmul.f32 0.25, %v1599_v20 }
 0xab3   :  { %v4955_v21 = vpop.f32.mrf.mxu0 }
 0xab4   :  { %v1683_v22 = vadd.f32 %v1679_v0, %v237_v8 }
 0xab5   :  { %v1673_v23 = vpop.f32.mrf.mxu1 }
 0xab6   :  { %v1680_v24 = vmul.f32 0.25, %v1673_v23  ;;  %v1691_v29 = vsel %vm692_vm3, %v1683_v22, -inf }
 0xab7   :  { %v4960_v30 = vpop.f32.mrf.mxu1  ;;  %1692 = vmax.xlane.f32.xlu0 %v1691_v29 }
 0xab8   :  { %v1684_v31 = vadd.f32 %v1680_v24, %v238_v15 }
 0xaba   :  { %v1694_v32 = vsel %vm692_vm3, %v1684_v31, -inf }
 0xabb   :  { %1695 = vmax.xlane.f32.xlu0 %v1694_v32 }
 0xacd   :  { %v1687_v34 = vpop.xlane.xlu0 %1686 }
 0xace   :  { %v1697_v35 = vsub.f32 %v1681_v13, %v1687_v34  ;;  %v2045_v13 = vld [vmem:[%s6480_s12 + $0x10] sm:$0xff] }
 0xad0   :  { %v1701_v36 = vmul.f32 1.442695, %v1697_v35 }
 0xad1   :  { %v1690_v37 = vpop.xlane.xlu1 %1689 }
 0xad2   :  { %5233 = vpow2.f32 %v1701_v36  ;;  %v1698_v38 = vsub.f32 %v1682_v1, %v1690_v37 }
 0xad4   :  { %v1703_v40 = vmul.f32 1.442695, %v1698_v38 }
 0xad6   :  { %5235 = vpow2.f32 %v1703_v40 }
 0xadf   :  { %v5234_v41 = vpop.eup %5233 }
 0xae0   :  { %v1709_v43 = vsel %vm692_vm3, %v5234_v41, 0.0 }
 0xae1   :  { %1710 = vadd.xlane.f32.xlu0 %v1709_v43 }
 0xae3   :  { %v5236_v42 = vpop.eup %5235 }
 0xae4   :  { %v1712_v45 = vsel %vm692_vm3, %v5236_v42, 0.0 }
 0xae5   :  { %1713 = vadd.xlane.f32.xlu1 %v1712_v45 }
 0xb40   :  { %v1693_v46 = vpop.xlane.xlu0 %1692 }
 0xb41   :  { %v1699_v47 = vsub.f32 %v1683_v22, %v1693_v46 }
 0xb43   :  { %v1705_v48 = vmul.f32 1.442695, %v1699_v47 }
 0xb44   :  { %v1696_v49 = vpop.xlane.xlu0 %1695 }
 0xb45   :  { %5237 = vpow2.f32 %v1705_v48  ;;  %v1700_v50 = vsub.f32 %v1684_v31, %v1696_v49  ;;  %v4617_v31 = vld [vmem:[#allocation13] ss:$0 sm:$0xff] }
 0xb47   :  { %v1707_v51 = vmul.f32 1.442695, %v1700_v50  ;;  %v2180_v50 = vld [vmem:[#allocation14 + $0x18] sm:$0xff] }
 0xb49   :  { %5239 = vpow2.f32 %v1707_v51  ;;  %v2179_v51 = vld [vmem:[#allocation14 + $0x10] sm:$0xff] }
 0xb52   :  { %v5238_v52 = vpop.eup %5237 }
 0xb53   :  { %v1715_v53 = vsel %vm692_vm3, %v5238_v52, 0.0 }
 0xb54   :  { %1716 = vadd.xlane.f32.xlu0 %v1715_v53  ;;  %v2177_v53 = vld [vmem:[#allocation14] sm:$0xff] }
 0xb56   :  { %v5240_v54 = vpop.eup %5239 }
 0xb57   :  { %v1718_v55 = vsel %vm692_vm3, %v5240_v54, 0.0 }
 0xb58   :  { %1719 = vadd.xlane.f32.xlu1 %v1718_v55  ;;  %v2277_v55 = vld [vmem:[%s6484_s16 + $0x30] sm:$0xff] }
 0xb69   :  { %1805 = vrot.lane.b32.xlu1 %v5988_v57, %s5601_s28 }
 0xb6a   :  { %1729 = vrot.lane.b32.xlu0 %v5990_v59, %s5601_s28  ;;  %v1711_v56 = vpop.xlane.xlu0 %1710 }
 0xb6b   :  { %5241 = vrcp.f32 %v1711_v56  ;;  %v2276_v56 = vld [vmem:[%s6484_s16 + $0x28] sm:$0xff] }
 0xb6d   :  { %1881 = vrot.lane.b32.xlu1 %v5999_v60, %s5601_s28 }
 0xb6e   :  { %v1714_v58 = vpop.xlane.xlu1 %1713 }
 0xb6f   :  { %5243 = vrcp.f32 %v1714_v58  ;;  %v2275_v58 = vld [vmem:[%s6484_s16 + $0x20] sm:$0xff] }
 0xb71   :  { %1957 = vrot.lane.b32.xlu1 %v6010_v4, %s5601_s28 }
 0xb78   :  { %v5242_v62 = vpop.eup %5241 }
 0xb79   :  { %v1725_v3 = vmul.f32 %v5242_v62, %v5234_v41 }
 0xb7c   :  { %v5244_v57 = vpop.eup %5243 }
 0xb7d   :  { %v1726_v60 = vmul.f32 %v5244_v57, %v5236_v42 }
 0xbdd   :  { %v1717_v61 = vpop.xlane.xlu0 %1716 }
 0xbde   :  { %5245 = vrcp.f32 %v1717_v61 }
 0xbe1   :  { %v1720_v63 = vpop.xlane.xlu1 %1719  ;;  %v1730_v2 = vpop.permute.xlu0 %1729 }
 0xbe2   :  { %5247 = vrcp.f32 %v1720_v63  ;;  %4962 = vmatpush3.msra.mxu0 %v1730_v2 }
 0xbe3   :  { %4964 = vmatmul.mubr.msk.f32.vlgmr.msra.gmra.mxu0 %vm692_vm3, %v1725_v3  ;;  %4971 = vmatprep.subr.mxu0 %v5598_v39 }
 0xbe4   :  { %4973 = vmatprep.mubr.msk.f32.mxu0 %vm5599_vm1, %v5598_v39 }
 0xbe5   :  { %v1806_v59 = vpop.permute.xlu1 %1805 }
 0xbe6   :  { %4967 = vmatpush3.msra.mxu1 %v1806_v59  ;;  %v6103_v59 = vsub.s32 2, %v5809_v25  ;;  %v2274_v25 = vld [vmem:[%s6484_s16 + $0x18] sm:$0xff] }
 0xbe7   :  { %4969 = vmatmul.mubr.msk.f32.vlgmr.msra.gmra.mxu1 %vm692_vm3, %v1726_v60  ;;  %4976 = vmatprep.subr.mxu1 %v5598_v39 }
 0xbe8   :  { %4978 = vmatprep.mubr.msk.f32.mxu1 %vm5599_vm1, %v5598_v39  ;;  %v2168_v60 = vrot.slane %v5817_v27, %v6103_v59  ;;  %v2273_v27 = vld [vmem:[%s6484_s16 + $0x10] sm:$0xff] }
 0xbe9   :  { %v1882_v4 = vpop.permute.xlu1 %1881 }
 0xbea   :  { %4972 = vmatpush3.msra.mxu0 %v1882_v4 }
 0xbeb   :  { %v5246_v5 = vpop.eup %5245  ;;  %4981 = vmatprep.subr.mxu0 %v2046_v11 }
 0xbec   :  { %v1727_v6 = vmul.f32 %v5246_v5, %v5238_v52  ;;  %v2178_v52 = vld [vmem:[#allocation14 + $0x8] sm:$0xff]  ;;  %v2174_v5 = vrot.slane %v5822_v28, %v6103_v59  ;;  %v2272_v28 = vld [vmem:[%s6484_s16 + $0x8] sm:$0xff] }
 0xbed   :  { %v1958_v7 = vpop.permute.xlu1 %1957 }
 0xbee   :  { %4974 = vmatmul.mubr.msk.f32.vlgmr.msra.gmra.mxu0 %vm692_vm3, %v1727_v6  ;;  %4977 = vmatpush3.msra.mxu1 %v1958_v7 }
 0xbef   :  { %v5248_v8 = vpop.eup %5247  ;;  %4982 = vmatpush3.msra.mxu0 %v2046_v11  ;;  %4992 = vmatprep.subr.mxu1 %v2180_v50 }
 0xbf0   :  { %v1728_v9 = vmul.f32 %v5248_v8, %v5240_v54  ;;  %4983 = vmatprep.subr.mxu0 %v2045_v13  ;;  %v2278_v54 = vld [vmem:[%s6484_s16 + $0x38] sm:$0xff] }
 0xbf1   :  { %4984 = vmatpush3.msra.mxu0 %v2045_v13 }
 0xbf2   :  { %4979 = vmatmul.mubr.msk.f32.vlgmr.msra.gmra.mxu1 %vm692_vm3, %v1728_v9  ;;  %4985 = vmatprep.subr.mxu0 %v2044_v14 }
 0xbf3   :  { %4986 = vmatpush3.msra.mxu0 %v2044_v14  ;;  %4993 = vmatpush3.msra.mxu1 %v2180_v50 }
 0xbf4   :  { %4987 = vmatprep.subr.mxu0 %v2043_v17  ;;  %4994 = vmatprep.subr.mxu1 %v2179_v51 }
 0xbf5   :  { %4988 = vmatpush3.msra.mxu0 %v2043_v17  ;;  %4995 = vmatpush3.msra.mxu1 %v2179_v51 }
 0xbf6   :  { %4996 = vmatprep.subr.mxu1 %v2178_v52  ;;  %5003 = vmatprep.subr.mxu0 %v2278_v54 }
 0xbf7   :  { %4997 = vmatpush3.msra.mxu1 %v2178_v52 }
 0xbf8   :  { %4998 = vmatprep.subr.mxu1 %v2177_v53 }
 0xbf9   :  { %4999 = vmatpush3.msra.mxu1 %v2177_v53 }
 0xca3   :  { %v1801_v15 = vpop.f32.mrf.mxu0 }
 0xca5   :  { %v4965_v16 = vpop.f32.mrf.mxu0 }
 0xca6   :  { %v4618_v16 = vld [vmem:[#allocation16] ss:$0 sm:$0xff] }
 0xca7   :  { %v1877_v18 = vpop.f32.mrf.mxu1 }
 0xca9   :  { %v4970_v1 = vpop.f32.mrf.mxu1 }
 0xcae   :  { %v1953_v19 = vpop.f32.mrf.mxu0 }
 0xcaf   :  { %2035 = vrot.lane.b32.xlu0 %v1953_v19, %s5587_s2 }
 0xcb0   :  { %v4975_v20 = vpop.f32.mrf.mxu0 }
 0xcb2   :  { %v2029_v0 = vpop.f32.mrf.mxu1 }
 0xcb3   :  { %2037 = vrot.lane.b32.xlu1 %v2029_v0, %s5587_s2 }
 0xcb4   :  { %v4980_v21 = vpop.f32.mrf.mxu1 }
 0xd21   :  { %v2036_v22 = vpop.permute.xlu0 %2035 }
 0xd22   :  { %v2041_v23 = vsel %vm381_vm2, %v1801_v15, %v2036_v22  ;;  %v2271_v15 = vld [vmem:[%s6484_s16] sm:$0xff]  ;;  %v4623_v22 = vld [vmem:[#allocation17] ss:$0 sm:$0xff] }
 0xd23   :  { %4989 = vmatprep.mubr.msk.f32.mxu0 %vm241_vm0, %v2041_v23 }
 0xd25   :  { %v2038_v24 = vpop.permute.xlu1 %2037 }
 0xd26   :  { %v2042_v29 = vsel %vm381_vm2, %v1877_v18, %v2038_v24 }
 0xd27   :  { %4990 = vmatmul.mubr.msk.f32.vlgmr.msra.gmra.mxu0 %vm241_vm0, %v2042_v29 }
 0xd28   :  { %5004 = vmatpush3.msra.mxu0 %v2278_v54 }
 0xd29   :  { %5005 = vmatprep.subr.mxu0 %v2277_v55 }
 0xd2a   :  { %5006 = vmatpush3.msra.mxu0 %v2277_v55  ;;  %v6158_v55 = vld [vmem:[%s6486_s18 + $0x4] sm:$0x7] }
 0xd2b   :  { %5007 = vmatprep.subr.mxu0 %v2276_v56 }
 0xd2c   :  { %5008 = vmatpush3.msra.mxu0 %v2276_v56 }
 0xd2d   :  { %5009 = vmatprep.subr.mxu0 %v2275_v58 }
 0xd2e   :  { %5010 = vmatpush3.msra.mxu0 %v2275_v58  ;;  %v2405_v58 = vrot.slane %v6158_v55, %v5812_v26 }
 0xd2f   :  { %5011 = vmatprep.subr.mxu0 %v2274_v25 }
 0xd30   :  { %5012 = vmatpush3.msra.mxu0 %v2274_v25 }
 0xd31   :  { %5013 = vmatprep.subr.mxu0 %v2273_v27 }
 0xd32   :  { %5014 = vmatpush3.msra.mxu0 %v2273_v27 }
 0xd33   :  { %5015 = vmatprep.subr.mxu0 %v2272_v28 }
 0xd34   :  { %5016 = vmatpush3.msra.mxu0 %v2272_v28 }
 0xd35   :  { %5017 = vmatprep.subr.mxu0 %v2271_v15 }
 0xd36   :  { %5018 = vmatpush3.msra.mxu0 %v2271_v15 }
 0xd37   :  { %5043 = vmatprep.subr.mxu0 %v5598_v39 }
 0xde7   :  { %v4991_v30 = vpop.f32.mrf.mxu0 }
 0xde8   :  { %v2129_v32 = vadd.f32 %v4991_v30, %v5931_v10 }
 0xde9   :  { %v2119_v34 = vpop.f32.mrf.mxu0 }
 0xdea   :  { %v6077_v35 = vadd.f32 %v4617_v31, %v2129_v32  ;;  %v2128_v36 = vadd.f32 %v2119_v34, %v5934_v12 }
 0xdec   :  { %v6080_v37 = vadd.f32 %v4617_v31, %v2128_v36  ;;  %v2142_v38 = vsel %vm241_vm0, %v6077_v35, 0.0 }
 0xded   :  { %2143 = vadd.xlane.f32.xlu1 %v2142_v38 }
 0xdee   :  { %v2139_v40 = vsel %vm241_vm0, %v6080_v37, 0.0 }
 0xdef   :  { %2140 = vadd.xlane.f32.xlu0 %v2139_v40 }
 0xe76   :  { %v2144_v41 = vpop.xlane.xlu1 %2143 }
 0xe77   :  { %v2146_v43 = vmul.f32 0.03125, %v2144_v41 }
 0xe78   :  { %v2141_v42 = vpop.xlane.xlu0 %2140 }
 0xe79   :  { %v2145_v45 = vmul.f32 0.03125, %v2141_v42  ;;  %v2148_v10 = vsub.f32 %v6077_v35, %v2146_v43 }
 0xe7b   :  { %v2147_v46 = vsub.f32 %v6080_v37, %v2145_v45  ;;  %v2150_v48 = vmul.f32 %v2148_v10, %v2148_v10 }
 0xe7d   :  { %v2149_v47 = vmul.f32 %v2147_v46, %v2147_v46  ;;  %v2154_v49 = vsel %vm241_vm0, %v2150_v48, 0.0  ;;  %v4626_v48 = vld [vmem:[%s6505_s5 + $0x20] sm:$0xff] }
 0xe7f   :  { %v2151_v12 = vsel %vm241_vm0, %v2149_v47, 0.0  ;;  %v4628_v47 = vld [vmem:[%s6505_s5 + $0x30] sm:$0xff] }
 0xe80   :  { %2152 = vadd.xlane.f32.xlu0 %v2151_v12  ;;  %v4627_v12 = vld [vmem:[%s6505_s5 + $0x28] sm:$0xff] }
 0xe84   :  { %2155 = vadd.xlane.f32.xlu0 %v2154_v49 }
 0xf09   :  { %v2153_v61 = vpop.xlane.xlu0 %2152 }
 0xf0a   :  { %v2157_v62 = vmul.f32 0.03125, %v2153_v61  ;;  %v6165_v61 = vld [vmem:[%s6487_s19 + $0x4] sm:$0x7] }
 0xf0c   :  { %v2159_v63 = vadd.f32 1e-05, %v2157_v62 }
 0xf0d   :  { %v2156_v2 = vpop.xlane.xlu0 %2155 }
 0xf0e   :  { %5249 = vrsqrt.f32 %v2159_v63  ;;  %v2158_v3 = vmul.f32 0.03125, %v2156_v2 }
 0xf10   :  { %v2160_v57 = vadd.f32 1e-05, %v2158_v3 }
 0xf12   :  { %5251 = vrsqrt.f32 %v2160_v57  ;;  %v2411_v57 = vrot.slane %v6165_v61, %v5812_v26 }
 0xf1b   :  { %v5250_v4 = vpop.eup %5249 }
 0xf1c   :  { %v2163_v6 = vmul.f32 %v5250_v4, %v2147_v46  ;;  %v4629_v46 = vld [vmem:[%s6505_s5 + $0x38] sm:$0xff] }
 0xf1d   :  { %5022 = vmatprep.subr.mxu1 %v4629_v46 }
 0xf1e   :  { %v2169_v7 = vmul.f32 %v2168_v60, %v2163_v6  ;;  %v4630_v6 = vld [vmem:[#allocation7 + $0x1] ss:$0 sm:$0xff] }
 0xf1f   :  { %v5252_v8 = vpop.eup %5251 }
 0xf20   :  { %v2164_v9 = vmul.f32 %v5252_v8, %v2148_v10  ;;  %v2175_v11 = vadd.f32 %v2174_v5, %v2169_v7 }
 0xf22   :  { %5000 = vmatprep.mubr.msk.f32.mxu1 %vm241_vm0, %v2175_v11  ;;  %v2170_v13 = vmul.f32 %v2168_v60, %v2164_v9 }
 0xf24   :  { %v2176_v14 = vadd.f32 %v2174_v5, %v2170_v13 }
 0xf26   :  { %5001 = vmatmul.mubr.msk.f32.vlgmr.msra.gmra.mxu1 %vm241_vm0, %v2176_v14 }
 0xf27   :  { %5023 = vmatpush3.msra.mxu1 %v4629_v46 }
 0xf28   :  { %5024 = vmatprep.subr.mxu1 %v4628_v47 }
 0xf29   :  { %5025 = vmatpush3.msra.mxu1 %v4628_v47 }
 0xf2a   :  { %5026 = vmatprep.subr.mxu1 %v4627_v12 }
 0xf2b   :  { %5027 = vmatpush3.msra.mxu1 %v4627_v12 }
 0xf2c   :  { %5028 = vmatprep.subr.mxu1 %v4626_v48 }
 0xf2d   :  { %5029 = vmatpush3.msra.mxu1 %v4626_v48 }
 0xf2e   :  { %5033 = vmatprep.subr.mxu1 %v5598_v39 }
 0xfe6   :  { %v5002_v17 = vpop.f32.mrf.mxu1 }
 0xfe7   :  { %v2266_v18 = vadd.f32 %v5002_v17, %v4618_v16 }
 0xfe8   :  { %v2260_v1 = vpop.f32.mrf.mxu1 }
 0xfe9   :  { %v2261_v19 = vadd.f32 %v4618_v16, %v2260_v1  ;;  %v2270_v0 = vmax.f32 %v2266_v18, 0.0  ;;  %v5301_v18 = vld [vmem:[%s6506_s1] sm:$0xff] }
 0xfeb   :  { %v2269_v20 = vmax.f32 %v2261_v19, 0.0 }
 0xfed   :  { %5019 = vmatprep.mubr.msk.f32.mxu0 %vm2279_vm4, %v2269_v20 }
 0xfee   :  { %5020 = vmatmul.mubr.msk.f32.vlgmr.msra.gmra.mxu0 %vm2279_vm4, %v2270_v0 }
 0xfef   :  { %5045 = vmatprep.mubr.msk.f32.mxu0 %vm5599_vm1, %v5598_v39 }
0x10ae   :  { %v5021_v21 = vpop.f32.mrf.mxu0 }
0x10af   :  { %v2362_v23 = vadd.f32 %v5021_v21, %v6077_v35 }
0x10b0   :  { %v2352_v24 = vpop.f32.mrf.mxu0 }
0x10b1   :  { %v6129_v29 = vadd.f32 %v4623_v22, %v2362_v23  ;;  %v2361_v30 = vadd.f32 %v2352_v24, %v6080_v37 }
0x10b3   :  { %v6132_v31 = vadd.f32 %v4623_v22, %v2361_v30  ;;  %v2379_v32 = vsel %vm241_vm0, %v6129_v29, 0.0  ;;  %v5302_v22 = vld [vmem:[%s6506_s1 + $0x8] sm:$0xff] }
0x10b4   :  { %2380 = vadd.xlane.f32.xlu1 %v2379_v32 }
0x10b5   :  { %v2376_v34 = vsel %vm241_vm0, %v6132_v31, 0.0 }
0x10b6   :  { %2377 = vadd.xlane.f32.xlu0 %v2376_v34 }
0x113d   :  { %v2381_v36 = vpop.xlane.xlu1 %2380 }
0x113e   :  { %v2383_v38 = vmul.f32 0.03125, %v2381_v36 }
0x113f   :  { %v2378_v40 = vpop.xlane.xlu0 %2377 }
0x1140   :  { %v2385_v35 = vsub.f32 %v6129_v29, %v2383_v38  ;;  %v2382_v41 = vmul.f32 0.03125, %v2378_v40 }
0x1142   :  { %v2384_v43 = vsub.f32 %v6132_v31, %v2382_v41  ;;  %v2387_v42 = vmul.f32 %v2385_v35, %v2385_v35 }
0x1144   :  { %v2391_v37 = vsel %vm241_vm0, %v2387_v42, 0.0  ;;  %v2386_v45 = vmul.f32 %v2384_v43, %v2384_v43 }
0x1145   :  { %2392 = vadd.xlane.f32.xlu1 %v2391_v37 }
0x1146   :  { %v2388_v10 = vsel %vm241_vm0, %v2386_v45, 0.0 }
0x1147   :  { %2389 = vadd.xlane.f32.xlu0 %v2388_v10 }
0x11ce   :  { %v2393_v49 = vpop.xlane.xlu1 %2392 }
0x11cf   :  { %v2395_v50 = vmul.f32 0.03125, %v2393_v49 }
0x11d0   :  { %v2390_v51 = vpop.xlane.xlu0 %2389 }
0x11d1   :  { %v2397_v52 = vadd.f32 1e-05, %v2395_v50  ;;  %v2394_v53 = vmul.f32 0.03125, %v2390_v51 }
0x11d3   :  { %5253 = vrsqrt.f32 %v2397_v52  ;;  %v2396_v54 = vadd.f32 1e-05, %v2394_v53 }
0x11d5   :  { %5255 = vrsqrt.f32 %v2396_v54 }
0x11e0   :  { %v5254_v56 = vpop.eup %5253 }
0x11e1   :  { %v2401_v62 = vmul.f32 %v5254_v56, %v2385_v35 }
0x11e2   :  { %v5256_v63 = vpop.eup %5255 }
0x11e3   :  { %v2400_v2 = vmul.f32 %v5256_v63, %v2384_v43  ;;  %v2407_v3 = vmul.f32 %v2405_v58, %v2401_v62 }
0x11e5   :  { %v2406_v60 = vmul.f32 %v2405_v58, %v2400_v2  ;;  %v2413_v5 = vadd.f32 %v2411_v57, %v2407_v3 }
0x11e7   :  { %v2412_v4 = vadd.f32 %v2411_v57, %v2406_v60 }
0x11e9   :  { %5030 = vmatprep.mubr.msk.f32.mxu1 %vm241_vm0, %v2412_v4 }
0x11ea   :  { %5031 = vmatmul.mubr.msk.f32.vlgmr.msra.gmra.mxu1 %vm241_vm0, %v2413_v5 }
0x11eb   :  { %5035 = vmatprep.mubr.msk.f32.mxu1 %vm5599_vm1, %v5598_v39 }
0x12aa   :  { %v5032_v7 = vpop.f32.mrf.mxu1 }
0x12ab   :  { %v6173_v8 = vadd.f32 %v5032_v7, %v4630_v6 }
0x12ac   :  { %v2499_v9 = vpop.f32.mrf.mxu1 }
0x12ad   :  { %v6175_v11 = vadd.f32 %v4630_v6, %v2499_v9  ;;  %2512 = vrot.lane.b32.xlu1 %v6173_v8, %s5600_s29 }
0x12af   :  { %2510 = vrot.lane.b32.xlu0 %v6175_v11, %s5600_s29 }
0x12b1   :  { %2514 = vrot.lane.b32.xlu1 %v6175_v11, %s5601_s28 }
0x12b5   :  { %2590 = vrot.lane.b32.xlu1 %v6173_v8, %s5601_s28 }
0x131f   :  { %v6185_v26 = vpop.permute.xlu1 %2512 }
0x1320   :  { %2742 = vrot.lane.b32.xlu1 %v6185_v26, %s5601_s28 }
0x1321   :  { %v6189_v13 = vpop.permute.xlu0 %2510 }
0x1322   :  { %2666 = vrot.lane.b32.xlu0 %v6189_v13, %s5601_s28 }
0x1323   :  { %v2515_v14 = vpop.permute.xlu1 %2514 }
0x1324   :  { %5034 = vmatpush3.xpose.msk.msra.mxu1 %vm381_vm2, %v2515_v14 }
0x1325   :  { %5038 = vmatprep.subr.mxu1 %v5598_v39 }
0x1327   :  { %5036 = vmatmul.mubr.msk.f32.vlgmr.msra.gmra.mxu1 %vm381_vm2, %v6175_v11  ;;  %v2591_v25 = vpop.permute.xlu1 %2590 }
0x1328   :  { %5039 = vmatpush3.xpose.msk.msra.mxu1 %vm381_vm2, %v2591_v25  ;;  %5040 = vmatprep.mubr.msk.f32.mxu1 %vm5599_vm1, %v5598_v39 }
0x1329   :  { %5048 = vmatprep.subr.mxu1 %v5598_v39 }
0x132b   :  { %5041 = vmatmul.mubr.msk.f32.vlgmr.msra.gmra.mxu1 %vm381_vm2, %v6173_v8 }
0x132c   :  { %5050 = vmatprep.mubr.msk.f32.mxu1 %vm5599_vm1, %v5598_v39 }
0x1392   :  { %v2743_v27 = vpop.permute.xlu1 %2742 }
0x1393   :  { %5049 = vmatpush3.xpose.msk.msra.mxu1 %vm381_vm2, %v2743_v27 }
0x1394   :  { %v2667_v28 = vpop.permute.xlu0 %2666  ;;  %5058 = vmatprep.subr.mxu1 %v5598_v39 }
0x1395   :  { %5044 = vmatpush3.xpose.msk.msra.mxu0 %vm381_vm2, %v2667_v28 }
0x1396   :  { %5051 = vmatmul.mubr.msk.f32.vlgmr.msra.gmra.mxu1 %vm381_vm2, %v6185_v26  ;;  %5053 = vmatprep.subr.mxu0 %v5598_v39 }
0x1397   :  { %5060 = vmatprep.mubr.msk.f32.mxu1 %vm5599_vm1, %v5598_v39 }
0x1398   :  { %5046 = vmatmul.mubr.msk.f32.vlgmr.msra.gmra.mxu0 %vm381_vm2, %v6189_v13 }
0x1399   :  { %5055 = vmatprep.mubr.msk.f32.mxu0 %vm5599_vm1, %v5598_v39 }
0x13e7   :  { %v2586_v15 = vpop.f32.mrf.mxu1 }
0x13e8   :  { %v2818_v16 = vmul.f32 0.25, %v2586_v15 }
0x13e9   :  { %v5037_v17 = vpop.f32.mrf.mxu1 }
0x13ea   :  { %v2822_v1 = vadd.f32 %v5301_v18, %v2818_v16  ;;  %v4648_v17 = vld [vmem:[%s6507_s6 + $0x38] sm:$0xff] }
0x13eb   :  { %v2662_v19 = vpop.f32.mrf.mxu1 }
0x13ec   :  { %v2819_v20 = vmul.f32 0.25, %v2662_v19  ;;  %v2826_v0 = vsel %vm692_vm3, %v2822_v1, -inf }
0x13ed   :  { %v5042_v21 = vpop.f32.mrf.mxu1  ;;  %2827 = vmax.xlane.f32.xlu0 %v2826_v0  ;;  %v4645_v0 = vld [vmem:[%s6507_s6 + $0x20] sm:$0xff] }
0x13ee   :  { %v2823_v23 = vadd.f32 %v5302_v22, %v2819_v20 }
0x13f0   :  { %v2829_v24 = vsel %vm692_vm3, %v2823_v23, -inf }
0x13f1   :  { %2830 = vmax.xlane.f32.xlu1 %v2829_v24 }
0x1456   :  { %v2814_v30 = vpop.f32.mrf.mxu1 }
0x1457   :  { %v2821_v36 = vmul.f32 0.25, %v2814_v30 }
0x1458   :  { %v2738_v32 = vpop.f32.mrf.mxu0  ;;  %v5052_v34 = vpop.f32.mrf.mxu1 }
0x1459   :  { %v2820_v38 = vmul.f32 0.25, %v2738_v32  ;;  %v2825_v43 = vadd.f32 %v5302_v22, %v2821_v36 }
0x145a   :  { %v5047_v40 = vpop.f32.mrf.mxu0 }
0x145b   :  { %v2824_v35 = vadd.f32 %v5301_v18, %v2820_v38  ;;  %v2835_v42 = vsel %vm692_vm3, %v2825_v43, -inf  ;;  %v4647_v18 = vld [vmem:[%s6507_s6 + $0x30] sm:$0xff] }
0x145d   :  { %v2832_v41 = vsel %vm692_vm3, %v2824_v35, -inf }
0x145e   :  { %2833 = vmax.xlane.f32.xlu0 %v2832_v41  ;;  %v4651_v41 = vld [vmem:[#allocation8 + $0x1] ss:$0 sm:$0xff] }
0x1462   :  { %2836 = vmax.xlane.f32.xlu0 %v2835_v42 }
0x1476   :  { %v2828_v37 = vpop.xlane.xlu0 %2827 }
0x1477   :  { %v2838_v45 = vsub.f32 %v2822_v1, %v2828_v37  ;;  %v4646_v1 = vld [vmem:[%s6507_s6 + $0x28] sm:$0xff] }
0x1479   :  { %v2842_v10 = vmul.f32 1.442695, %v2838_v45 }
0x147a   :  { %v2831_v46 = vpop.xlane.xlu1 %2830 }
0x147b   :  { %5257 = vpow2.f32 %v2842_v10  ;;  %v2839_v47 = vsub.f32 %v2823_v23, %v2831_v46 }
0x147d   :  { %v2844_v12 = vmul.f32 1.442695, %v2839_v47 }
0x147f   :  { %5259 = vpow2.f32 %v2844_v12 }
0x1488   :  { %v5258_v48 = vpop.eup %5257 }
0x1489   :  { %v2850_v49 = vsel %vm692_vm3, %v5258_v48, 0.0 }
0x148a   :  { %2851 = vadd.xlane.f32.xlu0 %v2850_v49 }
0x148c   :  { %v5260_v50 = vpop.eup %5259 }
0x148d   :  { %v2853_v51 = vsel %vm692_vm3, %v5260_v50, 0.0 }
0x148e   :  { %2854 = vadd.xlane.f32.xlu1 %v2853_v51 }
0x14e7   :  { %v2834_v52 = vpop.xlane.xlu0 %2833 }
0x14e8   :  { %v2840_v53 = vsub.f32 %v2824_v35, %v2834_v52 }
0x14ea   :  { %v2846_v54 = vmul.f32 1.442695, %v2840_v53 }
0x14eb   :  { %v2837_v56 = vpop.xlane.xlu0 %2836 }
0x14ec   :  { %5261 = vpow2.f32 %v2846_v54  ;;  %v2841_v58 = vsub.f32 %v2825_v43, %v2837_v56  ;;  %v4662_v54 = vld [vmem:[%s6478_s10 + $0x38] sm:$0xff]  ;;  %v4661_v56 = vld [vmem:[%s6478_s10 + $0x30] sm:$0xff] }
0x14ee   :  { %v2848_v62 = vmul.f32 1.442695, %v2841_v58  ;;  %v4655_v58 = vld [vmem:[%s6476_s8 + $0x38] sm:$0xff] }
0x14f0   :  { %5263 = vpow2.f32 %v2848_v62  ;;  %v4654_v62 = vld [vmem:[%s6476_s8 + $0x30] sm:$0xff] }
0x14f9   :  { %v5262_v63 = vpop.eup %5261 }
0x14fa   :  { %v2856_v2 = vsel %vm692_vm3, %v5262_v63, 0.0 }
0x14fb   :  { %2857 = vadd.xlane.f32.xlu0 %v2856_v2  ;;  %v4653_v2 = vld [vmem:[%s6476_s8 + $0x28] sm:$0xff] }
0x14fd   :  { %v5264_v3 = vpop.eup %5263 }
0x14fe   :  { %v2859_v57 = vsel %vm692_vm3, %v5264_v3, 0.0 }
0x14ff   :  { %2860 = vadd.xlane.f32.xlu1 %v2859_v57  ;;  %v5303_v57 = vld [vmem:[#allocation5 + $0x8] sm:$0xff] }
0x1510   :  { %2946 = vrot.lane.b32.xlu1 %v6173_v8, %s5602_s27 }
0x1511   :  { %2870 = vrot.lane.b32.xlu0 %v6175_v11, %s5602_s27 }
0x1513   :  { %v2852_v60 = vpop.xlane.xlu0 %2851 }
0x1514   :  { %3022 = vrot.lane.b32.xlu1 %v6189_v13, %s5602_s27  ;;  %5265 = vrcp.f32 %v2852_v60  ;;  %v4652_v60 = vld [vmem:[%s6476_s8 + $0x20] sm:$0xff] }
0x1517   :  { %v2855_v4 = vpop.xlane.xlu1 %2854 }
0x1518   :  { %3098 = vrot.lane.b32.xlu1 %v6185_v26, %s5602_s27  ;;  %5267 = vrcp.f32 %v2855_v4 }
0x1521   :  { %v5266_v6 = vpop.eup %5265 }
0x1522   :  { %v2866_v14 = vmul.f32 %v5266_v6, %v5258_v48 }
0x1525   :  { %v5268_v8 = vpop.eup %5267 }
0x1526   :  { %v2867_v26 = vmul.f32 %v5268_v8, %v5260_v50  ;;  %v3311_v8 = vrot.slane %v6158_v55, %v5978_v44 }
0x1584   :  { %v2858_v5 = vpop.xlane.xlu0 %2857 }
0x1585   :  { %5269 = vrcp.f32 %v2858_v5 }
0x1588   :  { %v2861_v7 = vpop.xlane.xlu1 %2860  ;;  %v2871_v9 = vpop.permute.xlu0 %2870 }
0x1589   :  { %5271 = vrcp.f32 %v2861_v7  ;;  %5054 = vmatpush3.msra.mxu0 %v2871_v9 }
0x158a   :  { %5056 = vmatmul.mubr.msk.f32.vlgmr.msra.gmra.mxu0 %vm692_vm3, %v2866_v14  ;;  %5063 = vmatprep.subr.mxu0 %v5598_v39 }
0x158b   :  { %5065 = vmatprep.mubr.msk.f32.mxu0 %vm5599_vm1, %v5598_v39 }
0x158c   :  { %v2947_v11 = vpop.permute.xlu1 %2946 }
0x158d   :  { %5059 = vmatpush3.msra.mxu1 %v2947_v11 }
0x158e   :  { %5061 = vmatmul.mubr.msk.f32.vlgmr.msra.gmra.mxu1 %vm692_vm3, %v2867_v26  ;;  %5068 = vmatprep.subr.mxu1 %v5598_v39 }
0x158f   :  { %5070 = vmatprep.mubr.msk.f32.mxu1 %vm5599_vm1, %v5598_v39 }
0x1590   :  { %v3023_v13 = vpop.permute.xlu1 %3022 }
0x1591   :  { %5064 = vmatpush3.msra.mxu0 %v3023_v13  ;;  %v3317_v13 = vrot.slane %v6165_v61, %v5978_v44 }
0x1592   :  { %v5270_v25 = vpop.eup %5269  ;;  %5073 = vmatprep.subr.mxu0 %v4648_v17 }
0x1593   :  { %v2868_v27 = vmul.f32 %v5270_v25, %v5262_v63  ;;  %v4660_v63 = vld [vmem:[%s6478_s10 + $0x28] sm:$0xff] }
0x1594   :  { %v3099_v28 = vpop.permute.xlu1 %3098 }
0x1595   :  { %5066 = vmatmul.mubr.msk.f32.vlgmr.msra.gmra.mxu0 %vm692_vm3, %v2868_v27  ;;  %5069 = vmatpush3.msra.mxu1 %v3099_v28 }
0x1596   :  { %v5272_v15 = vpop.eup %5271  ;;  %5074 = vmatpush3.msra.mxu0 %v4648_v17  ;;  %5084 = vmatprep.subr.mxu1 %v4655_v58 }
0x1597   :  { %v2869_v16 = vmul.f32 %v5272_v15, %v5264_v3  ;;  %5075 = vmatprep.subr.mxu0 %v4647_v18  ;;  %v4659_v3 = vld [vmem:[%s6478_s10 + $0x20] sm:$0xff] }
0x1598   :  { %5076 = vmatpush3.msra.mxu0 %v4647_v18  ;;  %v4663_v18 = vld [vmem:[#allocation11 + $0x1] ss:$0 sm:$0xff] }
0x1599   :  { %5071 = vmatmul.mubr.msk.f32.vlgmr.msra.gmra.mxu1 %vm692_vm3, %v2869_v16  ;;  %5077 = vmatprep.subr.mxu0 %v4646_v1 }
0x159a   :  { %5078 = vmatpush3.msra.mxu0 %v4646_v1  ;;  %5085 = vmatpush3.msra.mxu1 %v4655_v58 }
0x159b   :  { %5079 = vmatprep.subr.mxu0 %v4645_v0  ;;  %5086 = vmatprep.subr.mxu1 %v4654_v62 }
0x159c   :  { %5080 = vmatpush3.msra.mxu0 %v4645_v0  ;;  %5087 = vmatpush3.msra.mxu1 %v4654_v62 }
0x159d   :  { %5095 = vmatprep.subr.mxu0 %v4662_v54  ;;  %5088 = vmatprep.subr.mxu1 %v4653_v2 }
0x159e   :  { %5089 = vmatpush3.msra.mxu1 %v4653_v2 }
0x159f   :  { %5090 = vmatprep.subr.mxu1 %v4652_v60 }
0x15a0   :  { %5091 = vmatpush3.msra.mxu1 %v4652_v60 }
0x15a1   :  { %5106 = vmatprep.subr.mxu1 %v5598_v39 }
0x164a   :  { %v2942_v19 = vpop.f32.mrf.mxu0 }
0x164c   :  { %v5057_v20 = vpop.f32.mrf.mxu0 }
0x164e   :  { %v3018_v21 = vpop.f32.mrf.mxu1 }
0x1650   :  { %v5062_v22 = vpop.f32.mrf.mxu1 }
0x1651   :  { %v4656_v22 = vld [vmem:[#allocation10 + $0x1] ss:$0 sm:$0xff] }
0x1655   :  { %v3094_v23 = vpop.f32.mrf.mxu0 }
0x1656   :  { %3176 = vrot.lane.b32.xlu0 %v3094_v23, %s5587_s2 }
0x1657   :  { %v5067_v24 = vpop.f32.mrf.mxu0 }
0x1659   :  { %v3170_v30 = vpop.f32.mrf.mxu1 }
0x165a   :  { %3178 = vrot.lane.b32.xlu1 %v3170_v30, %s5587_s2 }
0x165b   :  { %v5072_v32 = vpop.f32.mrf.mxu1 }
0x16c8   :  { %v3177_v34 = vpop.permute.xlu0 %3176 }
0x16c9   :  { %v3182_v36 = vsel %vm381_vm2, %v2942_v19, %v3177_v34 }
0x16ca   :  { %5081 = vmatprep.mubr.msk.f32.mxu0 %vm241_vm0, %v3182_v36 }
0x16cc   :  { %v3179_v38 = vpop.permute.xlu1 %3178 }
0x16cd   :  { %v3183_v40 = vsel %vm381_vm2, %v3018_v21, %v3179_v38 }
0x16ce   :  { %5082 = vmatmul.mubr.msk.f32.vlgmr.msra.gmra.mxu0 %vm241_vm0, %v3183_v40 }
0x16cf   :  { %5103 = vmatprep.mubr.msk.f32.mxu0 %vm241_vm0, %v5962_v33  ;;  %5096 = vmatpush3.msra.mxu0 %v4662_v54 }
0x16d0   :  { %5097 = vmatprep.subr.mxu0 %v4661_v56 }
0x16d1   :  { %5098 = vmatpush3.msra.mxu0 %v4661_v56 }
0x16d2   :  { %5099 = vmatprep.subr.mxu0 %v4660_v63 }
0x16d3   :  { %5100 = vmatpush3.msra.mxu0 %v4660_v63 }
0x16d4   :  { %5101 = vmatprep.subr.mxu0 %v4659_v3 }
0x16d5   :  { %5102 = vmatpush3.msra.mxu0 %v4659_v3 }
0x16d6   :  { %5104 = vmatmul.mubr.msk.f32.vlgmr.msra.gmra.mxu0 %vm241_vm0, %v5303_v57  ;;  %5116 = vmatprep.subr.mxu0 %v5598_v39 }
0x16d7   :  { %5118 = vmatprep.mubr.msk.f32.mxu0 %vm5599_vm1, %v5598_v39 }
0x178e   :  { %v5083_v35 = vpop.f32.mrf.mxu0 }
0x178f   :  { %v3271_v43 = vadd.f32 %v5083_v35, %v6129_v29 }
0x1790   :  { %v3261_v42 = vpop.f32.mrf.mxu0 }
0x1791   :  { %v6270_v37 = vadd.f32 %v4651_v41, %v3271_v43  ;;  %v3270_v45 = vadd.f32 %v3261_v42, %v6132_v31 }
0x1793   :  { %v6273_v10 = vadd.f32 %v4651_v41, %v3270_v45  ;;  %v3285_v46 = vsel %vm241_vm0, %v6270_v37, 0.0  ;;  %v5304_v41 = vld [vmem:[%s6508_s0] sm:$0xff] }
0x1794   :  { %3286 = vadd.xlane.f32.xlu1 %v3285_v46 }
0x1795   :  { %v3282_v47 = vsel %vm241_vm0, %v6273_v10, 0.0 }
0x1796   :  { %3283 = vadd.xlane.f32.xlu0 %v3282_v47  ;;  %v5105_v1 = vpop.f32.mrf.mxu0 }
0x1797   :  { %v6320_v19 = vadd.f32 %v5105_v1, %v4663_v18 }
0x1798   :  { %v3493_v20 = vpop.f32.mrf.mxu0 }
0x1799   :  { %v6322_v0 = vadd.f32 %v4663_v18, %v3493_v20 }
0x17a5   :  { %3512 = vrot.lane.b32.xlu1 %v6320_v19, %s5600_s29 }
0x181d   :  { %v3287_v33 = vpop.xlane.xlu1 %3286 }
0x181e   :  { %v3289_v12 = vmul.f32 0.03125, %v3287_v33  ;;  %v5305_v33 = vld [vmem:[%s6508_s0 + $0x8] sm:$0xff] }
0x181f   :  { %v3284_v48 = vpop.xlane.xlu0 %3283 }
0x1820   :  { %v3288_v49 = vmul.f32 0.03125, %v3284_v48  ;;  %v3291_v29 = vsub.f32 %v6270_v37, %v3289_v12 }
0x1821   :  { %v6342_v32 = vpop.permute.xlu1 %3512 }
0x1822   :  { %v3290_v50 = vsub.f32 %v6273_v10, %v3288_v49  ;;  %v3293_v52 = vmul.f32 %v3291_v29, %v3291_v29 }
0x1824   :  { %v3292_v51 = vmul.f32 %v3290_v50, %v3290_v50  ;;  %v3297_v53 = vsel %vm241_vm0, %v3293_v52, 0.0 }
0x1826   :  { %v3294_v31 = vsel %vm241_vm0, %v3292_v51, 0.0 }
0x1827   :  { %3295 = vadd.xlane.f32.xlu0 %v3294_v31 }
0x182b   :  { %3298 = vadd.xlane.f32.xlu0 %v3297_v53 }
0x1841   :  { %3510 = vrot.lane.b32.xlu0 %v6322_v0, %s5600_s29 }
0x18b0   :  { %v3296_v4 = vpop.xlane.xlu0 %3295 }
0x18b1   :  { %v3300_v5 = vmul.f32 0.03125, %v3296_v4 }
0x18b3   :  { %v3302_v6 = vadd.f32 1e-05, %v3300_v5 }
0x18b4   :  { %v3299_v7 = vpop.xlane.xlu0 %3298 }
0x18b5   :  { %5273 = vrsqrt.f32 %v3302_v6  ;;  %v3301_v9 = vmul.f32 0.03125, %v3299_v7 }
0x18b7   :  { %v3303_v14 = vadd.f32 1e-05, %v3301_v9 }
0x18b8   :  { %v6331_v44 = vpop.permute.xlu0 %3510 }
0x18b9   :  { %5275 = vrsqrt.f32 %v3303_v14  ;;  %5117 = vmatpush3.xpose.msk.msra.mxu0 %vm381_vm2, %v6331_v44 }
0x18ba   :  { %5126 = vmatprep.subr.mxu0 %v5598_v39 }
0x18c2   :  { %v5274_v11 = vpop.eup %5273 }
0x18c3   :  { %v3306_v26 = vmul.f32 %v5274_v11, %v3290_v50 }
0x18c5   :  { %v3312_v25 = vmul.f32 %v3311_v8, %v3306_v26 }
0x18c6   :  { %v5276_v27 = vpop.eup %5275 }
0x18c7   :  { %v3307_v28 = vmul.f32 %v5276_v27, %v3291_v29  ;;  %v3318_v15 = vadd.f32 %v3317_v13, %v3312_v25 }
0x18c9   :  { %v3313_v16 = vmul.f32 %v3311_v8, %v3307_v28  ;;  %5092 = vmatprep.mubr.msk.f32.mxu1 %vm241_vm0, %v3318_v15 }
0x18cb   :  { %v3319_v17 = vadd.f32 %v3317_v13, %v3313_v16 }
0x18cd   :  { %5093 = vmatmul.mubr.msk.f32.vlgmr.msra.gmra.mxu1 %vm241_vm0, %v3319_v17 }
0x18ce   :  { %5108 = vmatprep.mubr.msk.f32.mxu1 %vm5599_vm1, %v5598_v39  ;;  %5107 = vmatpush3.xpose.msk.msra.mxu1 %vm381_vm2, %v6322_v0 }
0x18cf   :  { %5111 = vmatprep.subr.mxu1 %v5598_v39 }
0x198d   :  { %v5094_v21 = vpop.f32.mrf.mxu1 }
0x198e   :  { %v3411_v30 = vadd.f32 %v5094_v21, %v4656_v22 }
0x198f   :  { %v3405_v23 = vpop.f32.mrf.mxu1 }
0x1990   :  { %v3406_v24 = vadd.f32 %v4656_v22, %v3405_v23 }
0x1992   :  { %3504 = vrot.lane.b32.xlu1 %v3406_v24, %s5600_s29  ;;  %5109 = vmatmul.mubr.msk.f32.vlgmr.msra.gmra.mxu1 %vm381_vm2, %v3406_v24 }
0x1993   :  { %5112 = vmatpush3.xpose.msk.msra.mxu1 %vm381_vm2, %v6320_v19  ;;  %5113 = vmatprep.mubr.msk.f32.mxu1 %vm5599_vm1, %v5598_v39 }
0x1994   :  { %5121 = vmatprep.subr.mxu1 %v5598_v39 }
0x1996   :  { %3506 = vrot.lane.b32.xlu1 %v3411_v30, %s5600_s29  ;;  %5114 = vmatmul.mubr.msk.f32.vlgmr.msra.gmra.mxu1 %vm381_vm2, %v3411_v30 }
0x1997   :  { %5122 = vmatpush3.xpose.msk.msra.mxu1 %vm381_vm2, %v6342_v32  ;;  %5123 = vmatprep.mubr.msk.f32.mxu1 %vm5599_vm1, %v5598_v39 }
0x1998   :  { %5131 = vmatprep.subr.mxu1 %v5598_v39 }
0x1a04   :  { %v3505_v34 = vpop.permute.xlu1 %3504 }
0x1a05   :  { %5119 = vmatmul.mubr.msk.f32.vlgmr.msra.gmra.mxu0 %vm381_vm2, %v3505_v34 }
0x1a06   :  { %5128 = vmatprep.mubr.msk.f32.mxu0 %vm5599_vm1, %v5598_v39 }
0x1a08   :  { %v3507_v36 = vpop.permute.xlu1 %3506 }
0x1a09   :  { %5124 = vmatmul.mubr.msk.f32.vlgmr.msra.gmra.mxu1 %vm381_vm2, %v3507_v36 }
0x1a0a   :  { %5133 = vmatprep.mubr.msk.f32.mxu1 %vm5599_vm1, %v5598_v39 }
0x1a52   :  { %v3584_v38 = vpop.f32.mrf.mxu1 }
0x1a53   :  { %v3810_v40 = vmul.f32 0.25, %v3584_v38  ;;  %v4681_v38 = vld [vmem:[%s6480_s12 + $0x38] sm:$0xff] }
0x1a54   :  { %v5110_v35 = vpop.f32.mrf.mxu1 }
0x1a55   :  { %v3814_v43 = vadd.f32 %v5304_v41, %v3810_v40  ;;  %v4679_v40 = vld [vmem:[%s6480_s12 + $0x28] sm:$0xff] }
0x1a56   :  { %v3658_v42 = vpop.f32.mrf.mxu1 }
0x1a57   :  { %v3811_v45 = vmul.f32 0.25, %v3658_v42  ;;  %v3818_v46 = vsel %vm692_vm3, %v3814_v43, -inf }
0x1a58   :  { %3819 = vmax.xlane.f32.xlu0 %v3818_v46  ;;  %v5115_v47 = vpop.f32.mrf.mxu1 }
0x1a59   :  { %v3815_v12 = vadd.f32 %v5305_v33, %v3811_v45 }
0x1a5b   :  { %v3821_v48 = vsel %vm692_vm3, %v3815_v12, -inf }
0x1a5c   :  { %3822 = vmax.xlane.f32.xlu1 %v3821_v48 }
0x1ac5   :  { %v3732_v49 = vpop.f32.mrf.mxu0 }
0x1ac6   :  { %v3812_v29 = vmul.f32 0.25, %v3732_v49 }
0x1ac7   :  { %v5120_v50 = vpop.f32.mrf.mxu0 }
0x1ac8   :  { %v3816_v51 = vadd.f32 %v5304_v41, %v3812_v29 }
0x1ac9   :  { %v3806_v31 = vpop.f32.mrf.mxu1 }
0x1aca   :  { %v3813_v52 = vmul.f32 0.25, %v3806_v31  ;;  %v3824_v53 = vsel %vm692_vm3, %v3816_v51, -inf  ;;  %v4684_v31 = vld [vmem:[#allocation13 + $0x1] ss:$0 sm:$0xff] }
0x1acb   :  { %v5125_v54 = vpop.f32.mrf.mxu1  ;;  %3825 = vmax.xlane.f32.xlu0 %v3824_v53 }
0x1acc   :  { %v3817_v56 = vadd.f32 %v5305_v33, %v3813_v52 }
0x1ace   :  { %v3827_v58 = vsel %vm692_vm3, %v3817_v56, -inf }
0x1acf   :  { %3828 = vmax.xlane.f32.xlu0 %v3827_v58 }
0x1ae1   :  { %v3820_v62 = vpop.xlane.xlu0 %3819 }
0x1ae2   :  { %v3830_v63 = vsub.f32 %v3814_v43, %v3820_v62  ;;  %v4678_v43 = vld [vmem:[%s6480_s12 + $0x20] sm:$0xff] }
0x1ae4   :  { %v3834_v2 = vmul.f32 1.442695, %v3830_v63 }
0x1ae5   :  { %v3823_v3 = vpop.xlane.xlu1 %3822 }
0x1ae6   :  { %5277 = vpow2.f32 %v3834_v2  ;;  %v3831_v57 = vsub.f32 %v3815_v12, %v3823_v3 }
0x1ae8   :  { %v3836_v60 = vmul.f32 1.442695, %v3831_v57 }
0x1aea   :  { %5279 = vpow2.f32 %v3836_v60 }
0x1af3   :  { %v5278_v4 = vpop.eup %5277 }
0x1af4   :  { %v3842_v5 = vsel %vm692_vm3, %v5278_v4, 0.0 }
0x1af5   :  { %3843 = vadd.xlane.f32.xlu0 %v3842_v5 }
0x1af7   :  { %v5280_v6 = vpop.eup %5279 }
0x1af8   :  { %v3845_v7 = vsel %vm692_vm3, %v5280_v6, 0.0 }
0x1af9   :  { %3846 = vadd.xlane.f32.xlu1 %v3845_v7 }
0x1b54   :  { %v3826_v9 = vpop.xlane.xlu0 %3825 }
0x1b55   :  { %v3832_v14 = vsub.f32 %v3816_v51, %v3826_v9  ;;  %v4316_v9 = vld [vmem:[#allocation14 + $0x38] sm:$0xff] }
0x1b57   :  { %v3838_v8 = vmul.f32 1.442695, %v3832_v14  ;;  %v4315_v14 = vld [vmem:[#allocation14 + $0x30] sm:$0xff] }
0x1b58   :  { %v3829_v11 = vpop.xlane.xlu0 %3828 }
0x1b59   :  { %5281 = vpow2.f32 %v3838_v8  ;;  %v3833_v26 = vsub.f32 %v3817_v56, %v3829_v11  ;;  %v4314_v8 = vld [vmem:[#allocation14 + $0x28] sm:$0xff]  ;;  %v4313_v11 = vld [vmem:[#allocation14 + $0x20] sm:$0xff] }
0x1b5b   :  { %v3840_v13 = vmul.f32 1.442695, %v3833_v26  ;;  %v4695_v26 = vld [vmem:[%s6484_s16 + $0x78] sm:$0xff] }
0x1b5d   :  { %5283 = vpow2.f32 %v3840_v13  ;;  %v4694_v13 = vld [vmem:[%s6484_s16 + $0x70] sm:$0xff] }
0x1b66   :  { %v5282_v25 = vpop.eup %5281 }
0x1b67   :  { %v3848_v27 = vsel %vm692_vm3, %v5282_v25, 0.0 }
0x1b68   :  { %3849 = vadd.xlane.f32.xlu0 %v3848_v27  ;;  %v4692_v27 = vld [vmem:[%s6484_s16 + $0x60] sm:$0xff] }
0x1b6a   :  { %v5284_v28 = vpop.eup %5283 }
0x1b6b   :  { %v3851_v15 = vsel %vm692_vm3, %v5284_v28, 0.0 }
0x1b6c   :  { %3852 = vadd.xlane.f32.xlu1 %v3851_v15 }
0x1b7d   :  { %3938 = vrot.lane.b32.xlu1 %v6320_v19, %s5601_s28 }
0x1b7e   :  { %3862 = vrot.lane.b32.xlu0 %v6322_v0, %s5601_s28  ;;  %v3844_v16 = vpop.xlane.xlu0 %3843 }
0x1b7f   :  { %5285 = vrcp.f32 %v3844_v16 }
0x1b81   :  { %4014 = vrot.lane.b32.xlu1 %v6331_v44, %s5601_s28 }
0x1b82   :  { %v3847_v17 = vpop.xlane.xlu1 %3846 }
0x1b83   :  { %5287 = vrcp.f32 %v3847_v17 }
0x1b85   :  { %4090 = vrot.lane.b32.xlu1 %v6342_v32, %s5601_s28 }
0x1b8c   :  { %v5286_v1 = vpop.eup %5285 }
0x1b8d   :  { %v3858_v22 = vmul.f32 %v5286_v1, %v5278_v4 }
0x1b90   :  { %v5288_v19 = vpop.eup %5287 }
0x1b91   :  { %v3859_v44 = vmul.f32 %v5288_v19, %v5280_v6  ;;  %v4309_v19 = vrot.slane %v6165_v61, %v6103_v59  ;;  %v4688_v61 = vld [vmem:[%s6484_s16 + $0x40] sm:$0xff] }
0x1bf1   :  { %v3850_v18 = vpop.xlane.xlu0 %3849 }
0x1bf2   :  { %5289 = vrcp.f32 %v3850_v18 }
0x1bf5   :  { %v3853_v20 = vpop.xlane.xlu1 %3852  ;;  %v3863_v21 = vpop.permute.xlu0 %3862 }
0x1bf6   :  { %5291 = vrcp.f32 %v3853_v20  ;;  %5127 = vmatpush3.msra.mxu0 %v3863_v21  ;;  %v4303_v20 = vrot.slane %v6158_v55, %v6103_v59  ;;  %v4690_v59 = vld [vmem:[%s6484_s16 + $0x50] sm:$0xff]  ;;  %v4689_v55 = vld [vmem:[%s6484_s16 + $0x48] sm:$0xff] }
0x1bf7   :  { %5129 = vmatmul.mubr.msk.f32.vlgmr.msra.gmra.mxu0 %vm692_vm3, %v3858_v22  ;;  %5136 = vmatprep.subr.mxu0 %v5598_v39 }
0x1bf8   :  { %5138 = vmatprep.mubr.msk.f32.mxu0 %vm5599_vm1, %v5598_v39 }
0x1bf9   :  { %v3939_v0 = vpop.permute.xlu1 %3938 }
0x1bfa   :  { %5132 = vmatpush3.msra.mxu1 %v3939_v0 }
0x1bfb   :  { %5134 = vmatmul.mubr.msk.f32.vlgmr.msra.gmra.mxu1 %vm692_vm3, %v3859_v44  ;;  %5141 = vmatprep.subr.mxu1 %v5598_v39 }
0x1bfc   :  { %5143 = vmatprep.mubr.msk.f32.mxu1 %vm5599_vm1, %v5598_v39  ;;  %v4680_v39 = vld [vmem:[%s6480_s12 + $0x30] sm:$0xff] }
0x1bfd   :  { %v4015_v23 = vpop.permute.xlu1 %4014 }
0x1bfe   :  { %5137 = vmatpush3.msra.mxu0 %v4015_v23 }
0x1bff   :  { %v5290_v24 = vpop.eup %5289  ;;  %5146 = vmatprep.subr.mxu0 %v4681_v38 }
0x1c00   :  { %v3860_v30 = vmul.f32 %v5290_v24, %v5282_v25  ;;  %v4693_v25 = vld [vmem:[%s6484_s16 + $0x68] sm:$0xff] }
0x1c01   :  { %v4091_v32 = vpop.permute.xlu1 %4090 }
0x1c02   :  { %5139 = vmatmul.mubr.msk.f32.vlgmr.msra.gmra.mxu0 %vm692_vm3, %v3860_v30  ;;  %5142 = vmatpush3.msra.mxu1 %v4091_v32 }
0x1c03   :  { %v5292_v34 = vpop.eup %5291  ;;  %5147 = vmatpush3.msra.mxu0 %v4681_v38  ;;  %5157 = vmatprep.subr.mxu1 %v4316_v9 }
0x1c04   :  { %v3861_v36 = vmul.f32 %v5292_v34, %v5284_v28  ;;  %5148 = vmatprep.subr.mxu0 %v4680_v39  ;;  %v4691_v34 = vld [vmem:[%s6484_s16 + $0x58] sm:$0xff]  ;;  %s5603_s16 = smov [#allocation22]  }
0x1c05   :  { %5149 = vmatpush3.msra.mxu0 %v4680_v39  ;;  %s4561_s10 = sshll.u32 %s5603_s16, 4  ;;  %s4562_s10 = int_to_ptr.vmem [resolvable:$true] %s4561_s10 }
0x1c06   :  { %5144 = vmatmul.mubr.msk.f32.vlgmr.msra.gmra.mxu1 %vm692_vm3, %v3861_v36  ;;  %5150 = vmatprep.subr.mxu0 %v4679_v40  ;;  %v4685_v36 = vld [vmem:[#allocation16 + $0x1] ss:$0 sm:$0xff]  ;;  %s5546_s29 = scalar_lea.vmem %s4562_s10, 256  ;;  %p5551_p5 = scmp.lt.s32.totalorder %s4562_s10, %s4562_s10 }
0x1c07   :  { %5151 = vmatpush3.msra.mxu0 %v4679_v40  ;;  %5158 = vmatpush3.msra.mxu1 %v4316_v9  ;;  %v4700_v9 = vld [vmem:[#allocation20] ss:$0 sm:$0xff]  ;;  %p5547_p4 = scmp.ne.s32.totalorder %s4562_s10, %s5546_s29  ;;  %p5552_p6 = scmp.lt.s32.totalorder %s5546_s29, %s5546_s29 }
0x1c08   :  { %5152 = vmatprep.subr.mxu0 %v4678_v43  ;;  %5159 = vmatprep.subr.mxu1 %v4315_v14 }
0x1c09   :  { %5153 = vmatpush3.msra.mxu0 %v4678_v43  ;;  %5160 = vmatpush3.msra.mxu1 %v4315_v14  ;;  %p5553_p7 = por %p5552_p6, %p5551_p5 }
0x1c0a   :  { %5161 = vmatprep.subr.mxu1 %v4314_v8  ;;  %5168 = vmatprep.subr.mxu0 %v4695_v26 }
0x1c0b   :  { %5162 = vmatpush3.msra.mxu1 %v4314_v8  ;;  %p5554_p8 = pnand %p5553_p7, %p5547_p4 }
0x1c0c   :  { %5163 = vmatprep.subr.mxu1 %v4313_v11 }
0x1c0d   :  { %5164 = vmatpush3.msra.mxu1 %v4313_v11 }
0x1cb7   :  { %v3934_v35 = vpop.f32.mrf.mxu0 }
0x1cb9   :  { %v5130_v41 = vpop.f32.mrf.mxu0 }
0x1cbb   :  { %v4010_v42 = vpop.f32.mrf.mxu1 }
0x1cbd   :  { %v5135_v45 = vpop.f32.mrf.mxu1 }
0x1cbe   :  { %v4698_v45 = vld [vmem:[#allocation17 + $0x1] ss:$0 sm:$0xff] }
0x1cc2   :  { %v4086_v46 = vpop.f32.mrf.mxu0 }
0x1cc3   :  { %4168 = vrot.lane.b32.xlu0 %v4086_v46, %s5587_s2 }
0x1cc4   :  { %v5140_v47 = vpop.f32.mrf.mxu0 }
0x1cc6   :  { %v4162_v33 = vpop.f32.mrf.mxu1 }
0x1cc7   :  { %4170 = vrot.lane.b32.xlu1 %v4162_v33, %s5587_s2 }
0x1cc8   :  { %v5145_v12 = vpop.f32.mrf.mxu1 }
0x1d35   :  { %v4169_v48 = vpop.permute.xlu0 %4168 }
0x1d36   :  { %v4174_v49 = vsel %vm381_vm2, %v3934_v35, %v4169_v48 }
0x1d37   :  { %5154 = vmatprep.mubr.msk.f32.mxu0 %vm241_vm0, %v4174_v49 }
0x1d39   :  { %v4171_v29 = vpop.permute.xlu1 %4170 }
0x1d3a   :  { %v4175_v50 = vsel %vm381_vm2, %v4010_v42, %v4171_v29 }
0x1d3b   :  { %5155 = vmatmul.mubr.msk.f32.vlgmr.msra.gmra.mxu0 %vm241_vm0, %v4175_v50 }
0x1d3c   :  { %5169 = vmatpush3.msra.mxu0 %v4695_v26 }
0x1d3d   :  { %5170 = vmatprep.subr.mxu0 %v4694_v13 }
0x1d3e   :  { %5171 = vmatpush3.msra.mxu0 %v4694_v13 }
0x1d3f   :  { %5172 = vmatprep.subr.mxu0 %v4693_v25 }
0x1d40   :  { %5173 = vmatpush3.msra.mxu0 %v4693_v25 }
0x1d41   :  { %5174 = vmatprep.subr.mxu0 %v4692_v27 }
0x1d42   :  { %5175 = vmatpush3.msra.mxu0 %v4692_v27 }
0x1d43   :  { %5176 = vmatprep.subr.mxu0 %v4691_v34 }
0x1d44   :  { %5177 = vmatpush3.msra.mxu0 %v4691_v34 }
0x1d45   :  { %5178 = vmatprep.subr.mxu0 %v4690_v59 }
0x1d46   :  { %5179 = vmatpush3.msra.mxu0 %v4690_v59 }
0x1d47   :  { %5180 = vmatprep.subr.mxu0 %v4689_v55 }
0x1d48   :  { %5181 = vmatpush3.msra.mxu0 %v4689_v55 }
0x1d49   :  { %5182 = vmatprep.subr.mxu0 %v4688_v61 }
0x1d4a   :  { %5183 = vmatpush3.msra.mxu0 %v4688_v61 }
0x1dfb   :  { %v5156_v51 = vpop.f32.mrf.mxu0 }
0x1dfc   :  { %v4263_v52 = vadd.f32 %v5156_v51, %v6270_v37 }
0x1dfd   :  { %v4253_v53 = vpop.f32.mrf.mxu0 }
0x1dfe   :  { %v6409_v54 = vadd.f32 %v4684_v31, %v4263_v52  ;;  %v4262_v56 = vadd.f32 %v4253_v53, %v6273_v10 }
0x1e00   :  { %v6412_v58 = vadd.f32 %v4684_v31, %v4262_v56  ;;  %v4277_v62 = vsel %vm241_vm0, %v6409_v54, 0.0 }
0x1e01   :  { %4278 = vadd.xlane.f32.xlu1 %v4277_v62 }
0x1e02   :  { %v4274_v63 = vsel %vm241_vm0, %v6412_v58, 0.0 }
0x1e03   :  { %4275 = vadd.xlane.f32.xlu0 %v4274_v63 }
0x1e8a   :  { %v4279_v2 = vpop.xlane.xlu1 %4278 }
0x1e8b   :  { %v4281_v3 = vmul.f32 0.03125, %v4279_v2 }
0x1e8c   :  { %v4276_v57 = vpop.xlane.xlu0 %4275 }
0x1e8d   :  { %v4280_v60 = vmul.f32 0.03125, %v4276_v57  ;;  %v4283_v37 = vsub.f32 %v6409_v54, %v4281_v3 }
0x1e8f   :  { %v4282_v4 = vsub.f32 %v6412_v58, %v4280_v60  ;;  %v4285_v6 = vmul.f32 %v4283_v37, %v4283_v37 }
0x1e91   :  { %v4284_v5 = vmul.f32 %v4282_v4, %v4282_v4  ;;  %v4289_v7 = vsel %vm241_vm0, %v4285_v6, 0.0 }
0x1e93   :  { %v4286_v10 = vsel %vm241_vm0, %v4284_v5, 0.0 }
0x1e94   :  { %4287 = vadd.xlane.f32.xlu0 %v4286_v10  ;;  %v4699_v10 = vld [vmem:[#allocation19] ss:$0 sm:$0xff] }
0x1e98   :  { %4290 = vadd.xlane.f32.xlu0 %v4289_v7 }
0x1f1d   :  { %v4288_v28 = vpop.xlane.xlu0 %4287 }
0x1f1e   :  { %v4292_v15 = vmul.f32 0.03125, %v4288_v28 }
0x1f20   :  { %v4294_v16 = vadd.f32 1e-05, %v4292_v15 }
0x1f21   :  { %v4291_v17 = vpop.xlane.xlu0 %4290 }
0x1f22   :  { %5293 = vrsqrt.f32 %v4294_v16  ;;  %v4293_v18 = vmul.f32 0.03125, %v4291_v17 }
0x1f24   :  { %v4295_v1 = vadd.f32 1e-05, %v4293_v18 }
0x1f26   :  { %5295 = vrsqrt.f32 %v4295_v1 }
0x1f2f   :  { %v5294_v21 = vpop.eup %5293 }
0x1f30   :  { %v4298_v22 = vmul.f32 %v5294_v21, %v4282_v4 }
0x1f32   :  { %v4304_v0 = vmul.f32 %v4303_v20, %v4298_v22 }
0x1f33   :  { %v5296_v44 = vpop.eup %5295 }
0x1f34   :  { %v4299_v23 = vmul.f32 %v5296_v44, %v4283_v37  ;;  %v4310_v24 = vadd.f32 %v4309_v19, %v4304_v0 }
0x1f36   :  { %v4305_v30 = vmul.f32 %v4303_v20, %v4299_v23  ;;  %5165 = vmatprep.mubr.msk.f32.mxu1 %vm241_vm0, %v4310_v24 }
0x1f38   :  { %v4311_v32 = vadd.f32 %v4309_v19, %v4305_v30 }
0x1f3a   :  { %5166 = vmatmul.mubr.msk.f32.vlgmr.msra.gmra.mxu1 %vm241_vm0, %v4311_v32 }
0x1ffa   :  { %v5167_v38 = vpop.f32.mrf.mxu1 }
0x1ffb   :  { %v4403_v39 = vadd.f32 %v5167_v38, %v4685_v36 }
0x1ffc   :  { %v4397_v40 = vpop.f32.mrf.mxu1 }
0x1ffd   :  { %v4398_v35 = vadd.f32 %v4685_v36, %v4397_v40  ;;  %v4407_v43 = vmax.f32 %v4403_v39, 0.0 }
0x1fff   :  { %v4406_v41 = vmax.f32 %v4398_v35, 0.0 }
0x2001   :  { %5184 = vmatprep.mubr.msk.f32.mxu0 %vm2279_vm4, %v4406_v41 }
0x2002   :  { %5185 = vmatmul.mubr.msk.f32.vlgmr.msra.gmra.mxu0 %vm2279_vm4, %v4407_v43 }
0x20c2   :  { %v5186_v42 = vpop.f32.mrf.mxu0 }
0x20c3   :  { %v4499_v46 = vadd.f32 %v5186_v42, %v6409_v54 }
0x20c4   :  { %v4489_v47 = vpop.f32.mrf.mxu0 }
0x20c5   :  { %v4509_v33 = vadd.f32 %v4698_v45, %v4499_v46  ;;  %v4498_v12 = vadd.f32 %v4489_v47, %v6412_v58 }
0x20c7   :  { %v4508_v48 = vadd.f32 %v4698_v45, %v4498_v12  ;;  %v4515_v49 = vsel %vm241_vm0, %v4509_v33, 0.0 }
0x20c8   :  { %4516 = vadd.xlane.f32.xlu1 %v4515_v49 }
0x20c9   :  { %v4512_v29 = vsel %vm241_vm0, %v4508_v48, 0.0 }
0x20ca   :  { %4513 = vadd.xlane.f32.xlu0 %v4512_v29 }
0x2151   :  { %v4517_v50 = vpop.xlane.xlu1 %4516 }
0x2152   :  { %v4519_v51 = vmul.f32 0.03125, %v4517_v50 }
0x2153   :  { %v4514_v31 = vpop.xlane.xlu0 %4513 }
0x2154   :  { %v4521_v52 = vsub.f32 %v4509_v33, %v4519_v51  ;;  %v4518_v53 = vmul.f32 0.03125, %v4514_v31 }
0x2156   :  { %v4520_v56 = vsub.f32 %v4508_v48, %v4518_v53  ;;  %v4523_v62 = vmul.f32 %v4521_v52, %v4521_v52 }
0x2158   :  { %v4527_v54 = vsel %vm241_vm0, %v4523_v62, 0.0  ;;  %v4522_v63 = vmul.f32 %v4520_v56, %v4520_v56 }
0x2159   :  { %4528 = vadd.xlane.f32.xlu1 %v4527_v54 }
0x215a   :  { %v4524_v58 = vsel %vm241_vm0, %v4522_v63, 0.0 }
0x215b   :  { %4525 = vadd.xlane.f32.xlu0 %v4524_v58 }
0x21e2   :  { %v4529_v2 = vpop.xlane.xlu1 %4528 }
0x21e3   :  { %v4531_v3 = vmul.f32 0.03125, %v4529_v2 }
0x21e4   :  { %v4526_v57 = vpop.xlane.xlu0 %4525 }
0x21e5   :  { %v4533_v60 = vadd.f32 1e-05, %v4531_v3  ;;  %v4530_v37 = vmul.f32 0.03125, %v4526_v57 }
0x21e7   :  { %5297 = vrsqrt.f32 %v4533_v60  ;;  %v4532_v4 = vadd.f32 1e-05, %v4530_v37 }
0x21e9   :  { %5299 = vrsqrt.f32 %v4532_v4 }
0x21f4   :  { %v5298_v5 = vpop.eup %5297 }
0x21f5   :  { %v4537_v6 = vmul.f32 %v5298_v5, %v4521_v52 }
0x21f6   :  { %v5300_v7 = vpop.eup %5299 }
0x21f7   :  { %v4536_v14 = vmul.f32 %v5300_v7, %v4520_v56  ;;  %v4545_v8 = vmul.f32 %v4699_v10, %v4537_v6 }
0x21f9   :  { %v4544_v11 = vmul.f32 %v4699_v10, %v4536_v14  ;;  %v4553_v26 = vadd.f32 %v4700_v9, %v4545_v8 }
0x21fb   :  { %v4552_v13 = vadd.f32 %v4700_v9, %v4544_v11  ;;  %4555 = vst.msk [vmem:[#allocation22 + $0x8] sm:$0xff] %vm241_vm0, %v4553_v26 }
0x21fd   :  { %4554 = vst.msk [vmem:[#allocation22] sm:$0xff] %vm241_vm0, %v4552_v13 }
0x21fe   :  { %5557 = shalt.err (!%p5554_p8)
}
0x21ff   :  { %4567 = dma.vmem_to_hbm [thread:$0]  %s4562_s10, 256, %s6490_s22, [#allocation4], %s5583_s30, %s5583_s30, %s5584_s4  }
0x2200   :  { %5580 = dma.done.wait [#allocation4], 256  }
0x2201   :  { %5581 = vsyncadd [#allocation4], 4294967040 }
0x2202   :  { %4571 = vsyncpa [#allocation3], 1 }
0x2203   :  { %4572 = vsyncpa [#allocation6], 1 }
0x2204   :  { %4573 = vsyncpa [#allocation9], 1 }
0x2205   :  { %4574 = vsyncpa [#allocation12], 1 }
0x2206   :  { %4575 = vsyncpa [#allocation15], 1 }
0x2207   :  { %4576 = vsyncpa [#allocation18], 1 }
0x2208   :  { %4577 = vsyncpa [#allocation21], 1 }
0x2209   :  { %4578 = vsyncpa [#allocation4], 1 }

</bundles_post_ra>
